<compile_context>
chip_gen: v5e
topology: v5e:2x2
jax: 0.10.0
libtpu: 0.0.40
codegen_flags: <defaults>
</compile_context>

<pallas_src>
import jax
import jax.numpy as jnp
from jax.experimental import pallas as pl
from jax.experimental.pallas import tpu as pltpu

LN_EPS = 1e-5


def _layer_norm(x, w, b):
    # PyTorch nn.LayerNorm: biased variance, eps inside the sqrt.  f32 math.
    mu = jnp.mean(x, axis=-1, keepdims=True)
    var = jnp.mean((x - mu) * (x - mu), axis=-1, keepdims=True)
    return (x - mu) * jax.lax.rsqrt(var + LN_EPS) * w + b


# -----------------------------------------------------------------------------
# Fused kernel.  grid = (2, n_tiles); outer axis = phase, inner axis = row tile.
#   phase 0: q/k projections, per-head logits, online max / sum-exp over ALL
#            nodes (dgl.softmax_nodes over the single graph is a global
#            reduction), cache logits + residue rows in VMEM scratch.
#   phase 1: alpha = softmax(att); V*alpha; concat_trans; LN; FFN; LN.
# Both grid axes are sequential ("arbitrary"): phase 1 depends on all of
# phase 0, and the stats carry across row tiles.
# -----------------------------------------------------------------------------
def _fused_kernel(res_ref, inter_ref, wq_ref, wk_ref, hsum_ref,
                  wv_ref, hexp_ref, wc_ref, w1_ref, b1_ref, w2_ref, b2_ref,
                  lnw_ref, lnb_ref,
                  out_ref, alpha_ref,
                  att_sc, res_sc, m_sc, l_sc):
    bf = jnp.bfloat16
    f32 = jnp.float32
    p = pl.program_id(0)          # phase
    i = pl.program_id(1)          # row tile
    tile_n = res_ref.shape[0]
    row0 = pl.multiple_of(i * tile_n, tile_n)

    # ------------------- phase 0: logits + global softmax stats -------------
    @pl.when(p == 0)
    def _phase0():
        @pl.when(i == 0)
        def _init():
            m_sc[...] = jnp.full(m_sc.shape, -jnp.inf, f32)
            l_sc[...] = jnp.zeros(l_sc.shape, f32)

        res = res_ref[...]                              # [T, D] f32
        res_sc[pl.ds(row0, tile_n), :] = res            # cache rows for phase 1

        # One wide bf16 matmul per projection (all heads at once), f32 acc.
        q = jnp.dot(res.astype(bf), wq_ref[...], preferred_element_type=f32)
        k = jnp.dot(inter_ref[...].astype(bf), wk_ref[...],
                    preferred_element_type=f32)         # [T, H*Dh]

        # Per-head lane segment-sum of q*k via a tiny 0/1 bf16 matmul
        # (keeps the reduction on the MXU; no reshapes / concatenates).
        att = jnp.dot((q * k).astype(bf), hsum_ref[...],
                      preferred_element_type=f32)       # [T, H]
        att_sc[pl.ds(row0, tile_n), :] = att            # VMEM only, never HBM

        # Online softmax statistics over all nodes (per head / column).
        m_tile = jnp.max(att, axis=0, keepdims=True)    # [1, H]
        m_new = jnp.maximum(m_sc[...], m_tile)
        l_sc[...] = (l_sc[...] * jnp.exp(m_sc[...] - m_new)
                     + jnp.sum(jnp.exp(att - m_new), axis=0, keepdims=True))
        m_sc[...] = m_new

    # ------------------- phase 1: normalize + block body --------------------
    @pl.when(p == 1)
    def _phase1():
        res = res_sc[pl.ds(row0, tile_n), :]            # [T, D] f32 (VMEM cache)
        att = att_sc[pl.ds(row0, tile_n), :]            # [T, H] f32 (VMEM cache)

        inv_l = pl.reciprocal(l_sc[...], approx=True)   # EUP slot
        alpha = jnp.exp(att - m_sc[...]) * inv_l        # [T, H]
        alpha_ref[...] = alpha

        # V for all heads (one wide bf16 matmul), scaled per head by alpha.
        v = jnp.dot(res.astype(bf), wv_ref[...], preferred_element_type=f32)
        alpha_wide = jnp.dot(alpha.astype(bf), hexp_ref[...],
                             preferred_element_type=f32)          # [T, H*Dh]
        weighted = (v * alpha_wide).astype(bf)

        # concat_trans: the [T, H*Dh] slab is already "concatenated" by layout.
        mo = jnp.dot(weighted, wc_ref[...], preferred_element_type=f32)

        lnw = lnw_ref[...]
        lnb = lnb_ref[...]
        mo = _layer_norm(mo + res, lnw, lnb)

        # Feed-forward (Linear -> ReLU -> Linear) + residual + LayerNorm.
        h1 = jnp.dot(mo.astype(bf), w1_ref[...],
                     preferred_element_type=f32) + b1_ref[...]
        h1 = jnp.maximum(h1, 0.0)
        ff = jnp.dot(h1.astype(bf), w2_ref[...],
                     preferred_element_type=f32) + b2_ref[...]
        out_ref[...] = _layer_norm(ff + mo, lnw, lnb)


def _pick_tile(n):
    # Large tiles amortize the ~0.35 us per-grid-step overhead and give the MXU
    # a bigger M dimension per weight load.  Anything here keeps the streamed,
    # double-buffered working set at a few MiB for small D.
    for t in (4096, 2048, 1024, 512, 256, 128):
        if n % t == 0:
            return t
    return n  # single full-array tile (block == full dims is always legal)


def _padded_bytes(shape, itemsize):
    r, c = shape
    return (-(-r // 8) * 8) * (-(-c // 128) * 128) * itemsize


def _vmem_budget(N, D, hd, head, tile_n):
    """Rough VMEM footprint (padded to (8,128) tiles) -> (limit, need)."""
    f32b, bf16b = 4, 2
    streamed = 2 * (_padded_bytes((tile_n, D), f32b) * 3        # residue/inter/out
                    + _padded_bytes((tile_n, head), f32b))      # alpha
    # Constant-index inputs still get two pipeline buffers each (review item 8;
    # negligible at D=32, accounted for here rather than pl.Buffered(1)).
    weights = 2 * (3 * _padded_bytes((D, hd), bf16b)            # wq, wk, wv
                   + _padded_bytes((hd, head), bf16b)           # head_sum
                   + _padded_bytes((head, hd), bf16b)           # head_expand
                   + _padded_bytes((hd, D), bf16b)              # wc
                   + _padded_bytes((D, 2 * D), bf16b)
                   + _padded_bytes((1, 2 * D), f32b)
                   + _padded_bytes((2 * D, D), bf16b)
                   + _padded_bytes((1, D), f32b) * 3)           # b2, ln_w, ln_b
    scratch = (_padded_bytes((N, head), f32b)                   # att cache
               + _padded_bytes((N, D), f32b)                    # residue cache
               + 2 * _padded_bytes((1, head), f32b))            # m, l
    need = streamed + weights + scratch
    # Generous margin, but stay clear of v7x's 64 MiB physical VMEM.
    limit = int(min(max(2 * need + (4 << 20), 32 << 20), 56 << 20))
    return limit, need


def transformer_block_forward(residue_h, inter_h, params, *, head, tile_n=None):
    N, D = residue_h.shape
    hd = params["wq"].shape[1]
    assert hd % head == 0
    Dh = hd // head
    assert params["wq"].shape == (D, hd)
    assert inter_h.shape == (N, D)

    if tile_n is None:
        tile_n = _pick_tile(N)
    assert N % tile_n == 0, "N must be a multiple of the row tile"
    n_tiles = N // tile_n

    bf = jnp.bfloat16
    f32 = jnp.float32

    # bf16 for MXU operands; biases / LN params stay f32.
    wq = params["wq"].astype(bf)
    wk = params["wk"].astype(bf)
    wv = params["wv"].astype(bf)
    wc = params["wc"].astype(bf)
    w1 = params["w1"].astype(bf)
    w2 = params["w2"].astype(bf)
    b1 = params["b1"].astype(f32)
    b2 = params["b2"].astype(f32)
    ln_w = params["ln_w"].astype(f32)
    ln_b = params["ln_b"].astype(f32)

    # head_expand[h, h*Dh:(h+1)*Dh] = 1 ; head_sum = head_expand.T
    # 0/1 matrices are exact in bf16 -> single-pass MXU matmuls.
    hexp = jnp.repeat(jnp.eye(head, dtype=bf), Dh, axis=1)   # [H, H*Dh]
    hsum = hexp.T                                            # [H*Dh, H]

    vmem_limit, vmem_need = _vmem_budget(N, D, hd, head, tile_n)
    assert vmem_need < (48 << 20), (
        "VMEM caches (att + residue rows) too large for the fused kernel; "
        "reduce N per call or switch back to a streamed two-pass variant")

    # Inputs stream fresh row tiles only in phase 0 (phase 1 reads the VMEM
    # caches); outputs advance their block only in phase 1 (no garbage flushes).
    row_in = lambda p, i: (i * (1 - p), 0)
    row_out = lambda p, i: (i * p, 0)
    const = lambda p, i: (0, 0)

    cost = pl.CostEstimate(
        flops=N * (6 * D * hd + 4 * hd * head + 2 * hd * D + 8 * D * D
                   + 30 * D + 10 * head),
        transcendentals=2 * N * head + 3 * N,
        bytes_accessed=(8 * N * D + 4 * N * (D + head)
                        + 2 * (4 * D * hd + 4 * D * D + 2 * hd * head)
                        + 4 * (5 * D + 2 * head)),
    )

    out, alpha_all = pl.pallas_call(
        _fused_kernel,
        grid=(2, n_tiles),
        in_specs=[pl.BlockSpec((tile_n, D), row_in),      # residue_h
                  pl.BlockSpec((tile_n, D), row_in),      # inter_h
                  pl.BlockSpec((D, hd), const),           # wq
                  pl.BlockSpec((D, hd), const),           # wk
                  pl.BlockSpec((hd, head), const),        # head_sum
                  pl.BlockSpec((D, hd), const),           # wv
                  pl.BlockSpec((head, hd), const),        # head_expand
                  pl.BlockSpec((hd, D), const),           # wc
                  pl.BlockSpec((D, 2 * D), const),        # w1
                  pl.BlockSpec((1, 2 * D), const),        # b1
                  pl.BlockSpec((2 * D, D), const),        # w2
                  pl.BlockSpec((1, D), const),            # b2
                  pl.BlockSpec((1, D), const),            # ln_w
                  pl.BlockSpec((1, D), const)],           # ln_b
        out_specs=(pl.BlockSpec((tile_n, D), row_out),
                   pl.BlockSpec((tile_n, head), row_out)),
        out_shape=(jax.ShapeDtypeStruct((N, D), f32),
                   jax.ShapeDtypeStruct((N, head), f32)),
        scratch_shapes=[pltpu.VMEM((N, head), f32),       # att cache
                        pltpu.VMEM((N, D), f32),          # residue-row cache
                        pltpu.VMEM((1, head), f32),       # running max
                        pltpu.VMEM((1, head), f32)],      # running sum-exp
        compiler_params=pltpu.CompilerParams(
            dimension_semantics=("arbitrary", "arbitrary"),
            vmem_limit_bytes=vmem_limit),
        cost_estimate=cost,
    )(residue_h, inter_h, wq, wk, hsum, wv, hexp, wc, w1, b1, w2, b2, ln_w, ln_b)

    # PyTorch module returns the last head's alpha, shape [N, 1].
    return out, alpha_all[:, head - 1:head]


# ---------------------------- pure JAX reference -----------------------------
def reference_forward(residue_h, inter_h, params, *, head):
    hd = params["wq"].shape[1]
    Dh = hd // head
    bf = jnp.bfloat16
    f32 = jnp.float32
    rb = residue_h.astype(bf)
    ib = inter_h.astype(bf)
    q = jnp.dot(rb, params["wq"].astype(bf), preferred_element_type=f32)
    k = jnp.dot(ib, params["wk"].astype(bf), preferred_element_type=f32)
    v = jnp.dot(rb, params["wv"].astype(bf), preferred_element_type=f32)
    att = (q * k).reshape(-1, head, Dh).sum(axis=-1)        # [N, H]
    alpha = jax.nn.softmax(att, axis=0)                     # softmax over nodes
    weighted = v * jnp.repeat(alpha, Dh, axis=1)
    mo = jnp.dot(weighted.astype(bf), params["wc"].astype(bf),
                 preferred_element_type=f32)
    mo = _layer_norm(mo + residue_h, params["ln_w"], params["ln_b"])
    h1 = jnp.maximum(
        jnp.dot(mo.astype(bf), params["w1"].astype(bf),
                preferred_element_type=f32) + params["b1"], 0.0)
    ff = jnp.dot(h1.astype(bf), params["w2"].astype(bf),
                 preferred_element_type=f32) + params["b2"]
    out = _layer_norm(ff + mo, params["ln_w"], params["ln_b"])
    return out, alpha[:, head - 1:head]


def init_params(key, in_dim, hidden_dim, head):
    assert in_dim == hidden_dim, "forward requires in_dim == hidden_dim"
    D = hidden_dim
    ks = jax.random.split(key, 8)
    s = 0.1
    # Weights stored transposed ([in, out]) and head-stacked along the out axis.
    return {
        "wq": s * jax.random.normal(ks[0], (in_dim, head * D), jnp.float32),
        "wk": s * jax.random.normal(ks[1], (in_dim, head * D), jnp.float32),
        "wv": s * jax.random.normal(ks[2], (in_dim, head * D), jnp.float32),
        "wc": s * jax.random.normal(ks[3], (head * D, D), jnp.float32),
        "w1": s * jax.random.normal(ks[4], (D, 2 * D), jnp.float32),
        "b1": s * jax.random.normal(ks[5], (1, 2 * D), jnp.float32),
        "w2": s * jax.random.normal(ks[6], (2 * D, D), jnp.float32),
        "b2": s * jax.random.normal(ks[7], (1, D), jnp.float32),
        "ln_w": jnp.ones((1, D), jnp.float32),
        "ln_b": jnp.zeros((1, D), jnp.float32),
    }


if __name__ == "__main__":
    N, D, HEAD = 256, 32, 2     # 256 graph nodes, in_dim = hidden_dim = 32, 2 heads
    key = jax.random.PRNGKey(0)
    k_res, k_int, k_par = jax.random.split(key, 3)

    residue_h = jax.random.normal(k_res, (N, D), jnp.float32)
    inter_h = jax.random.normal(k_int, (N, D), jnp.float32)
    params = init_params(k_par, D, D, HEAD)

    ref_out, ref_alpha = reference_forward(residue_h, inter_h, params, head=HEAD)

    # Multi-tile grid: exercises the cross-tile (fused two-phase) node-softmax.
    out, alpha = transformer_block_forward(residue_h, inter_h, params,
                                           head=HEAD, tile_n=128)
    out, alpha = jax.block_until_ready((out, alpha))
    assert out.shape == (N, D) and alpha.shape == (N, 1)
    assert jnp.allclose(out, ref_out, atol=2e-2, rtol=2e-2), \
        float(jnp.max(jnp.abs(out - ref_out)))
    assert jnp.allclose(alpha, ref_alpha, atol=5e-3, rtol=2e-2), \
        float(jnp.max(jnp.abs(alpha - ref_alpha)))

    # Auto tile selection (single tile at this N) must give the same result.
    out1, alpha1 = transformer_block_forward(residue_h, inter_h, params, head=HEAD)
    out1, alpha1 = jax.block_until_ready((out1, alpha1))
    assert jnp.allclose(out1, ref_out, atol=2e-2, rtol=2e-2)
    assert jnp.allclose(alpha1, ref_alpha, atol=5e-3, rtol=2e-2)

    # TODO(synk): DGL per-graph softmax for batched graphs (segment softmax over
    # node segments) is modeled as a single-graph softmax over all N nodes here.
    print("KERNEL_OK")
</pallas_src>

<mosaic_0001>
module attributes {stable_mosaic.version = 11 : i64} {
  func.func @_fused_kernel(%arg0: i32, %arg1: i32, %arg2: memref<128x32xf32, #tpu.memory_space<vmem>>, %arg3: memref<128x32xf32, #tpu.memory_space<vmem>>, %arg4: memref<32x64xbf16, #tpu.memory_space<vmem>>, %arg5: memref<32x64xbf16, #tpu.memory_space<vmem>>, %arg6: memref<64x2xbf16, #tpu.memory_space<vmem>>, %arg7: memref<32x64xbf16, #tpu.memory_space<vmem>>, %arg8: memref<2x64xbf16, #tpu.memory_space<vmem>>, %arg9: memref<64x32xbf16, #tpu.memory_space<vmem>>, %arg10: memref<32x64xbf16, #tpu.memory_space<vmem>>, %arg11: memref<1x64xf32, #tpu.memory_space<vmem>>, %arg12: memref<64x32xbf16, #tpu.memory_space<vmem>>, %arg13: memref<1x32xf32, #tpu.memory_space<vmem>>, %arg14: memref<1x32xf32, #tpu.memory_space<vmem>>, %arg15: memref<1x32xf32, #tpu.memory_space<vmem>>, %arg16: memref<128x32xf32, #tpu.memory_space<vmem>>, %arg17: memref<128x2xf32, #tpu.memory_space<vmem>>, %arg18: memref<256x2xf32, #tpu.memory_space<vmem>>, %arg19: memref<256x32xf32, #tpu.memory_space<vmem>>, %arg20: memref<1x2xf32, #tpu.memory_space<vmem>>, %arg21: memref<1x2xf32, #tpu.memory_space<vmem>>) attributes {dimension_semantics = [#tpu.dimension_semantics<arbitrary>, #tpu.dimension_semantics<arbitrary>], iteration_bounds = array<i64: 2, 2>, scalar_prefetch = 0 : i64, scratch_operands = 4 : i64, tpu.core_type = #tpu.core_type<tc>, window_params = [{transform_indices = @transform_0, window_bounds = array<i64: 128, 32>}, {transform_indices = @transform_1, window_bounds = array<i64: 128, 32>}, {pipeline_mode = #tpu.pipeline_mode<synchronous>, transform_indices = @transform_2, window_bounds = array<i64: 32, 64>}, {pipeline_mode = #tpu.pipeline_mode<synchronous>, transform_indices = @transform_3, window_bounds = array<i64: 32, 64>}, {pipeline_mode = #tpu.pipeline_mode<synchronous>, transform_indices = @transform_4, window_bounds = array<i64: 64, 2>}, {pipeline_mode = #tpu.pipeline_mode<synchronous>, transform_indices = @transform_5, window_bounds = array<i64: 32, 64>}, {pipeline_mode = #tpu.pipeline_mode<synchronous>, transform_indices = @transform_6, window_bounds = array<i64: 2, 64>}, {pipeline_mode = #tpu.pipeline_mode<synchronous>, transform_indices = @transform_7, window_bounds = array<i64: 64, 32>}, {pipeline_mode = #tpu.pipeline_mode<synchronous>, transform_indices = @transform_8, window_bounds = array<i64: 32, 64>}, {pipeline_mode = #tpu.pipeline_mode<synchronous>, transform_indices = @transform_9, window_bounds = array<i64: 1, 64>}, {pipeline_mode = #tpu.pipeline_mode<synchronous>, transform_indices = @transform_10, window_bounds = array<i64: 64, 32>}, {pipeline_mode = #tpu.pipeline_mode<synchronous>, transform_indices = @transform_11, window_bounds = array<i64: 1, 32>}, {pipeline_mode = #tpu.pipeline_mode<synchronous>, transform_indices = @transform_12, window_bounds = array<i64: 1, 32>}, {pipeline_mode = #tpu.pipeline_mode<synchronous>, transform_indices = @transform_13, window_bounds = array<i64: 1, 32>}, {transform_indices = @transform_14, window_bounds = array<i64: 128, 32>}, {transform_indices = @transform_15, window_bounds = array<i64: 128, 2>}]} {
    %c128_i32 = arith.constant 128 : i32
    %0 = arith.muli %arg1, %c128_i32 : i32
    %1 = tpu.assume_multiple %0, 128 : i32
    %c0_i32 = arith.constant 0 : i32
    %2 = arith.cmpi eq, %arg0, %c0_i32 : i32
    %3 = arith.extui %2 : i1 to i32
    %c0_i32_0 = arith.constant 0 : i32
    %4 = arith.cmpi ne, %3, %c0_i32_0 : i32
    scf.if %4 {
      %c0_i32_2 = arith.constant 0 : i32
      %8 = arith.cmpi eq, %arg1, %c0_i32_2 : i32
      %9 = arith.extui %8 : i1 to i32
      %c0_i32_3 = arith.constant 0 : i32
      %10 = arith.cmpi ne, %9, %c0_i32_3 : i32
      scf.if %10 {
        %cst_29 = arith.constant 0xFF800000 : f32
        %44 = vector.broadcast %cst_29 : f32 to vector<1x2xf32>
        %c0_30 = arith.constant 0 : index
        %c0_31 = arith.constant 0 : index
        %45 = vector.load %arg20[%c0_30, %c0_31] : memref<1x2xf32, #tpu.memory_space<vmem>>, vector<1x2xf32>
        tpu.vector_store %arg20[%c0_30, %c0_31], %44 {strides = array<i32>} : memref<1x2xf32, #tpu.memory_space<vmem>>, vector<1x2xf32>,
        %cst_32 = arith.constant 0.000000e+00 : f32
        %46 = vector.broadcast %cst_32 : f32 to vector<1x2xf32>
        %c0_33 = arith.constant 0 : index
        %c0_34 = arith.constant 0 : index
        %47 = vector.load %arg21[%c0_33, %c0_34] : memref<1x2xf32, #tpu.memory_space<vmem>>, vector<1x2xf32>
        tpu.vector_store %arg21[%c0_33, %c0_34], %46 {strides = array<i32>} : memref<1x2xf32, #tpu.memory_space<vmem>>, vector<1x2xf32>,
      } else {
      }
      %c0 = arith.constant 0 : index
      %c0_4 = arith.constant 0 : index
      %11 = vector.load %arg2[%c0, %c0_4] : memref<128x32xf32, #tpu.memory_space<vmem>>, vector<128x32xf32>
      %12 = arith.index_cast %1 : i32 to index
      %c0_5 = arith.constant 0 : index
      %13 = vector.load %arg19[%12, %c0_5] : memref<256x32xf32, #tpu.memory_space<vmem>>, vector<128x32xf32>
      tpu.vector_store %arg19[%12, %c0_5], %11 {strides = array<i32>} : memref<256x32xf32, #tpu.memory_space<vmem>>, vector<128x32xf32>,
      %14 = arith.truncf %11 : vector<128x32xf32> to vector<128x32xbf16>
      %c0_6 = arith.constant 0 : index
      %c0_7 = arith.constant 0 : index
      %15 = vector.load %arg4[%c0_6, %c0_7] : memref<32x64xbf16, #tpu.memory_space<vmem>>, vector<32x64xbf16>
      %cst = arith.constant dense<0.000000e+00> : vector<128x64xf32>
      %16 = tpu.matmul %14, %15, %cst {dimension_numbers = #tpu.dot_dimension_numbers<[1], [0], [0], [1], [0, 0, 1, 1], [], []>} : vector<128x32xbf16>, vector<32x64xbf16>, vector<128x64xf32> -> vector<128x64xf32>
      %c0_8 = arith.constant 0 : index
      %c0_9 = arith.constant 0 : index
      %17 = vector.load %arg3[%c0_8, %c0_9] : memref<128x32xf32, #tpu.memory_space<vmem>>, vector<128x32xf32>
      %18 = arith.truncf %17 : vector<128x32xf32> to vector<128x32xbf16>
      %c0_10 = arith.constant 0 : index
      %c0_11 = arith.constant 0 : index
      %19 = vector.load %arg5[%c0_10, %c0_11] : memref<32x64xbf16, #tpu.memory_space<vmem>>, vector<32x64xbf16>
      %cst_12 = arith.constant dense<0.000000e+00> : vector<128x64xf32>
      %20 = tpu.matmul %18, %19, %cst_12 {dimension_numbers = #tpu.dot_dimension_numbers<[1], [0], [0], [1], [0, 0, 1, 1], [], []>} : vector<128x32xbf16>, vector<32x64xbf16>, vector<128x64xf32> -> vector<128x64xf32>
      %21 = arith.mulf %16, %20 : vector<128x64xf32>
      %22 = arith.truncf %21 : vector<128x64xf32> to vector<128x64xbf16>
      %c0_13 = arith.constant 0 : index
      %c0_14 = arith.constant 0 : index
      %23 = vector.load %arg6[%c0_13, %c0_14] : memref<64x2xbf16, #tpu.memory_space<vmem>>, vector<64x2xbf16>
      %cst_15 = arith.constant dense<0.000000e+00> : vector<128x2xf32>
      %24 = tpu.matmul %22, %23, %cst_15 {dimension_numbers = #tpu.dot_dimension_numbers<[1], [0], [0], [1], [0, 0, 1, 1], [], []>} : vector<128x64xbf16>, vector<64x2xbf16>, vector<128x2xf32> -> vector<128x2xf32>
      %25 = arith.index_cast %1 : i32 to index
      %c0_16 = arith.constant 0 : index
      %26 = vector.load %arg18[%25, %c0_16] : memref<256x2xf32, #tpu.memory_space<vmem>>, vector<128x2xf32>
      tpu.vector_store %arg18[%25, %c0_16], %24 {strides = array<i32>} : memref<256x2xf32, #tpu.memory_space<vmem>>, vector<128x2xf32>,
      %cst_17 = arith.constant dense<0xFF800000> : vector<2xf32>
      %27 = vector.multi_reduction <maximumf>, %24, %cst_17 [0] : vector<128x2xf32> to vector<2xf32>
      %28 = vector.shape_cast %27 : vector<2xf32> to vector<1x2xf32>
      %c0_18 = arith.constant 0 : index
      %c0_19 = arith.constant 0 : index
      %29 = vector.load %arg20[%c0_18, %c0_19] : memref<1x2xf32, #tpu.memory_space<vmem>>, vector<1x2xf32>
      %30 = arith.maximumf %29, %28 : vector<1x2xf32>
      %c0_20 = arith.constant 0 : index
      %c0_21 = arith.constant 0 : index
      %31 = vector.load %arg21[%c0_20, %c0_21] : memref<1x2xf32, #tpu.memory_space<vmem>>, vector<1x2xf32>
      %c0_22 = arith.constant 0 : index
      %c0_23 = arith.constant 0 : index
      %32 = vector.load %arg20[%c0_22, %c0_23] : memref<1x2xf32, #tpu.memory_space<vmem>>, vector<1x2xf32>
      %33 = arith.subf %32, %30 : vector<1x2xf32>
      %34 = math.exp %33 : vector<1x2xf32>
      %35 = arith.mulf %31, %34 : vector<1x2xf32>
      %36 = vector.broadcast %30 : vector<1x2xf32> to vector<128x2xf32>
      %37 = arith.subf %24, %36 : vector<128x2xf32>
      %38 = math.exp %37 : vector<128x2xf32>
      %cst_24 = arith.constant dense<0.000000e+00> : vector<2xf32>
      %39 = vector.multi_reduction <add>, %38, %cst_24 [0] : vector<128x2xf32> to vector<2xf32>
      %40 = vector.shape_cast %39 : vector<2xf32> to vector<1x2xf32>
      %41 = arith.addf %35, %40 : vector<1x2xf32>
      %c0_25 = arith.constant 0 : index
      %c0_26 = arith.constant 0 : index
      %42 = vector.load %arg21[%c0_25, %c0_26] : memref<1x2xf32, #tpu.memory_space<vmem>>, vector<1x2xf32>
      tpu.vector_store %arg21[%c0_25, %c0_26], %41 {strides = array<i32>} : memref<1x2xf32, #tpu.memory_space<vmem>>, vector<1x2xf32>,
      %c0_27 = arith.constant 0 : index
      %c0_28 = arith.constant 0 : index
      %43 = vector.load %arg20[%c0_27, %c0_28] : memref<1x2xf32, #tpu.memory_space<vmem>>, vector<1x2xf32>
      tpu.vector_store %arg20[%c0_27, %c0_28], %30 {strides = array<i32>} : memref<1x2xf32, #tpu.memory_space<vmem>>, vector<1x2xf32>,
    } else {
    }
    %c1_i32 = arith.constant 1 : i32
    %5 = arith.cmpi eq, %arg0, %c1_i32 : i32
    %6 = arith.extui %5 : i1 to i32
    %c0_i32_1 = arith.constant 0 : i32
    %7 = arith.cmpi ne, %6, %c0_i32_1 : i32
    scf.if %7 {
      %8 = arith.index_cast %1 : i32 to index
      %c0 = arith.constant 0 : index
      %9 = vector.load %arg19[%8, %c0] : memref<256x32xf32, #tpu.memory_space<vmem>>, vector<128x32xf32>
      %10 = arith.index_cast %1 : i32 to index
      %c0_2 = arith.constant 0 : index
      %11 = vector.load %arg18[%10, %c0_2] : memref<256x2xf32, #tpu.memory_space<vmem>>, vector<128x2xf32>
      %c0_3 = arith.constant 0 : index
      %c0_4 = arith.constant 0 : index
      %12 = vector.load %arg21[%c0_3, %c0_4] : memref<1x2xf32, #tpu.memory_space<vmem>>, vector<1x2xf32>
      %13 = tpu.reciprocal %12 {approx = true} : vector<1x2xf32> -> vector<1x2xf32>
      %c0_5 = arith.constant 0 : index
      %c0_6 = arith.constant 0 : index
      %14 = vector.load %arg20[%c0_5, %c0_6] : memref<1x2xf32, #tpu.memory_space<vmem>>, vector<1x2xf32>
      %15 = vector.broadcast %14 : vector<1x2xf32> to vector<128x2xf32>
      %16 = arith.subf %11, %15 : vector<128x2xf32>
      %17 = math.exp %16 : vector<128x2xf32>
      %18 = vector.broadcast %13 : vector<1x2xf32> to vector<128x2xf32>
      %19 = arith.mulf %17, %18 : vector<128x2xf32>
      %c0_7 = arith.constant 0 : index
      %c0_8 = arith.constant 0 : index
      %20 = vector.load %arg17[%c0_7, %c0_8] : memref<128x2xf32, #tpu.memory_space<vmem>>, vector<128x2xf32>
      tpu.vector_store %arg17[%c0_7, %c0_8], %19 {strides = array<i32>} : memref<128x2xf32, #tpu.memory_space<vmem>>, vector<128x2xf32>,
      %21 = arith.truncf %9 : vector<128x32xf32> to vector<128x32xbf16>
      %c0_9 = arith.constant 0 : index
      %c0_10 = arith.constant 0 : index
      %22 = vector.load %arg7[%c0_9, %c0_10] : memref<32x64xbf16, #tpu.memory_space<vmem>>, vector<32x64xbf16>
      %cst = arith.constant dense<0.000000e+00> : vector<128x64xf32>
      %23 = tpu.matmul %21, %22, %cst {dimension_numbers = #tpu.dot_dimension_numbers<[1], [0], [0], [1], [0, 0, 1, 1], [], []>} : vector<128x32xbf16>, vector<32x64xbf16>, vector<128x64xf32> -> vector<128x64xf32>
      %24 = arith.truncf %19 : vector<128x2xf32> to vector<128x2xbf16>
      %c0_11 = arith.constant 0 : index
      %c0_12 = arith.constant 0 : index
      %25 = vector.load %arg8[%c0_11, %c0_12] : memref<2x64xbf16, #tpu.memory_space<vmem>>, vector<2x64xbf16>
      %cst_13 = arith.constant dense<0.000000e+00> : vector<128x64xf32>
      %26 = tpu.matmul %24, %25, %cst_13 {dimension_numbers = #tpu.dot_dimension_numbers<[1], [0], [0], [1], [0, 0, 1, 1], [], []>} : vector<128x2xbf16>, vector<2x64xbf16>, vector<128x64xf32> -> vector<128x64xf32>
      %27 = arith.mulf %23, %26 : vector<128x64xf32>
      %28 = arith.truncf %27 : vector<128x64xf32> to vector<128x64xbf16>
      %c0_14 = arith.constant 0 : index
      %c0_15 = arith.constant 0 : index
      %29 = vector.load %arg9[%c0_14, %c0_15] : memref<64x32xbf16, #tpu.memory_space<vmem>>, vector<64x32xbf16>
      %cst_16 = arith.constant dense<0.000000e+00> : vector<128x32xf32>
      %30 = tpu.matmul %28, %29, %cst_16 {dimension_numbers = #tpu.dot_dimension_numbers<[1], [0], [0], [1], [0, 0, 1, 1], [], []>} : vector<128x64xbf16>, vector<64x32xbf16>, vector<128x32xf32> -> vector<128x32xf32>
      %c0_17 = arith.constant 0 : index
      %c0_18 = arith.constant 0 : index
      %31 = vector.load %arg14[%c0_17, %c0_18] : memref<1x32xf32, #tpu.memory_space<vmem>>, vector<1x32xf32>
      %c0_19 = arith.constant 0 : index
      %c0_20 = arith.constant 0 : index
      %32 = vector.load %arg15[%c0_19, %c0_20] : memref<1x32xf32, #tpu.memory_space<vmem>>, vector<1x32xf32>
      %33 = arith.addf %30, %9 : vector<128x32xf32>
      %cst_21 = arith.constant dense<0.000000e+00> : vector<128xf32>
      %34 = vector.multi_reduction <add>, %33, %cst_21 [1] : vector<128x32xf32> to vector<128xf32>
      %35 = vector.shape_cast %34 : vector<128xf32> to vector<128x1xf32>
      %cst_22 = arith.constant 3.200000e+01 : f32
      %36 = vector.broadcast %cst_22 : f32 to vector<128x1xf32>
      %37 = arith.divf %35, %36 : vector<128x1xf32>
      %38 = vector.broadcast %37 : vector<128x1xf32> to vector<128x32xf32>
      %39 = arith.subf %33, %38 : vector<128x32xf32>
      %40 = vector.broadcast %37 : vector<128x1xf32> to vector<128x32xf32>
      %41 = arith.subf %33, %40 : vector<128x32xf32>
      %42 = arith.mulf %39, %41 : vector<128x32xf32>
      %cst_23 = arith.constant dense<0.000000e+00> : vector<128xf32>
      %43 = vector.multi_reduction <add>, %42, %cst_23 [1] : vector<128x32xf32> to vector<128xf32>
      %44 = vector.shape_cast %43 : vector<128xf32> to vector<128x1xf32>
      %cst_24 = arith.constant 3.200000e+01 : f32
      %45 = vector.broadcast %cst_24 : f32 to vector<128x1xf32>
      %46 = arith.divf %44, %45 : vector<128x1xf32>
      %47 = vector.broadcast %37 : vector<128x1xf32> to vector<128x32xf32>
      %48 = arith.subf %33, %47 : vector<128x32xf32>
      %cst_25 = arith.constant 9.99999974E-6 : f32
      %49 = vector.broadcast %cst_25 : f32 to vector<128x1xf32>
      %50 = arith.addf %46, %49 : vector<128x1xf32>
      %51 = math.rsqrt %50 : vector<128x1xf32>
      %52 = vector.broadcast %51 : vector<128x1xf32> to vector<128x32xf32>
      %53 = arith.mulf %48, %52 : vector<128x32xf32>
      %54 = vector.broadcast %31 : vector<1x32xf32> to vector<128x32xf32>
      %55 = arith.mulf %53, %54 : vector<128x32xf32>
      %56 = vector.broadcast %32 : vector<1x32xf32> to vector<128x32xf32>
      %57 = arith.addf %55, %56 : vector<128x32xf32>
      %58 = arith.truncf %57 : vector<128x32xf32> to vector<128x32xbf16>
      %c0_26 = arith.constant 0 : index
      %c0_27 = arith.constant 0 : index
      %59 = vector.load %arg10[%c0_26, %c0_27] : memref<32x64xbf16, #tpu.memory_space<vmem>>, vector<32x64xbf16>
      %cst_28 = arith.constant dense<0.000000e+00> : vector<128x64xf32>
      %60 = tpu.matmul %58, %59, %cst_28 {dimension_numbers = #tpu.dot_dimension_numbers<[1], [0], [0], [1], [0, 0, 1, 1], [], []>} : vector<128x32xbf16>, vector<32x64xbf16>, vector<128x64xf32> -> vector<128x64xf32>
      %c0_29 = arith.constant 0 : index
      %c0_30 = arith.constant 0 : index
      %61 = vector.load %arg11[%c0_29, %c0_30] : memref<1x64xf32, #tpu.memory_space<vmem>>, vector<1x64xf32>
      %62 = vector.broadcast %61 : vector<1x64xf32> to vector<128x64xf32>
      %63 = arith.addf %60, %62 : vector<128x64xf32>
      %cst_31 = arith.constant 0.000000e+00 : f32
      %64 = vector.broadcast %cst_31 : f32 to vector<128x64xf32>
      %65 = arith.maximumf %63, %64 : vector<128x64xf32>
      %66 = arith.truncf %65 : vector<128x64xf32> to vector<128x64xbf16>
      %c0_32 = arith.constant 0 : index
      %c0_33 = arith.constant 0 : index
      %67 = vector.load %arg12[%c0_32, %c0_33] : memref<64x32xbf16, #tpu.memory_space<vmem>>, vector<64x32xbf16>
      %cst_34 = arith.constant dense<0.000000e+00> : vector<128x32xf32>
      %68 = tpu.matmul %66, %67, %cst_34 {dimension_numbers = #tpu.dot_dimension_numbers<[1], [0], [0], [1], [0, 0, 1, 1], [], []>} : vector<128x64xbf16>, vector<64x32xbf16>, vector<128x32xf32> -> vector<128x32xf32>
      %c0_35 = arith.constant 0 : index
      %c0_36 = arith.constant 0 : index
      %69 = vector.load %arg13[%c0_35, %c0_36] : memref<1x32xf32, #tpu.memory_space<vmem>>, vector<1x32xf32>
      %70 = vector.broadcast %69 : vector<1x32xf32> to vector<128x32xf32>
      %71 = arith.addf %68, %70 : vector<128x32xf32>
      %72 = arith.addf %71, %57 : vector<128x32xf32>
      %cst_37 = arith.constant dense<0.000000e+00> : vector<128xf32>
      %73 = vector.multi_reduction <add>, %72, %cst_37 [1] : vector<128x32xf32> to vector<128xf32>
      %74 = vector.shape_cast %73 : vector<128xf32> to vector<128x1xf32>
      %cst_38 = arith.constant 3.200000e+01 : f32
      %75 = vector.broadcast %cst_38 : f32 to vector<128x1xf32>
      %76 = arith.divf %74, %75 : vector<128x1xf32>
      %77 = vector.broadcast %76 : vector<128x1xf32> to vector<128x32xf32>
      %78 = arith.subf %72, %77 : vector<128x32xf32>
      %79 = vector.broadcast %76 : vector<128x1xf32> to vector<128x32xf32>
      %80 = arith.subf %72, %79 : vector<128x32xf32>
      %81 = arith.mulf %78, %80 : vector<128x32xf32>
      %cst_39 = arith.constant dense<0.000000e+00> : vector<128xf32>
      %82 = vector.multi_reduction <add>, %81, %cst_39 [1] : vector<128x32xf32> to vector<128xf32>
      %83 = vector.shape_cast %82 : vector<128xf32> to vector<128x1xf32>
      %cst_40 = arith.constant 3.200000e+01 : f32
      %84 = vector.broadcast %cst_40 : f32 to vector<128x1xf32>
      %85 = arith.divf %83, %84 : vector<128x1xf32>
      %86 = vector.broadcast %76 : vector<128x1xf32> to vector<128x32xf32>
      %87 = arith.subf %72, %86 : vector<128x32xf32>
      %cst_41 = arith.constant 9.99999974E-6 : f32
      %88 = vector.broadcast %cst_41 : f32 to vector<128x1xf32>
      %89 = arith.addf %85, %88 : vector<128x1xf32>
      %90 = math.rsqrt %89 : vector<128x1xf32>
      %91 = vector.broadcast %90 : vector<128x1xf32> to vector<128x32xf32>
      %92 = arith.mulf %87, %91 : vector<128x32xf32>
      %93 = vector.broadcast %31 : vector<1x32xf32> to vector<128x32xf32>
      %94 = arith.mulf %92, %93 : vector<128x32xf32>
      %95 = vector.broadcast %32 : vector<1x32xf32> to vector<128x32xf32>
      %96 = arith.addf %94, %95 : vector<128x32xf32>
      %c0_42 = arith.constant 0 : index
      %c0_43 = arith.constant 0 : index
      %97 = vector.load %arg16[%c0_42, %c0_43] : memref<128x32xf32, #tpu.memory_space<vmem>>, vector<128x32xf32>
      tpu.vector_store %arg16[%c0_42, %c0_43], %96 {strides = array<i32>} : memref<128x32xf32, #tpu.memory_space<vmem>>, vector<128x32xf32>,
    } else {
    }
    return
  }
  func.func @transform_0(%arg0: i32, %arg1: i32) -> (i32, i32) {
    %c1_i32 = arith.constant 1 : i32
    %0 = arith.subi %c1_i32, %arg0 : i32
    %1 = arith.muli %arg1, %0 : i32
    %c0_i32 = arith.constant 0 : i32
    %c0_i32_0 = arith.constant 0 : i32
    return %1, %c0_i32 : i32, i32
  }
  func.func @transform_1(%arg0: i32, %arg1: i32) -> (i32, i32) {
    %c1_i32 = arith.constant 1 : i32
    %0 = arith.subi %c1_i32, %arg0 : i32
    %1 = arith.muli %arg1, %0 : i32
    %c0_i32 = arith.constant 0 : i32
    %c0_i32_0 = arith.constant 0 : i32
    return %1, %c0_i32 : i32, i32
  }
  func.func @transform_2(%arg0: i32, %arg1: i32) -> (i32, i32) {
    %c0_i32 = arith.constant 0 : i32
    %c0_i32_0 = arith.constant 0 : i32
    %c0_i32_1 = arith.constant 0 : i32
    return %c0_i32, %c0_i32_0 : i32, i32
  }
  func.func @transform_3(%arg0: i32, %arg1: i32) -> (i32, i32) {
    %c0_i32 = arith.constant 0 : i32
    %c0_i32_0 = arith.constant 0 : i32
    %c0_i32_1 = arith.constant 0 : i32
    return %c0_i32, %c0_i32_0 : i32, i32
  }
  func.func @transform_4(%arg0: i32, %arg1: i32) -> (i32, i32) {
    %c0_i32 = arith.constant 0 : i32
    %c0_i32_0 = arith.constant 0 : i32
    %c0_i32_1 = arith.constant 0 : i32
    return %c0_i32, %c0_i32_0 : i32, i32
  }
  func.func @transform_5(%arg0: i32, %arg1: i32) -> (i32, i32) {
    %c0_i32 = arith.constant 0 : i32
    %c0_i32_0 = arith.constant 0 : i32
    %c0_i32_1 = arith.constant 0 : i32
    return %c0_i32, %c0_i32_0 : i32, i32
  }
  func.func @transform_6(%arg0: i32, %arg1: i32) -> (i32, i32) {
    %c0_i32 = arith.constant 0 : i32
    %c0_i32_0 = arith.constant 0 : i32
    %c0_i32_1 = arith.constant 0 : i32
    return %c0_i32, %c0_i32_0 : i32, i32
  }
  func.func @transform_7(%arg0: i32, %arg1: i32) -> (i32, i32) {
    %c0_i32 = arith.constant 0 : i32
    %c0_i32_0 = arith.constant 0 : i32
    %c0_i32_1 = arith.constant 0 : i32
    return %c0_i32, %c0_i32_0 : i32, i32
  }
  func.func @transform_8(%arg0: i32, %arg1: i32) -> (i32, i32) {
    %c0_i32 = arith.constant 0 : i32
    %c0_i32_0 = arith.constant 0 : i32
    %c0_i32_1 = arith.constant 0 : i32
    return %c0_i32, %c0_i32_0 : i32, i32
  }
  func.func @transform_9(%arg0: i32, %arg1: i32) -> (i32, i32) {
    %c0_i32 = arith.constant 0 : i32
    %c0_i32_0 = arith.constant 0 : i32
    %c0_i32_1 = arith.constant 0 : i32
    return %c0_i32, %c0_i32_0 : i32, i32
  }
  func.func @transform_10(%arg0: i32, %arg1: i32) -> (i32, i32) {
    %c0_i32 = arith.constant 0 : i32
    %c0_i32_0 = arith.constant 0 : i32
    %c0_i32_1 = arith.constant 0 : i32
    return %c0_i32, %c0_i32_0 : i32, i32
  }
  func.func @transform_11(%arg0: i32, %arg1: i32) -> (i32, i32) {
    %c0_i32 = arith.constant 0 : i32
    %c0_i32_0 = arith.constant 0 : i32
    %c0_i32_1 = arith.constant 0 : i32
    return %c0_i32, %c0_i32_0 : i32, i32
  }
  func.func @transform_12(%arg0: i32, %arg1: i32) -> (i32, i32) {
    %c0_i32 = arith.constant 0 : i32
    %c0_i32_0 = arith.constant 0 : i32
    %c0_i32_1 = arith.constant 0 : i32
    return %c0_i32, %c0_i32_0 : i32, i32
  }
  func.func @transform_13(%arg0: i32, %arg1: i32) -> (i32, i32) {
    %c0_i32 = arith.constant 0 : i32
    %c0_i32_0 = arith.constant 0 : i32
    %c0_i32_1 = arith.constant 0 : i32
    return %c0_i32, %c0_i32_0 : i32, i32
  }
  func.func @transform_14(%arg0: i32, %arg1: i32) -> (i32, i32) {
    %0 = arith.muli %arg1, %arg0 : i32
    %c0_i32 = arith.constant 0 : i32
    %c0_i32_0 = arith.constant 0 : i32
    return %0, %c0_i32 : i32, i32
  }
  func.func @transform_15(%arg0: i32, %arg1: i32) -> (i32, i32) {
    %0 = arith.muli %arg1, %arg0 : i32
    %c0_i32 = arith.constant 0 : i32
    %c0_i32_0 = arith.constant 0 : i32
    return %0, %c0_i32 : i32, i32
  }
}

</mosaic_0001>

<bundles_post_ra>
// kernel: tpu_custom_call.1
= control target key start
LH: loop header
LB: loop body
LE: loop exit
PB: predicated region body
PF: predicated region fallthrough
CT: control target
= control target key end

     0   :  { %s3245_s18 = smov 0   ;;  %s3247_s19 = smov 0   ;;  %s4526_s0 = inlined_call_operand.vmem [shape: f32[256,32], index: 0, kind: input, shape index: {}]   ;;  %s4527_s1 = inlined_call_operand.vmem [shape: f32[256,32], index: 1, kind: input, shape index: {}]   ;;  %s4528_s2 = inlined_call_operand.vmem [shape: bf16[32,64], index: 2, kind: input, shape index: {}]   ;;  %s4529_s3 = inlined_call_operand.vmem [shape: bf16[32,64], index: 3, kind: input, shape index: {}]   ;;  %s4530_s4 = inlined_call_operand.vmem [shape: bf16[64,2], index: 4, kind: input, shape index: {}]   ;;  %s4531_s5 = inlined_call_operand.vmem [shape: bf16[32,64], index: 5, kind: input, shape index: {}]   ;;  %s4532_s6 = inlined_call_operand.vmem [shape: bf16[2,64], index: 6, kind: input, shape index: {}]   ;;  %s4533_s7 = inlined_call_operand.vmem [shape: bf16[64,32], index: 7, kind: input, shape index: {}]   ;;  %s4534_s8 = inlined_call_operand.vmem [shape: bf16[32,64], index: 8, kind: input, shape index: {}]   ;;  %s4535_s9 = inlined_call_operand.vmem [shape: f32[1,64], index: 9, kind: input, shape index: {}]   ;;  %s4536_s10 = inlined_call_operand.vmem [shape: bf16[64,32], index: 10, kind: input, shape index: {}]   ;;  %s4537_s11 = inlined_call_operand.vmem [shape: f32[1,32], index: 11, kind: input, shape index: {}]   ;;  %s4538_s12 = inlined_call_operand.vmem [shape: f32[1,32], index: 12, kind: input, shape index: {}]   ;;  %s4539_s13 = inlined_call_operand.vmem [shape: f32[1,32], index: 13, kind: input, shape index: {}]   ;;  %s4540_s14 = inlined_call_operand.vmem [shape: f32[256,32], index: 14, kind: output, shape index: {0}]   ;;  %s4541_s15 = inlined_call_operand.vmem [shape: f32[256,2], index: 15, kind: output, shape index: {1}]  }
   0x1   :  { %4546 = sst [smem:[#allocation11_spill]] %s4535_s9  ;;  %s3249_s20 = smov 0  }
   0x2   :  { %4547 = sst [smem:[#allocation12_spill]] %s4536_s10  ;;  %s3251_s21 = smov 0  }
   0x3   :  { %4548 = sst [smem:[#allocation13_spill]] %s4537_s11  ;;  %s3253_s22 = smov 0  }
   0x4 LB: > { %4549 = sst [smem:[#allocation6_spill]] %s3152_s20  ;;  %s35_s23 = sadd.s32 1, %s3152_s20  ;;  %s3160_s22 = sphi %s3253_s22, %s26_s22   ;;  %s3156_s21 = sphi %s3251_s21, %s4561_s21   ;;  %s3152_s20 = sphi %s3249_s20, %s4560_s20   ;;  %s3148_s19 = sphi %s3247_s19, %s4559_s19   ;;  %s3144_s18 = sphi %s3245_s18, %s4558_s18  }
   0x5   : > { %4550 = sst [smem:[#allocation7_spill]] %s3156_s21  ;;  %s38_s24 = sadd.s32 1, %s3156_s21 }
   0x6   : > { %4551 = sst [smem:[#allocation8_spill]] %s3160_s22  ;;  %p36_p0 = scmp.ge.s32.totalorder %s35_s23, 2 }
   0x7   : > { %p2748_p1 = scmp.ge.s32.totalorder %s3160_s22, 1  ;;  %p484_p2 = scmp.lt.s32.totalorder %s3160_s22, 5 }
   0x8   : > { %s4563_s23 = smov (%p36_p0, %s35_s23), 0  ;;  %s4565_s24 = smov (!%p36_p0, %s38_s24), %s3156_s21 }
   0x9   : > { %4552 = sst [smem:[#allocation9_spill]] %s4563_s23  ;;  %p485_p3 = pnand %p2748_p1, %p484_p2 }
   0xa   : > { %p40_p4 = scmp.ge.s32.totalorder %s4565_s24, 2  ;;  %s548_s25 = ssub.s32 (!%p485_p3), 1, %s3148_s19 }
   0xb   : > { %488 = sbr.rel (%p485_p3) target bundleno = 2018 (0x7e2), region = 76  ;;  %s3284_s28 = sshll.u32 (!%p485_p3), %s3144_s18, 7 }
   0xc   : > { %s4567_s24 = smov (%p40_p4, %s4565_s24), 0  ;;  %s568_s26 = smul.u32 (!%p485_p3), %s3144_s18, %s3148_s19 }
   0xd   : > { %4553 = sst [smem:[#allocation10_spill]] %s4567_s24  ;;  %s549_s27 = smul.u32 (!%p485_p3), %s3144_s18, %s548_s25 }
   0xe   : > { %s2753_s29 = sshll.u32 (!%p485_p3), %s568_s26, 4  ;;  %p2758_p7 = scmp.ne.s32.totalorder (!%p485_p3), %s3148_s19, 0 }
   0xf   : > { %s2749_s30 = sshll.u32 (!%p485_p3), %s549_s27, 4  ;;  %p570_p5 = scmp.lt.s32.totalorder (!%p485_p3), %s2753_s29, 31 }
  0x10   : > { %p551_p6 = scmp.lt.s32.totalorder %s2749_s30, 31  ;;  %p2759_p8 = scmp.ne.s32.totalorder (!%p2758_p7), %s3144_s18, 0 }
  0x11   : > { %s4569_s29 = smov (!%p570_p5, %s2753_s29), 31  ;;  %589 = sbr.rel (%p2758_p7) target bundleno = 510 (0x1fe), region = 80 }
  0x12   : > { %s4571_s30 = smov (!%p551_p6, %s2749_s30), 31  ;;  %s2754_s16 = sshll.u32 %s4569_s29, 3 }
  0x13   : > { %s2750_s17 = sshll.u32 %s4571_s30, 3  ;;  %s3289_s21 = scalar_lea.vmem %s4540_s14, %s2754_s16 }
  0x14   : > { %s3294_s11 = scalar_lea.vmem %s4526_s0, %s2750_s17  ;;  %s3299_s26 = scalar_lea.vmem %s4527_s1, %s2750_s17 }
  0x15   : > { %s3304_s29 = scalar_lea.vmem %s4541_s15, %s2754_s16 }
  0x16   : > { %593 = sbr.rel (%p2759_p8) target bundleno = 30 (0x1e), region = 84 }
  0x1b   : > { %vm594_vm0 = vcmask 8192   ;;  %v3162_v0 = vmov -inf   ;;  %v3163_v1 = vmov 0.0  }
  0x1c   : > { %595 = vst.msk [vmem:[#allocation4] sm:$0x1] %vm594_vm0, %v3162_v0 }
  0x1d   : > { %596 = vst.msk [vmem:[#allocation5] sm:$0x1] %vm594_vm0, %v3163_v1 }
  0x1e PF: > { %v2908_v2 = vld [vmem:[%s4528_s2 + $0x8] sm:$0xff]  ;;  %v2907_v4 = vld [vmem:[%s4528_s2] sm:$0xff]  ;;  %vm614_vm1 = vcmask 261120   ;;  %s3323_s16 = scalar_lea.vmem [#allocation3], %s3284_s28  ;;  %v599_v10 = vld [vmem:[%s3294_s11 + $0x10] sm:$0xff]  ;;  %vm897_vm2 = vcmask 523264  }
  0x1f   : > { %v2910_v3 = vld [vmem:[%s4529_s3 + $0x8] sm:$0xff]  ;;  %v2909_v5 = vld [vmem:[%s4529_s3] sm:$0xff]  ;;  %685 = vmatpush.bf16.msra.mxu0 %v2908_v2  ;;  %2927 = vmatpush.bf16.msra.mxu3 %v2908_v2  ;;  %v600_v11 = vld [vmem:[%s3294_s11 + $0x18] sm:$0xff]  ;;  %617 = vst.msk [vmem:[%s3323_s16 + $0x10] sm:$0xff] %vm614_vm1, %v599_v10  ;;  %vm972_vm3 = vcmask 15360   ;;  %s3426_s22 = scalar_lea.vmem [#allocation2], %s3284_s28 }
  0x20   : > { %v597_v6 = vld [vmem:[%s3294_s11] sm:$0xff]  ;;  %798 = vmatpush.bf16.msra.mxu1 %v2910_v3  ;;  %v598_v7 = vld [vmem:[%s3294_s11 + $0x8] sm:$0xff]  ;;  %618 = vst.msk [vmem:[%s3323_s16 + $0x18] sm:$0xff] %vm614_vm1, %v600_v11  ;;  %v603_v16 = vld [vmem:[%s3294_s11 + $0x30] sm:$0xff]  ;;  %v632_v20 = vpack.c.bf16 %v600_v11, %v599_v10  ;;  %vm1122_vm4 = vcmask 8192  }
  0x21   : > { %615 = vst.msk [vmem:[%s3323_s16] sm:$0xff] %vm614_vm1, %v597_v6  ;;  %v728_v8 = vld [vmem:[%s3299_s26] sm:$0xff]  ;;  %v729_v9 = vld [vmem:[%s3299_s26 + $0x8] sm:$0xff]  ;;  %v631_v12 = vpack.c.bf16 %v598_v7, %v597_v6  ;;  %v604_v17 = vld [vmem:[%s3294_s11 + $0x38] sm:$0xff] }
  0x22   : > { %616 = vst.msk [vmem:[%s3323_s16 + $0x8] sm:$0xff] %vm614_vm1, %v598_v7  ;;  %v744_v13 = vpack.c.bf16 %v729_v9, %v728_v8  ;;  %v601_v14 = vld [vmem:[%s3294_s11 + $0x20] sm:$0xff]  ;;  %v602_v15 = vld [vmem:[%s3294_s11 + $0x28] sm:$0xff]  ;;  %v730_v18 = vld [vmem:[%s3299_s26 + $0x10] sm:$0xff]  ;;  %v634_v35 = vpack.c.bf16 %v604_v17, %v603_v16 }
  0x23   : > { %686 = vmatpush.bf16.msra.mxu0 %v2907_v4  ;;  %619 = vst.msk [vmem:[%s3323_s16 + $0x20] sm:$0xff] %vm614_vm1, %v601_v14  ;;  %2928 = vmatpush.bf16.msra.mxu3 %v2907_v4  ;;  %v731_v19 = vld [vmem:[%s3299_s26 + $0x18] sm:$0xff]  ;;  %v605_v22 = vld [vmem:[%s3294_s11 + $0x40] sm:$0xff]  ;;  %v606_v23 = vld [vmem:[%s3294_s11 + $0x48] sm:$0xff]  ;;  %v633_v26 = vpack.c.bf16 %v602_v15, %v601_v14 }
  0x24   : > { %799 = vmatpush.bf16.msra.mxu1 %v2909_v5  ;;  %620 = vst.msk [vmem:[%s3323_s16 + $0x28] sm:$0xff] %vm614_vm1, %v602_v15  ;;  %v745_v21 = vpack.c.bf16 %v731_v19, %v730_v18  ;;  %v732_v24 = vld [vmem:[%s3299_s26 + $0x20] sm:$0xff]  ;;  %v733_v25 = vld [vmem:[%s3299_s26 + $0x28] sm:$0xff]  ;;  %v611_v28 = vld [vmem:[%s3294_s11 + $0x70] sm:$0xff]  ;;  %v635_v44 = vpack.c.bf16 %v606_v23, %v605_v22 }
  0x25   : > { %621 = vst.msk [vmem:[%s3323_s16 + $0x30] sm:$0xff] %vm614_vm1, %v603_v16  ;;  %v746_v27 = vpack.c.bf16 %v733_v25, %v732_v24  ;;  %v612_v29 = vld [vmem:[%s3294_s11 + $0x78] sm:$0xff]  ;;  %v607_v31 = vld [vmem:[%s3294_s11 + $0x50] sm:$0xff]  ;;  %v609_v40 = vld [vmem:[%s3294_s11 + $0x60] sm:$0xff] }
  0x26   : > { %2768 = vmatmul.msk.bf16.vlgmr.msra.gmra.mxu0 %vm614_vm1, %v631_v12  ;;  %622 = vst.msk [vmem:[%s3323_s16 + $0x38] sm:$0xff] %vm614_vm1, %v604_v17  ;;  %v638_v30 = vpack.c.bf16 %v612_v29, %v611_v28  ;;  %v608_v32 = vld [vmem:[%s3294_s11 + $0x58] sm:$0xff]  ;;  %v734_v33 = vld [vmem:[%s3299_s26 + $0x30] sm:$0xff]  ;;  %v610_v41 = vld [vmem:[%s3294_s11 + $0x68] sm:$0xff] }
  0x27   : > { %2929 = vmatpush.bf16.msrb.mxu3 %v2910_v3  ;;  %2784 = vmatmul.msk.bf16.vlgmr.msra.gmra.mxu1 %vm614_vm1, %v744_v13  ;;  %623 = vst.msk [vmem:[%s3323_s16 + $0x40] sm:$0xff] %vm614_vm1, %v605_v22  ;;  %v735_v34 = vld [vmem:[%s3299_s26 + $0x38] sm:$0xff]  ;;  %v742_v37 = vld [vmem:[%s3299_s26 + $0x70] sm:$0xff]  ;;  %v736_v42 = vld [vmem:[%s3299_s26 + $0x40] sm:$0xff]  ;;  %v636_v49 = vpack.c.bf16 %v608_v32, %v607_v31  ;;  %v637_v53 = vpack.c.bf16 %v610_v41, %v609_v40 }
  0x28   : > { %624 = vst.msk [vmem:[%s3323_s16 + $0x48] sm:$0xff] %vm614_vm1, %v606_v23  ;;  %2775 = vmatmul.msk.bf16.vlgmr.msra.gmra.mxu3 %vm614_vm1, %v638_v30  ;;  %v747_v36 = vpack.c.bf16 %v735_v34, %v734_v33  ;;  %v743_v38 = vld [vmem:[%s3299_s26 + $0x78] sm:$0xff]  ;;  %v737_v43 = vld [vmem:[%s3299_s26 + $0x48] sm:$0xff]  ;;  %v738_v47 = vld [vmem:[%s3299_s26 + $0x50] sm:$0xff] }
  0x29   : > { %629 = vst.msk [vmem:[%s3323_s16 + $0x70] sm:$0xff] %vm614_vm1, %v611_v28  ;;  %v751_v39 = vpack.c.bf16 %v743_v38, %v742_v37  ;;  %v748_v45 = vpack.c.bf16 %v737_v43, %v736_v42  ;;  %v2914_v46 = vld [vmem:[%s4530_s4 + $0x18] sm:$0xff]  ;;  %v740_v51 = vld [vmem:[%s3299_s26 + $0x60] sm:$0xff]  ;;  %v741_v52 = vld [vmem:[%s3299_s26 + $0x68] sm:$0xff] }
  0x2a   : > { %630 = vst.msk [vmem:[%s3323_s16 + $0x78] sm:$0xff] %vm614_vm1, %v612_v29  ;;  %926 = vmatpush.bf16.msra.mxu2 %v2914_v46  ;;  %v739_v48 = vld [vmem:[%s3299_s26 + $0x58] sm:$0xff]  ;;  %v750_v54 = vpack.c.bf16 %v741_v52, %v740_v51  ;;  %v2913_v55 = vld [vmem:[%s4530_s4 + $0x10] sm:$0xff]  ;;  %v2912_v56 = vld [vmem:[%s4530_s4 + $0x8] sm:$0xff] }
  0x2b   : > { %2930 = vmatpush.bf16.msrb.mxu3 %v2909_v5  ;;  %625 = vst.msk [vmem:[%s3323_s16 + $0x50] sm:$0xff] %vm614_vm1, %v607_v31  ;;  %v749_v50 = vpack.c.bf16 %v739_v48, %v738_v47  ;;  %v2911_v57 = vld [vmem:[%s4530_s4] sm:$0xff] }
  0x2c   : > { %626 = vst.msk [vmem:[%s3323_s16 + $0x58] sm:$0xff] %vm614_vm1, %v608_v32 }
  0x2d   : > { %627 = vst.msk [vmem:[%s3323_s16 + $0x60] sm:$0xff] %vm614_vm1, %v609_v40 }
  0x2e   : > { %628 = vst.msk [vmem:[%s3323_s16 + $0x68] sm:$0xff] %vm614_vm1, %v610_v41  ;;  %927 = vmatpush.bf16.msra.mxu2 %v2913_v55 }
  0x2f   : > { %2931 = vmatpush.bf16.msra.mxu3 %v2914_v46 }
  0x32   : > { %928 = vmatpush.bf16.msra.mxu2 %v2912_v56 }
  0x33   : > { %2932 = vmatpush.bf16.msra.mxu3 %v2913_v55 }
  0x36   : > { %2769 = vmatmul.msk.bf16.gmra.mxu0 %vm614_vm1, %v632_v20  ;;  %929 = vmatpush.bf16.msra.mxu2 %v2911_v57 }
  0x37   : > { %2785 = vmatmul.msk.bf16.gmra.mxu1 %vm614_vm1, %v745_v21  ;;  %2933 = vmatpush.bf16.msra.mxu3 %v2912_v56 }
  0x38   : > { %2791 = vmatmul.msk.bf16.vlgmr.msrb.gmra.mxu3 %vm614_vm1, %v751_v39 }
  0x3b   : > { %2934 = vmatpush.bf16.msra.mxu3 %v2911_v57 }
  0x46   : > { %2770 = vmatmul.msk.bf16.gmra.mxu0 %vm614_vm1, %v633_v26 }
  0x47   : > { %2786 = vmatmul.msk.bf16.gmra.mxu1 %vm614_vm1, %v746_v27 }
  0x56   : > { %2771 = vmatmul.msk.bf16.gmra.mxu0 %vm614_vm1, %v634_v35 }
  0x57   : > { %2787 = vmatmul.msk.bf16.gmra.mxu1 %vm614_vm1, %v747_v36 }
  0x66   : > { %2772 = vmatmul.msk.bf16.gmra.mxu0 %vm614_vm1, %v635_v44 }
  0x67   : > { %2788 = vmatmul.msk.bf16.gmra.mxu1 %vm614_vm1, %v748_v45 }
  0x76   : > { %2773 = vmatmul.msk.bf16.gmra.mxu0 %vm614_vm1, %v636_v49 }
  0x77   : > { %2789 = vmatmul.msk.bf16.gmra.mxu1 %vm614_vm1, %v749_v50 }
  0x86   : > { %2774 = vmatmul.msk.bf16.gmra.mxu0 %vm614_vm1, %v637_v53 }
  0x87   : > { %2790 = vmatmul.msk.bf16.gmra.mxu1 %vm614_vm1, %v750_v54 }
  0xa3   : > { %v688_v58 = vpop.f32.mrf.mxu0 }
  0xa4   : > { %v801_v59 = vpop.f32.mrf.mxu1 }
  0xa5   : > { %v841_v62 = vmul.f32 %v801_v59, %v688_v58 }
  0xab   : > { %v690_v60 = vpop.f32.mrf.mxu0  ;;  %v723_v31 = vpop.f32.mrf.mxu3 }
  0xac   : > { %v803_v61 = vpop.f32.mrf.mxu1 }
  0xad   : > { %v842_v63 = vmul.f32 %v803_v61, %v690_v60 }
  0xaf   : > { %v857_v0 = vpack.c.bf16 %v842_v63, %v841_v62 }
  0xb1   : > { %2808 = vmatmul.msk.bf16.vlgmr.msra.gmra.mxu2 %vm897_vm2, %v857_v0 }
  0xb3   : > { %v693_v1 = vpop.f32.mrf.mxu0  ;;  %v725_v37 = vpop.f32.mrf.mxu3 }
  0xb4   : > { %v806_v2 = vpop.f32.mrf.mxu1 }
  0xb5   : > { %v843_v5 = vmul.f32 %v806_v2, %v693_v1 }
  0xbb   : > { %v695_v3 = vpop.f32.mrf.mxu0  ;;  %v836_v44 = vpop.f32.mrf.mxu3 }
  0xbc   : > { %v808_v4 = vpop.f32.mrf.mxu1  ;;  %v855_v47 = vmul.f32 %v836_v44, %v723_v31 }
  0xbd   : > { %v844_v6 = vmul.f32 %v808_v4, %v695_v3 }
  0xbf   : > { %v858_v7 = vpack.c.bf16 %v844_v6, %v843_v5 }
  0xc1   : > { %2809 = vmatmul.msk.bf16.gmra.mxu2 %vm897_vm2, %v858_v7 }
  0xc3   : > { %v698_v8 = vpop.f32.mrf.mxu0  ;;  %v838_v46 = vpop.f32.mrf.mxu3 }
  0xc4   : > { %v811_v9 = vpop.f32.mrf.mxu1  ;;  %v856_v48 = vmul.f32 %v838_v46, %v725_v37 }
  0xc5   : > { %v845_v12 = vmul.f32 %v811_v9, %v698_v8 }
  0xc6   : > { %v864_v49 = vpack.c.bf16 %v856_v48, %v855_v47 }
  0xcb   : > { %v700_v10 = vpop.f32.mrf.mxu0 }
  0xcc   : > { %v813_v11 = vpop.f32.mrf.mxu1 }
  0xcd   : > { %v846_v13 = vmul.f32 %v813_v11, %v700_v10 }
  0xcf   : > { %v859_v14 = vpack.c.bf16 %v846_v13, %v845_v12 }
  0xd1   : > { %2810 = vmatmul.msk.bf16.gmra.mxu2 %vm897_vm2, %v859_v14 }
  0xd3   : > { %v703_v15 = vpop.f32.mrf.mxu0 }
  0xd4   : > { %v816_v16 = vpop.f32.mrf.mxu1 }
  0xd5   : > { %v847_v19 = vmul.f32 %v816_v16, %v703_v15 }
  0xdb   : > { %v705_v17 = vpop.f32.mrf.mxu0 }
  0xdc   : > { %v818_v18 = vpop.f32.mrf.mxu1 }
  0xdd   : > { %v848_v20 = vmul.f32 %v818_v18, %v705_v17 }
  0xdf   : > { %v860_v21 = vpack.c.bf16 %v848_v20, %v847_v19 }
  0xe1   : > { %2811 = vmatmul.msk.bf16.gmra.mxu2 %vm897_vm2, %v860_v21 }
  0xe3   : > { %v708_v22 = vpop.f32.mrf.mxu0 }
  0xe4   : > { %v821_v23 = vpop.f32.mrf.mxu1 }
  0xe5   : > { %v849_v26 = vmul.f32 %v821_v23, %v708_v22 }
  0xeb   : > { %v710_v24 = vpop.f32.mrf.mxu0 }
  0xec   : > { %v823_v25 = vpop.f32.mrf.mxu1 }
  0xed   : > { %v850_v27 = vmul.f32 %v823_v25, %v710_v24 }
  0xef   : > { %v861_v28 = vpack.c.bf16 %v850_v27, %v849_v26 }
  0xf1   : > { %2812 = vmatmul.msk.bf16.gmra.mxu2 %vm897_vm2, %v861_v28 }
  0xf3   : > { %v713_v29 = vpop.f32.mrf.mxu0 }
  0xf4   : > { %v826_v30 = vpop.f32.mrf.mxu1 }
  0xf5   : > { %v851_v34 = vmul.f32 %v826_v30, %v713_v29 }
  0xfb   : > { %v715_v32 = vpop.f32.mrf.mxu0 }
  0xfc   : > { %v828_v33 = vpop.f32.mrf.mxu1 }
  0xfd   : > { %v852_v35 = vmul.f32 %v828_v33, %v715_v32 }
  0xff   : > { %v862_v36 = vpack.c.bf16 %v852_v35, %v851_v34 }
 0x101   : > { %2813 = vmatmul.msk.bf16.gmra.mxu2 %vm897_vm2, %v862_v36 }
 0x103   : > { %v718_v38 = vpop.f32.mrf.mxu0 }
 0x104   : > { %v831_v39 = vpop.f32.mrf.mxu1 }
 0x105   : > { %v853_v42 = vmul.f32 %v831_v39, %v718_v38  ;;  %v3538_v38 = vld [vmem:[#allocation4] sm:$0x1] }
 0x10b   : > { %v720_v40 = vpop.f32.mrf.mxu0 }
 0x10c   : > { %v833_v41 = vpop.f32.mrf.mxu1 }
 0x10d   : > { %v854_v43 = vmul.f32 %v833_v41, %v720_v40 }
 0x10f   : > { %v863_v45 = vpack.c.bf16 %v854_v43, %v853_v42 }
 0x111   : > { %2814 = vmatmul.msk.bf16.vlgmr.msra.gmra.mxu3 %vm897_vm2, %v863_v45 }
 0x121   : > { %2815 = vmatmul.msk.bf16.gmra.mxu3 %vm897_vm2, %v864_v49 }
 0x134   : > { %v3423_v50 = vpop.f32.mrf.mxu2 }
 0x135   : > { %973 = vst.msk [vmem:[%s3426_s22] sm:$0xff] %vm972_vm3, %v3423_v50  ;;  %v989_v7 = vsel %vm972_vm3, %v3423_v50, -inf }
 0x13c   : > { %v3431_v51 = vpop.f32.mrf.mxu2 }
 0x13d   : > { %974 = vst.msk [vmem:[%s3426_s22 + $0x8] sm:$0xff] %vm972_vm3, %v3431_v51  ;;  %v990_v2 = vsel %vm972_vm3, %v3431_v51, -inf }
 0x144   : > { %v3436_v52 = vpop.f32.mrf.mxu2 }
 0x145   : > { %975 = vst.msk [vmem:[%s3426_s22 + $0x10] sm:$0xff] %vm972_vm3, %v3436_v52  ;;  %v991_v8 = vsel %vm972_vm3, %v3436_v52, -inf }
 0x14c   : > { %v3441_v53 = vpop.f32.mrf.mxu2 }
 0x14d   : > { %976 = vst.msk [vmem:[%s3426_s22 + $0x18] sm:$0xff] %vm972_vm3, %v3441_v53  ;;  %v992_v9 = vsel %vm972_vm3, %v3441_v53, -inf }
 0x154   : > { %v3446_v54 = vpop.f32.mrf.mxu2 }
 0x155   : > { %977 = vst.msk [vmem:[%s3426_s22 + $0x20] sm:$0xff] %vm972_vm3, %v3446_v54  ;;  %v993_v3 = vsel %vm972_vm3, %v3446_v54, -inf }
 0x156   : > { %v994_v15 = vmax.f32 %v989_v7, %v993_v3 }
 0x15c   : > { %v3451_v55 = vpop.f32.mrf.mxu2 }
 0x15d   : > { %978 = vst.msk [vmem:[%s3426_s22 + $0x28] sm:$0xff] %vm972_vm3, %v3451_v55  ;;  %v995_v1 = vsel %vm972_vm3, %v3451_v55, -inf }
 0x15e   : > { %v996_v10 = vmax.f32 %v990_v2, %v995_v1 }
 0x164   : > { %v3456_v56 = vpop.f32.mrf.mxu2 }
 0x165   : > { %979 = vst.msk [vmem:[%s3426_s22 + $0x30] sm:$0xff] %vm972_vm3, %v3456_v56  ;;  %v997_v4 = vsel %vm972_vm3, %v3456_v56, -inf }
 0x166   : > { %v998_v16 = vmax.f32 %v991_v8, %v997_v4 }
 0x16c   : > { %v3461_v57 = vpop.f32.mrf.mxu2 }
 0x16d   : > { %980 = vst.msk [vmem:[%s3426_s22 + $0x38] sm:$0xff] %vm972_vm3, %v3461_v57  ;;  %v999_v5 = vsel %vm972_vm3, %v3461_v57, -inf }
 0x16e   : > { %v1000_v17 = vmax.f32 %v992_v9, %v999_v5 }
 0x174   : > { %v3466_v58 = vpop.f32.mrf.mxu2 }
 0x175   : > { %981 = vst.msk [vmem:[%s3426_s22 + $0x40] sm:$0xff] %vm972_vm3, %v3466_v58  ;;  %v1001_v11 = vsel %vm972_vm3, %v3466_v58, -inf }
 0x176   : > { %v1002_v21 = vmax.f32 %v994_v15, %v1001_v11 }
 0x17c   : > { %v3471_v59 = vpop.f32.mrf.mxu2 }
 0x17d   : > { %982 = vst.msk [vmem:[%s3426_s22 + $0x48] sm:$0xff] %vm972_vm3, %v3471_v59  ;;  %v1003_v6 = vsel %vm972_vm3, %v3471_v59, -inf }
 0x17e   : > { %v1004_v18 = vmax.f32 %v996_v10, %v1003_v6 }
 0x184   : > { %v3476_v60 = vpop.f32.mrf.mxu2 }
 0x185   : > { %983 = vst.msk [vmem:[%s3426_s22 + $0x50] sm:$0xff] %vm972_vm3, %v3476_v60  ;;  %v1005_v12 = vsel %vm972_vm3, %v3476_v60, -inf }
 0x186   : > { %v1006_v22 = vmax.f32 %v998_v16, %v1005_v12 }
 0x18c   : > { %v3481_v61 = vpop.f32.mrf.mxu2 }
 0x18d   : > { %984 = vst.msk [vmem:[%s3426_s22 + $0x58] sm:$0xff] %vm972_vm3, %v3481_v61  ;;  %v1007_v13 = vsel %vm972_vm3, %v3481_v61, -inf }
 0x18e   : > { %v1008_v23 = vmax.f32 %v1000_v17, %v1007_v13 }
 0x194   : > { %v3486_v62 = vpop.f32.mrf.mxu3 }
 0x195   : > { %985 = vst.msk [vmem:[%s3426_s22 + $0x60] sm:$0xff] %vm972_vm3, %v3486_v62  ;;  %v1009_v19 = vsel %vm972_vm3, %v3486_v62, -inf }
 0x196   : > { %v1010_v27 = vmax.f32 %v1002_v21, %v1009_v19 }
 0x19c   : > { %v3491_v63 = vpop.f32.mrf.mxu3 }
 0x19d   : > { %986 = vst.msk [vmem:[%s3426_s22 + $0x68] sm:$0xff] %vm972_vm3, %v3491_v63  ;;  %v1011_v14 = vsel %vm972_vm3, %v3491_v63, -inf }
 0x19e   : > { %v1012_v24 = vmax.f32 %v1004_v18, %v1011_v14 }
 0x1a0   : > { %v1017_v30 = vmax.f32 %v1010_v27, %v1012_v24 }
 0x1a4   : > { %v3496_v0 = vpop.f32.mrf.mxu3 }
 0x1a5   : > { %987 = vst.msk [vmem:[%s3426_s22 + $0x70] sm:$0xff] %vm972_vm3, %v3496_v0  ;;  %v1013_v20 = vsel %vm972_vm3, %v3496_v0, -inf }
 0x1a6   : > { %v1014_v28 = vmax.f32 %v1006_v22, %v1013_v20 }
 0x1ac   : > { %v3531_v25 = vpop.f32.mrf.mxu3 }
 0x1ad   : > { %988 = vst.msk [vmem:[%s3426_s22 + $0x78] sm:$0xff] %vm972_vm3, %v3531_v25  ;;  %v1015_v26 = vsel %vm972_vm3, %v3531_v25, -inf }
 0x1ae   : > { %v1016_v29 = vmax.f32 %v1008_v23, %v1015_v26 }
 0x1b0   : > { %v1018_v31 = vmax.f32 %v1014_v28, %v1016_v29 }
 0x1b2   : > { %v1019_v32 = vmax.f32 %v1017_v30, %v1018_v31 }
 0x1b4   : > { %v1020_v33 = vrot.slane %v1019_v32, 4 }
 0x1b6   : > { %v1021_v34 = vmax.f32 %v1019_v32, %v1020_v33 }
 0x1b8   : > { %v1022_v35 = vrot.slane %v1021_v34, 2 }
 0x1ba   : > { %v1023_v36 = vmax.f32 %v1021_v34, %v1022_v35 }
 0x1bc   : > { %v1024_v37 = vrot.slane %v1023_v36, 1 }
 0x1be   : > { %v1025_v39 = vmax.f32 %v1023_v36, %v1024_v37 }
 0x1c0   : > { %v3541_v40 = vmax.f32 %v3538_v38, %v1025_v39 }
 0x1c2   : > { %v3544_v41 = vperm.slane %v3541_v40, 0  ;;  %1124 = vst.msk [vmem:[#allocation4] sm:$0x1] %vm1122_vm4, %v3541_v40 }
 0x1c4   : > { %v1036_v42 = vsub.f32 %v3423_v50, %v3544_v41  ;;  %v1037_v43 = vsub.f32 %v3431_v51, %v3544_v41  ;;  %v1038_v44 = vsub.f32 %v3436_v52, %v3544_v41  ;;  %v1039_v45 = vsub.f32 %v3441_v53, %v3544_v41 }
 0x1c5   : > { %v1040_v46 = vsub.f32 %v3446_v54, %v3544_v41  ;;  %v1041_v49 = vsub.f32 %v3451_v55, %v3544_v41  ;;  %v1042_v50 = vsub.f32 %v3456_v56, %v3544_v41  ;;  %v1043_v52 = vsub.f32 %v3461_v57, %v3544_v41 }
 0x1c6   : > { %v1052_v47 = vmul.f32 1.442695, %v1036_v42  ;;  %v1054_v48 = vmul.f32 1.442695, %v1037_v43  ;;  %v1056_v1 = vmul.f32 1.442695, %v1038_v44  ;;  %v1044_v54 = vsub.f32 %v3466_v58, %v3544_v41 }
 0x1c7   : > { %v1058_v2 = vmul.f32 1.442695, %v1039_v45  ;;  %v1060_v51 = vmul.f32 1.442695, %v1040_v46  ;;  %v1062_v53 = vmul.f32 1.442695, %v1041_v49  ;;  %v1045_v5 = vsub.f32 %v3471_v59, %v3544_v41 }
 0x1c8   : > { %2981 = vpow2.f32 %v1052_v47  ;;  %v1064_v3 = vmul.f32 1.442695, %v1042_v50  ;;  %v1066_v56 = vmul.f32 1.442695, %v1043_v52  ;;  %v1046_v9 = vsub.f32 %v3476_v60, %v3544_v41 }
 0x1c9   : > { %2983 = vpow2.f32 %v1054_v48  ;;  %v1068_v58 = vmul.f32 1.442695, %v1044_v54  ;;  %v1047_v59 = vsub.f32 %v3481_v61, %v3544_v41  ;;  %v1070_v13 = vmul.f32 1.442695, %v1045_v5 }
 0x1ca   : > { %2985 = vpow2.f32 %v1056_v1  ;;  %v1048_v17 = vsub.f32 %v3486_v62, %v3544_v41  ;;  %v1072_v60 = vmul.f32 1.442695, %v1046_v9  ;;  %v1049_v21 = vsub.f32 %v3491_v63, %v3544_v41  ;;  %v1028_v9 = vld [vmem:[#allocation5] sm:$0x1] }
 0x1cb   : > { %2987 = vpow2.f32 %v1058_v2  ;;  %v1074_v61 = vmul.f32 1.442695, %v1047_v59  ;;  %v1050_v26 = vsub.f32 %v3496_v0, %v3544_v41  ;;  %v1051_v30 = vsub.f32 %v3531_v25, %v3544_v41 }
 0x1cc   : > { %2989 = vpow2.f32 %v1060_v51  ;;  %v1076_v62 = vmul.f32 1.442695, %v1048_v17  ;;  %v1078_v63 = vmul.f32 1.442695, %v1049_v21  ;;  %v1029_v50 = vsub.f32 %v3538_v38, %v3541_v40 }
 0x1cd   : > { %2991 = vpow2.f32 %v1062_v53  ;;  %v1080_v34 = vmul.f32 1.442695, %v1050_v26  ;;  %v1082_v37 = vmul.f32 1.442695, %v1051_v30 }
 0x1ce   : > { %v2982_v55 = vpop.eup %2981  ;;  %2993 = vpow2.f32 %v1064_v3 }
 0x1cf   : > { %v2984_v4 = vpop.eup %2983  ;;  %v1084_v6 = vsel %vm972_vm3, %v2982_v55, 0.0  ;;  %2995 = vpow2.f32 %v1066_v56  ;;  %v1030_v55 = vmul.f32 1.442695, %v1029_v50 }
 0x1d0   : > { %v2986_v7 = vpop.eup %2985  ;;  %v1085_v8 = vsel %vm972_vm3, %v2984_v4, 0.0  ;;  %2997 = vpow2.f32 %v1068_v58 }
 0x1d1   : > { %v2988_v57 = vpop.eup %2987  ;;  %v1086_v10 = vadd.f32 %v1085_v8, %v1084_v6  ;;  %v1087_v11 = vsel %vm972_vm3, %v2986_v7, 0.0  ;;  %2999 = vpow2.f32 %v1070_v13 }
 0x1d2   : > { %v2990_v12 = vpop.eup %2989  ;;  %v1089_v15 = vsel %vm972_vm3, %v2988_v57, 0.0  ;;  %3001 = vpow2.f32 %v1072_v60 }
 0x1d3   : > { %v1088_v14 = vadd.f32 %v1087_v11, %v1086_v10  ;;  %v2992_v16 = vpop.eup %2991  ;;  %v1091_v19 = vsel %vm972_vm3, %v2990_v12, 0.0  ;;  %3003 = vpow2.f32 %v1074_v61 }
 0x1d4   : > { %v2994_v20 = vpop.eup %2993  ;;  %v1093_v23 = vsel %vm972_vm3, %v2992_v16, 0.0  ;;  %3005 = vpow2.f32 %v1076_v62 }
 0x1d5   : > { %v1090_v18 = vadd.f32 %v1089_v15, %v1088_v14  ;;  %v2996_v24 = vpop.eup %2995  ;;  %v1095_v28 = vsel %vm972_vm3, %v2994_v20, 0.0  ;;  %3007 = vpow2.f32 %v1078_v63 }
 0x1d6   : > { %v2998_v29 = vpop.eup %2997  ;;  %v1097_v32 = vsel %vm972_vm3, %v2996_v24, 0.0  ;;  %3009 = vpow2.f32 %v1080_v34 }
 0x1d7   : > { %v1092_v22 = vadd.f32 %v1091_v19, %v1090_v18  ;;  %v3000_v33 = vpop.eup %2999  ;;  %v1099_v0 = vsel %vm972_vm3, %v2998_v29, 0.0  ;;  %3011 = vpow2.f32 %v1082_v37 }
 0x1d8   : > { %v3002_v36 = vpop.eup %3001  ;;  %v1101_v42 = vsel %vm972_vm3, %v3000_v33, 0.0  ;;  %3013 = vpow2.f32 %v1030_v55 }
 0x1d9   : > { %v1094_v27 = vadd.f32 %v1093_v23, %v1092_v22  ;;  %v3004_v43 = vpop.eup %3003  ;;  %v1103_v41 = vsel %vm972_vm3, %v3002_v36, 0.0 }
 0x1da   : > { %v3006_v44 = vpop.eup %3005  ;;  %v1105_v46 = vsel %vm972_vm3, %v3004_v43, 0.0 }
 0x1db   : > { %v1096_v31 = vadd.f32 %v1095_v28, %v1094_v27  ;;  %v3008_v47 = vpop.eup %3007  ;;  %v1107_v49 = vsel %vm972_vm3, %v3006_v44, 0.0 }
 0x1dc   : > { %v3010_v1 = vpop.eup %3009  ;;  %v1109_v51 = vsel %vm972_vm3, %v3008_v47, 0.0 }
 0x1dd   : > { %v1098_v35 = vadd.f32 %v1097_v32, %v1096_v31  ;;  %v3012_v52 = vpop.eup %3011  ;;  %v1111_v54 = vsel %vm972_vm3, %v3010_v1, 0.0 }
 0x1de   : > { %v1113_v4 = vsel %vm972_vm3, %v3012_v52, 0.0  ;;  %v3014_v57 = vpop.eup %3013 }
 0x1df   : > { %v1100_v39 = vadd.f32 %v1099_v0, %v1098_v35  ;;  %v1032_v38 = vmul.f32 %v3014_v57, %v1028_v9 }
 0x1e1   : > { %v1102_v25 = vadd.f32 %v1101_v42, %v1100_v39 }
 0x1e3   : > { %v1104_v45 = vadd.f32 %v1103_v41, %v1102_v25 }
 0x1e5   : > { %v1106_v48 = vadd.f32 %v1105_v46, %v1104_v45 }
 0x1e7   : > { %v1108_v2 = vadd.f32 %v1107_v49, %v1106_v48 }
 0x1e9   : > { %v1110_v53 = vadd.f32 %v1109_v51, %v1108_v2 }
 0x1eb   : > { %v1112_v3 = vadd.f32 %v1111_v54, %v1110_v53 }
 0x1ed   : > { %v1114_v5 = vadd.f32 %v1113_v4, %v1112_v3 }
 0x1ef   : > { %v1115_v56 = vrot.slane %v1114_v5, 4 }
 0x1f1   : > { %v1116_v6 = vadd.f32 %v1115_v56, %v1114_v5 }
 0x1f3   : > { %v1117_v7 = vrot.slane %v1116_v6, 2 }
 0x1f5   : > { %v1118_v8 = vadd.f32 %v1117_v7, %v1116_v6 }
 0x1f7   : > { %v1119_v58 = vrot.slane %v1118_v8, 1 }
 0x1f9   : > { %v1120_v40 = vadd.f32 %v1119_v58, %v1118_v8 }
 0x1fb   : > { %v1121_v10 = vadd.f32 %v1120_v40, %v1032_v38 }
 0x1fd   : > { %1123 = vst.msk [vmem:[#allocation5] sm:$0x1] %vm1122_vm4, %v1121_v10 }
 0x1fe PF: > { %p2816_p9 = scmp.ne.s32.totalorder %s3148_s19, 1 }
 0x1ff   : > { %s3610_s25 = scalar_lea.vmem (!%p2816_p9), [#allocation3], %s3284_s28  ;;  %s3619_s19 = scalar_lea.vmem (!%p2816_p9), [#allocation2], %s3284_s28 }
 0x200   : > { %1128 = sbr.rel (%p2816_p9) target bundleno = 2018 (0x7e2), region = 88  ;;  %s4555_s23 = sld [smem:[#allocation11_spill]] (!%p2816_p9) }
 0x201   : > { %s4556_s16 = sld [smem:[#allocation13_spill]] (!%p2816_p9) }
 0x205   : > { %v2916_v11 = vld [vmem:[%s4531_s5 + $0x8] sm:$0xff]  ;;  %v1359_v12 = vld [vmem:[%s4532_s6] sm:$0x1]  ;;  %vm1384_vm5 = vcmask 1040384   ;;  %v1163_v60 = vld [vmem:[#allocation5] sm:$0x1] }
 0x206   : > { %1308 = vmatpush.bf16.msra.mxu0 %v2916_v11  ;;  %v2915_v59 = vld [vmem:[%s4531_s5] sm:$0xff]  ;;  %v3616_v14 = vld [vmem:[%s3610_s25 + $0x8] sm:$0xff]  ;;  %v1386_v15 = vsel %vm1384_vm5, %v1359_v12, 0  ;;  %3020 = vrcp.f32 %v1163_v60  ;;  %v1153_v19 = vld [vmem:[%s3619_s19 + $0x30] sm:$0xff]  ;;  %vm1277_vm6 = vcmask 261120   ;;  %vm1236_vm7 = vcmask 15360  }
 0x207   : > { %v3613_v13 = vld [vmem:[%s3610_s25] sm:$0xff]  ;;  %2935 = vmatpush.bf16.msra.mxu1 %v1386_v15  ;;  %v1152_v17 = vld [vmem:[%s3619_s19 + $0x28] sm:$0xff]  ;;  %2936 = vmatpush.bf16.msra.mxu2 %v1386_v15  ;;  %v1154_v21 = vld [vmem:[%s3619_s19 + $0x38] sm:$0xff]  ;;  %vm1495_vm8 = vcmask 523264  }
 0x208   : > { %v1151_v16 = vld [vmem:[%s3619_s19 + $0x20] sm:$0xff]  ;;  %2937 = vmatpush.bf16.msra.mxu3 %v1386_v15  ;;  %v1253_v20 = vpack.c.bf16 %v3616_v14, %v3613_v13  ;;  %v3638_v34 = vld [vmem:[%s3610_s25 + $0x10] sm:$0xff]  ;;  %v3641_v35 = vld [vmem:[%s3610_s25 + $0x18] sm:$0xff] }
 0x209   : > { %v3623_v18 = vld [vmem:[#allocation4] ss:$0 sm:$0xff]  ;;  %v1156_v42 = vld [vmem:[%s3619_s19 + $0x48] sm:$0xff]  ;;  %v1254_v45 = vpack.c.bf16 %v3641_v35, %v3638_v34  ;;  %v1157_v53 = vld [vmem:[%s3619_s19 + $0x50] sm:$0xff] }
 0x20a   : > { %1309 = vmatpush.bf16.msra.mxu0 %v2915_v59  ;;  %v1173_v61 = vsub.f32 %v1151_v16, %v3623_v18  ;;  %v1174_v22 = vsub.f32 %v1152_v17, %v3623_v18  ;;  %v1175_v23 = vsub.f32 %v1153_v19, %v3623_v18  ;;  %v1176_v24 = vsub.f32 %v1154_v21, %v3623_v18  ;;  %v1155_v39 = vld [vmem:[%s3619_s19 + $0x40] sm:$0xff]  ;;  %v3671_v52 = vld [vmem:[%s3610_s25 + $0x28] sm:$0xff]  ;;  %v1158_v54 = vld [vmem:[%s3619_s19 + $0x58] sm:$0xff] }
 0x20b   : > { %v1177_v41 = vsub.f32 %v1155_v39, %v3623_v18  ;;  %v1178_v44 = vsub.f32 %v1156_v42, %v3623_v18  ;;  %v3668_v51 = vld [vmem:[%s3610_s25 + $0x20] sm:$0xff]  ;;  %v1179_v55 = vsub.f32 %v1157_v53, %v3623_v18  ;;  %v1180_v4 = vsub.f32 %v1158_v54, %v3623_v18  ;;  %v3688_v58 = vld [vmem:[%s3610_s25 + $0x30] sm:$0xff]  ;;  %v3691_v38 = vld [vmem:[%s3610_s25 + $0x38] sm:$0xff] }
 0x20c   : > { %v1193_v26 = vmul.f32 1.442695, %v1173_v61  ;;  %v1195_v62 = vmul.f32 1.442695, %v1174_v22  ;;  %v1197_v27 = vmul.f32 1.442695, %v1175_v23  ;;  %v3021_v29 = vpop.eup %3020  ;;  %v1255_v5 = vpack.c.bf16 %v3671_v52, %v3668_v51 }
 0x20d   : > { %2825 = vmatmul.msk.bf16.vlgmr.msra.gmra.mxu0 %vm1277_vm6, %v1253_v20  ;;  %v1199_v28 = vmul.f32 1.442695, %v1176_v24  ;;  %v3634_v30 = vperm.slane %v3021_v29, 0  ;;  %v1201_v47 = vmul.f32 1.442695, %v1177_v41  ;;  %v1159_v10 = vld [vmem:[%s3619_s19 + $0x60] sm:$0xff] }
 0x20e   : > { %1395 = vmatpush.bf16.msrb.mxu0 %v1386_v15  ;;  %3022 = vpow2.f32 %v1193_v26  ;;  %v1203_v48 = vmul.f32 1.442695, %v1178_v44  ;;  %v1205_v56 = vmul.f32 1.442695, %v1179_v55  ;;  %v1207_v6 = vmul.f32 1.442695, %v1180_v4 }
 0x20f   : > { %3024 = vpow2.f32 %v1195_v62  ;;  %v1160_v11 = vld [vmem:[%s3619_s19 + $0x68] sm:$0xff]  ;;  %v1181_v12 = vsub.f32 %v1159_v10, %v3623_v18  ;;  %v1256_v15 = vpack.c.bf16 %v3691_v38, %v3688_v58  ;;  %v3708_v61 = vld [vmem:[%s3610_s25 + $0x40] sm:$0xff]  ;;  %v1161_v24 = vld [vmem:[%s3619_s19 + $0x70] sm:$0xff] }
 0x210   : > { %3026 = vpow2.f32 %v1197_v27  ;;  %v1182_v59 = vsub.f32 %v1160_v11, %v3623_v18  ;;  %v3711_v22 = vld [vmem:[%s3610_s25 + $0x48] sm:$0xff]  ;;  %v1162_v26 = vld [vmem:[%s3619_s19 + $0x78] sm:$0xff]  ;;  %v1183_v62 = vsub.f32 %v1161_v24, %v3623_v18  ;;  %v1149_v54 = vld [vmem:[%s3619_s19 + $0x10] sm:$0xff] }
 0x211   : > { %3028 = vpow2.f32 %v1199_v28  ;;  %v1209_v16 = vmul.f32 1.442695, %v1181_v12  ;;  %v1184_v27 = vsub.f32 %v1162_v26, %v3623_v18  ;;  %v1257_v28 = vpack.c.bf16 %v3711_v22, %v3708_v61 }
 0x212   : > { %3030 = vpow2.f32 %v1201_v47  ;;  %v1211_v17 = vmul.f32 1.442695, %v1182_v59  ;;  %v1213_v29 = vmul.f32 1.442695, %v1183_v62  ;;  %v3744_v47 = vld [vmem:[%s3610_s25 + $0x60] sm:$0xff]  ;;  %v1171_v55 = vsub.f32 %v1149_v54, %v3623_v18  ;;  %v2918_v54 = vld [vmem:[%s4533_s7 + $0x8] sm:$0xff] }
 0x213   : > { %3032 = vpow2.f32 %v1203_v48  ;;  %v3747_v48 = vld [vmem:[%s3610_s25 + $0x68] sm:$0xff] }
 0x214   : > { %v3023_v63 = vpop.eup %3022  ;;  %3034 = vpow2.f32 %v1205_v56 }
 0x215   : > { %v3025_v31 = vpop.eup %3024  ;;  %v1224_v32 = vmul.f32 %v3023_v63, %v3634_v30  ;;  %3036 = vpow2.f32 %v1207_v6  ;;  %v1215_v63 = vmul.f32 1.442695, %v1184_v27  ;;  %v3763_v6 = vld [vmem:[%s3610_s25 + $0x70] sm:$0xff] }
 0x216   : > { %v3027_v33 = vpop.eup %3026  ;;  %v1225_v0 = vmul.f32 %v3025_v31, %v3634_v30  ;;  %3038 = vpow2.f32 %v1209_v16 }
 0x217   : > { %v3029_v36 = vpop.eup %3028  ;;  %1241 = vst.msk [vmem:[%s3304_s29 + $0x20] sm:$0xff] %vm1236_vm7, %v1224_v32  ;;  %v1226_v37 = vmul.f32 %v3027_v33, %v3634_v30  ;;  %3040 = vpow2.f32 %v1211_v17 }
 0x218   : > { %1242 = vst.msk [vmem:[%s3304_s29 + $0x28] sm:$0xff] %vm1236_vm7, %v1225_v0  ;;  %v1353_v43 = vpack.c.bf16 %v1225_v0, %v1224_v32  ;;  %v1227_v25 = vmul.f32 %v3029_v36, %v3634_v30  ;;  %v3031_v49 = vpop.eup %3030  ;;  %3042 = vpow2.f32 %v1213_v29  ;;  %v3728_v36 = vld [vmem:[%s3610_s25 + $0x50] sm:$0xff] }
 0x219   : > { %1243 = vst.msk [vmem:[%s3304_s29 + $0x30] sm:$0xff] %vm1236_vm7, %v1226_v37  ;;  %v3033_v1 = vpop.eup %3032  ;;  %v1228_v2 = vmul.f32 %v3031_v49, %v3634_v30  ;;  %3044 = vpow2.f32 %v1215_v63 }
 0x21a   : > { %2835 = vmatmul.msk.bf16.vlgmr.msra.gmra.mxu1 %vm1236_vm7, %v1353_v43  ;;  %1244 = vst.msk [vmem:[%s3304_s29 + $0x38] sm:$0xff] %vm1236_vm7, %v1227_v25  ;;  %v1354_v46 = vpack.c.bf16 %v1227_v25, %v1226_v37  ;;  %v1229_v50 = vmul.f32 %v3033_v1, %v3634_v30  ;;  %v3035_v7 = vpop.eup %3034  ;;  %v3731_v37 = vld [vmem:[%s3610_s25 + $0x58] sm:$0xff]  ;;  %v1147_v43 = vld [vmem:[%s3619_s19] sm:$0xff]  ;;  %v1148_v25 = vld [vmem:[%s3619_s19 + $0x8] sm:$0xff] }
 0x21b   : > { %1245 = vst.msk [vmem:[%s3304_s29 + $0x40] sm:$0xff] %vm1236_vm7, %v1228_v2  ;;  %v3037_v8 = vpop.eup %3036  ;;  %v1230_v57 = vmul.f32 %v3035_v7, %v3634_v30  ;;  %v1258_v42 = vpack.c.bf16 %v3731_v37, %v3728_v36  ;;  %v1169_v41 = vsub.f32 %v1147_v43, %v3623_v18  ;;  %v1170_v44 = vsub.f32 %v1148_v25, %v3623_v18  ;;  %v3766_v7 = vld [vmem:[%s3610_s25 + $0x78] sm:$0xff] }
 0x21c   : > { %2836 = vmatmul.msk.bf16.vlgmr.msra.gmra.mxu2 %vm1236_vm7, %v1354_v46  ;;  %1246 = vst.msk [vmem:[%s3304_s29 + $0x48] sm:$0xff] %vm1236_vm7, %v1229_v50  ;;  %v1355_v3 = vpack.c.bf16 %v1229_v50, %v1228_v2  ;;  %v1231_v9 = vmul.f32 %v3037_v8, %v3634_v30  ;;  %v3039_v60 = vpop.eup %3038  ;;  %v1259_v2 = vpack.c.bf16 %v3747_v48, %v3744_v47 }
 0x21d   : > { %2826 = vmatmul.msk.bf16.gmra.mxu0 %vm1277_vm6, %v1254_v45  ;;  %1247 = vst.msk [vmem:[%s3304_s29 + $0x50] sm:$0xff] %vm1236_vm7, %v1230_v57  ;;  %v3041_v19 = vpop.eup %3040  ;;  %v1232_v20 = vmul.f32 %v3039_v60, %v3634_v30  ;;  %v1185_v45 = vmul.f32 1.442695, %v1169_v41  ;;  %v1187_v46 = vmul.f32 1.442695, %v1170_v44  ;;  %v2920_v41 = vld [vmem:[%s4533_s7 + $0x18] sm:$0xff] }
 0x21e   : > { %1248 = vst.msk [vmem:[%s3304_s29 + $0x58] sm:$0xff] %vm1236_vm7, %v1231_v9  ;;  %v1356_v40 = vpack.c.bf16 %v1231_v9, %v1230_v57  ;;  %v1233_v21 = vmul.f32 %v3041_v19, %v3634_v30  ;;  %v3043_v31 = vpop.eup %3042  ;;  %v1260_v9 = vpack.c.bf16 %v3766_v7, %v3763_v6  ;;  %1524 = vmatpush.bf16.msrb.mxu2 %v2920_v41 }
 0x21f   : > { %1249 = vst.msk [vmem:[%s3304_s29 + $0x60] sm:$0xff] %vm1236_vm7, %v1232_v20  ;;  %v3045_v32 = vpop.eup %3044  ;;  %v1234_v33 = vmul.f32 %v3043_v31, %v3634_v30  ;;  %3046 = vpow2.f32 %v1185_v45 }
 0x220   : > { %2838 = vmatmul.msk.bf16.vlgmr.msra.gmra.mxu3 %vm1236_vm7, %v1356_v40  ;;  %1250 = vst.msk [vmem:[%s3304_s29 + $0x68] sm:$0xff] %vm1236_vm7, %v1233_v21  ;;  %v1357_v23 = vpack.c.bf16 %v1233_v21, %v1232_v20  ;;  %v1235_v0 = vmul.f32 %v3045_v32, %v3634_v30  ;;  %3048 = vpow2.f32 %v1187_v46  ;;  %v2919_v46 = vld [vmem:[%s4533_s7 + $0x10] sm:$0xff] }
 0x221   : > { %1251 = vst.msk [vmem:[%s3304_s29 + $0x70] sm:$0xff] %vm1236_vm7, %v1234_v33 }
 0x222   : > { %1252 = vst.msk [vmem:[%s3304_s29 + $0x78] sm:$0xff] %vm1236_vm7, %v1235_v0  ;;  %v1358_v39 = vpack.c.bf16 %v1235_v0, %v1234_v33  ;;  %1525 = vmatpush.bf16.msrb.mxu2 %v2919_v46 }
 0x225   : > { %v3047_v49 = vpop.eup %3046 }
 0x226   : > { %v3049_v1 = vpop.eup %3048  ;;  %v1220_v50 = vmul.f32 %v3047_v49, %v3634_v30  ;;  %1526 = vmatpush.bf16.msrb.mxu2 %v2918_v54 }
 0x227   : > { %v1221_v53 = vmul.f32 %v3049_v1, %v3634_v30 }
 0x228   : > { %1237 = vst.msk [vmem:[%s3304_s29] sm:$0xff] %vm1236_vm7, %v1220_v50 }
 0x229   : > { %1238 = vst.msk [vmem:[%s3304_s29 + $0x8] sm:$0xff] %vm1236_vm7, %v1221_v53 }
 0x22c   : > { %2837 = vmatmul.msk.bf16.gmra.mxu2 %vm1236_vm7, %v1355_v3  ;;  %v1150_v3 = vld [vmem:[%s3619_s19 + $0x18] sm:$0xff] }
 0x22d   : > { %2827 = vmatmul.msk.bf16.gmra.mxu0 %vm1277_vm6, %v1255_v5  ;;  %v1172_v4 = vsub.f32 %v1150_v3, %v3623_v18  ;;  %v1189_v5 = vmul.f32 1.442695, %v1171_v55  ;;  %v1351_v18 = vpack.c.bf16 %v1221_v53, %v1220_v50  ;;  %v2917_v55 = vld [vmem:[%s4533_s7] sm:$0xff] }
 0x22e   : > { %1527 = vmatpush.bf16.msrb.mxu2 %v2917_v55 }
 0x22f   : > { %v1191_v56 = vmul.f32 1.442695, %v1172_v4  ;;  %3050 = vpow2.f32 %v1189_v5 }
 0x230   : > { %2839 = vmatmul.msk.bf16.gmra.mxu3 %vm1236_vm7, %v1357_v23 }
 0x231   : > { %3052 = vpow2.f32 %v1191_v56 }
 0x235   : > { %v3051_v8 = vpop.eup %3050 }
 0x236   : > { %v1222_v40 = vmul.f32 %v3051_v8, %v3634_v30 }
 0x237   : > { %v3053_v57 = vpop.eup %3052 }
 0x238   : > { %v1223_v10 = vmul.f32 %v3053_v57, %v3634_v30  ;;  %1239 = vst.msk [vmem:[%s3304_s29 + $0x10] sm:$0xff] %vm1236_vm7, %v1222_v40 }
 0x23a   : > { %1240 = vst.msk [vmem:[%s3304_s29 + $0x18] sm:$0xff] %vm1236_vm7, %v1223_v10  ;;  %v1352_v59 = vpack.c.bf16 %v1223_v10, %v1222_v40  ;;  %s4554_s29 = sld [smem:[#allocation12_spill]] }
 0x23d   : > { %2828 = vmatmul.msk.bf16.gmra.mxu0 %vm1277_vm6, %v1256_v15 }
 0x240   : > { %2840 = vmatmul.msk.bf16.gmra.mxu3 %vm1236_vm7, %v1358_v39 }
 0x24d   : > { %2829 = vmatmul.msk.bf16.gmra.mxu0 %vm1277_vm6, %v1257_v28 }
 0x25d   : > { %2830 = vmatmul.msk.bf16.gmra.mxu0 %vm1277_vm6, %v1258_v42 }
 0x26d   : > { %2831 = vmatmul.msk.bf16.gmra.mxu0 %vm1277_vm6, %v1259_v2 }
 0x27d   : > { %2832 = vmatmul.msk.bf16.gmra.mxu0 %vm1277_vm6, %v1260_v9 }
 0x28a   : > { %v1311_v11 = vpop.f32.mrf.mxu0 }
 0x28d   : > { %2833 = vmatmul.msk.bf16.vlgmr.msrb.gmra.mxu0 %vm1236_vm7, %v1351_v18 }
 0x292   : > { %v1313_v12 = vpop.f32.mrf.mxu0 }
 0x297   : > { %v1407_v17 = vpop.f32.mrf.mxu1 }
 0x29a   : > { %v1316_v15 = vpop.f32.mrf.mxu0 }
 0x29d   : > { %2834 = vmatmul.msk.bf16.gmra.mxu0 %vm1236_vm7, %v1352_v59 }
 0x29f   : > { %v1409_v19 = vpop.f32.mrf.mxu1  ;;  %v1412_v20 = vpop.f32.mrf.mxu2 }
 0x2a2   : > { %v1318_v16 = vpop.f32.mrf.mxu0 }
 0x2a3   : > { %v1422_v33 = vpop.f32.mrf.mxu3 }
 0x2a7   : > { %v1414_v62 = vpop.f32.mrf.mxu2 }
 0x2aa   : > { %v1321_v60 = vpop.f32.mrf.mxu0 }
 0x2ab   : > { %v1441_v21 = vmul.f32 %v1407_v17, %v1321_v60  ;;  %v1424_v44 = vpop.f32.mrf.mxu3 }
 0x2af   : > { %v1417_v31 = vpop.f32.mrf.mxu2 }
 0x2b2   : > { %v1323_v30 = vpop.f32.mrf.mxu0 }
 0x2b3   : > { %v1442_v23 = vmul.f32 %v1409_v19, %v1323_v30  ;;  %v1427_v1 = vpop.f32.mrf.mxu3 }
 0x2b5   : > { %v1455_v24 = vpack.c.bf16 %v1442_v23, %v1441_v21 }
 0x2b7   : > { %v1419_v0 = vpop.f32.mrf.mxu2 }
 0x2ba   : > { %v1326_v26 = vpop.f32.mrf.mxu0 }
 0x2bb   : > { %v1443_v28 = vmul.f32 %v1412_v20, %v1326_v26  ;;  %v1429_v4 = vpop.f32.mrf.mxu3 }
 0x2c2   : > { %v1328_v27 = vpop.f32.mrf.mxu0 }
 0x2c3   : > { %v1444_v29 = vmul.f32 %v1414_v62, %v1328_v27  ;;  %v1432_v9 = vpop.f32.mrf.mxu3 }
 0x2c5   : > { %v1456_v63 = vpack.c.bf16 %v1444_v29, %v1443_v28 }
 0x2ca   : > { %v1331_v32 = vpop.f32.mrf.mxu0 }
 0x2cb   : > { %v1445_v42 = vmul.f32 %v1417_v31, %v1331_v32  ;;  %v1434_v10 = vpop.f32.mrf.mxu3 }
 0x2d2   : > { %v1333_v39 = vpop.f32.mrf.mxu0 }
 0x2d3   : > { %v1446_v43 = vmul.f32 %v1419_v0, %v1333_v39 }
 0x2d5   : > { %v1457_v25 = vpack.c.bf16 %v1446_v43, %v1445_v42 }
 0x2da   : > { %v1336_v45 = vpop.f32.mrf.mxu0 }
 0x2db   : > { %v1447_v2 = vmul.f32 %v1422_v33, %v1336_v45 }
 0x2e2   : > { %v1338_v49 = vpop.f32.mrf.mxu0 }
 0x2e3   : > { %v1448_v50 = vmul.f32 %v1424_v44, %v1338_v49 }
 0x2e5   : > { %v1458_v53 = vpack.c.bf16 %v1448_v50, %v1447_v2 }
 0x2ea   : > { %v1341_v3 = vpop.f32.mrf.mxu0 }
 0x2eb   : > { %v1449_v56 = vmul.f32 %v1427_v1, %v1341_v3 }
 0x2f2   : > { %v1343_v5 = vpop.f32.mrf.mxu0 }
 0x2f3   : > { %v1450_v8 = vmul.f32 %v1429_v4, %v1343_v5 }
 0x2f5   : > { %v1459_v57 = vpack.c.bf16 %v1450_v8, %v1449_v56 }
 0x2fa   : > { %v1346_v40 = vpop.f32.mrf.mxu0 }
 0x2fb   : > { %v1451_v59 = vmul.f32 %v1432_v9, %v1346_v40 }
 0x302   : > { %v1348_v18 = vpop.f32.mrf.mxu0 }
 0x303   : > { %v1452_v17 = vmul.f32 %v1434_v10, %v1348_v18 }
 0x305   : > { %v1460_v60 = vpack.c.bf16 %v1452_v17, %v1451_v59 }
 0x30a   : > { %v1397_v19 = vpop.f32.mrf.mxu0 }
 0x30b   : > { %v1437_v20 = vmul.f32 %v1397_v19, %v1311_v11 }
 0x312   : > { %v1399_v30 = vpop.f32.mrf.mxu0 }
 0x313   : > { %v1438_v21 = vmul.f32 %v1399_v30, %v1313_v12 }
 0x315   : > { %v1453_v23 = vpack.c.bf16 %v1438_v21, %v1437_v20 }
 0x317   : > { %2857 = vmatmul.msk.bf16.vlgmr.msrb.gmra.mxu2 %vm1495_vm8, %v1453_v23 }
 0x31a   : > { %v1402_v26 = vpop.f32.mrf.mxu0 }
 0x31b   : > { %v1439_v27 = vmul.f32 %v1402_v26, %v1316_v15 }
 0x322   : > { %v1404_v62 = vpop.f32.mrf.mxu0 }
 0x323   : > { %v1440_v28 = vmul.f32 %v1404_v62, %v1318_v16 }
 0x325   : > { %v1454_v29 = vpack.c.bf16 %v1440_v28, %v1439_v27 }
 0x327   : > { %2858 = vmatmul.msk.bf16.gmra.mxu2 %vm1495_vm8, %v1454_v29 }
 0x337   : > { %2859 = vmatmul.msk.bf16.gmra.mxu2 %vm1495_vm8, %v1455_v24 }
 0x347   : > { %2860 = vmatmul.msk.bf16.gmra.mxu2 %vm1495_vm8, %v1456_v63 }
 0x357   : > { %2861 = vmatmul.msk.bf16.gmra.mxu2 %vm1495_vm8, %v1457_v25 }
 0x367   : > { %2862 = vmatmul.msk.bf16.gmra.mxu2 %vm1495_vm8, %v1458_v53 }
 0x377   : > { %2863 = vmatmul.msk.bf16.gmra.mxu2 %vm1495_vm8, %v1459_v57 }
 0x387   : > { %2864 = vmatmul.msk.bf16.gmra.mxu2 %vm1495_vm8, %v1460_v60 }
 0x39a   : > { %v1529_v11 = vpop.f32.mrf.mxu2 }
 0x39b   : > { %v1530_v12 = vadd.f32 %v1529_v11, %v3613_v13 }
 0x39d   : > { %v1569_v15 = vsel %vm1277_vm6, %v1530_v12, 0.0 }
 0x39e   : > { %1570 = vadd.xlane.f32.xlu0 %v1569_v15 }
 0x3a2   : > { %v1531_v16 = vpop.f32.mrf.mxu2 }
 0x3a3   : > { %v1532_v31 = vadd.f32 %v1531_v16, %v3616_v14 }
 0x3a5   : > { %v1572_v24 = vsel %vm1277_vm6, %v1532_v31, 0.0 }
 0x3a6   : > { %1573 = vadd.xlane.f32.xlu0 %v1572_v24 }
 0x3aa   : > { %v1534_v63 = vpop.f32.mrf.mxu2 }
 0x3ab   : > { %v1535_v32 = vadd.f32 %v1534_v63, %v3638_v34 }
 0x3ad   : > { %v1575_v33 = vsel %vm1277_vm6, %v1535_v32, 0.0 }
 0x3ae   : > { %1576 = vadd.xlane.f32.xlu1 %v1575_v33 }
 0x3b2   : > { %v1536_v0 = vpop.f32.mrf.mxu2 }
 0x3b3   : > { %v1537_v39 = vadd.f32 %v1536_v0, %v3641_v35 }
 0x3b5   : > { %v1578_v13 = vsel %vm1277_vm6, %v1537_v39, 0.0 }
 0x3b6   : > { %1579 = vadd.xlane.f32.xlu1 %v1578_v13 }
 0x3ba   : > { %v1539_v42 = vpop.f32.mrf.mxu2 }
 0x3bb   : > { %v1540_v43 = vadd.f32 %v1539_v42, %v3668_v51  ;;  %v3164_v51 = vmov 32.0  }
 0x3bc   : > { %3054 = vrcp.f32 %v3164_v51 }
 0x3bd   : > { %v1581_v14 = vsel %vm1277_vm6, %v1540_v43, 0.0 }
 0x3be   : > { %1582 = vadd.xlane.f32.xlu2 %v1581_v14 }
 0x3c2   : > { %v1541_v25 = vpop.f32.mrf.mxu2  ;;  %v3055_v46 = vpop.eup %3054 }
 0x3c3   : > { %v3810_v41 = vadd.f32 %v1541_v25, %v3671_v52  ;;  %v1618_v49 = vmul.f32 32.0, %v3055_v46  ;;  %vm1622_vm9 = vweird.f32 %v3055_v46 }
 0x3c5   : > { %v1584_v34 = vsel %vm1277_vm6, %v3810_v41, 0.0  ;;  %v1619_v1 = vsub.f32 1.0, %v1618_v49 }
 0x3c6   : > { %1585 = vadd.xlane.f32.xlu2 %v1584_v34 }
 0x3c7   : > { %v1620_v2 = vmul.f32 %v3055_v46, %v1619_v1 }
 0x3c9   : > { %v1621_v50 = vadd.f32 %v3055_v46, %v1620_v2 }
 0x3ca   : > { %v1544_v44 = vpop.f32.mrf.mxu2 }
 0x3cb   : > { %v3815_v35 = vadd.f32 %v1544_v44, %v3688_v58  ;;  %v3819_v53 = vsel %vm1622_vm9, %v3055_v46, %v1621_v50 }
 0x3cd   : > { %v1587_v45 = vsel %vm1277_vm6, %v3815_v35, 0.0 }
 0x3ce   : > { %1588 = vadd.xlane.f32.xlu2 %v1587_v45 }
 0x3d2   : > { %v1546_v52 = vpop.f32.mrf.mxu2 }
 0x3d3   : > { %v3829_v57 = vadd.f32 %v1546_v52, %v3691_v38  ;;  %v2922_v52 = vld [vmem:[%s4534_s8 + $0x8] sm:$0xff] }
 0x3d4   : > { %2024 = vmatpush.bf16.msrb.mxu3 %v2922_v52 }
 0x3d5   : > { %v1590_v18 = vsel %vm1277_vm6, %v3829_v57, 0.0 }
 0x3da   : > { %v1549_v55 = vpop.f32.mrf.mxu2 }
 0x3db   : > { %v3840_v19 = vadd.f32 %v1549_v55, %v3708_v61 }
 0x3dd   : > { %v1593_v20 = vsel %vm1277_vm6, %v3840_v19, 0.0 }
 0x3e2   : > { %v1551_v10 = vpop.f32.mrf.mxu2 }
 0x3e3   : > { %v3851_v27 = vadd.f32 %v1551_v10, %v3711_v22 }
 0x3e5   : > { %v1596_v29 = vsel %vm1277_vm6, %v3851_v27, 0.0 }
 0x3ea   : > { %v1554_v23 = vpop.f32.mrf.mxu2 }
 0x3f2   : > { %v1556_v16 = vpop.f32.mrf.mxu2 }
 0x3fa   : > { %v1559_v13 = vpop.f32.mrf.mxu2 }
 0x402   : > { %v1561_v45 = vpop.f32.mrf.mxu2 }
 0x403   : > { %v3896_v49 = vadd.f32 %v1561_v45, %v3747_v48  ;;  %v3940_v45 = vld [vmem:[%s4538_s12] ss:$0 sm:$0xff] }
 0x40a   : > { %v1564_v1 = vpop.f32.mrf.mxu2 }
 0x411   : > { %v1571_v54 = vpop.xlane.xlu0 %1570 }
 0x412   : > { %v1624_v3 = vmul.f32 %v3819_v53, %v1571_v54  ;;  %v2921_v54 = vld [vmem:[%s4534_s8] sm:$0xff] }
 0x413   : > { %2025 = vmatpush.bf16.msrb.mxu3 %v2921_v54 }
 0x414   : > { %v3822_v58 = vsub.f32 %v1530_v12, %v1624_v3 }
 0x416   : > { %v1656_v4 = vmul.f32 %v3822_v58, %v3822_v58 }
 0x418   : > { %v1672_v5 = vsel %vm1277_vm6, %v1656_v4, 0.0 }
 0x419   : > { %1673 = vadd.xlane.f32.xlu0 %v1672_v5  ;;  %v1574_v56 = vpop.xlane.xlu0 %1573 }
 0x41a   : > { %v1625_v8 = vmul.f32 %v3819_v53, %v1574_v56 }
 0x41c   : > { %v3831_v9 = vsub.f32 %v1532_v31, %v1625_v8  ;;  %v3862_v31 = vadd.f32 %v1554_v23, %v3728_v36 }
 0x41e   : > { %v1657_v40 = vmul.f32 %v3831_v9, %v3831_v9  ;;  %v1599_v63 = vsel %vm1277_vm6, %v3862_v31, 0.0 }
 0x420   : > { %v1675_v59 = vsel %vm1277_vm6, %v1657_v40, 0.0 }
 0x421   : > { %1591 = vadd.xlane.f32.xlu0 %v1590_v18  ;;  %1676 = vadd.xlane.f32.xlu1 %v1675_v59  ;;  %v1577_v17 = vpop.xlane.xlu1 %1576 }
 0x422   : > { %v1626_v60 = vmul.f32 %v3819_v53, %v1577_v17 }
 0x424   : > { %v3842_v38 = vsub.f32 %v1535_v32, %v1626_v60 }
 0x426   : > { %v1658_v30 = vmul.f32 %v3842_v38, %v3842_v38 }
 0x428   : > { %v1678_v21 = vsel %vm1277_vm6, %v1658_v30, 0.0 }
 0x429   : > { %1594 = vadd.xlane.f32.xlu0 %v1593_v20  ;;  %1679 = vadd.xlane.f32.xlu1 %v1678_v21  ;;  %v1580_v26 = vpop.xlane.xlu1 %1579 }
 0x42a   : > { %v1627_v62 = vmul.f32 %v3819_v53, %v1580_v26 }
 0x42c   : > { %v3853_v61 = vsub.f32 %v1537_v39, %v1627_v62  ;;  %v3873_v39 = vadd.f32 %v1556_v16, %v3731_v37  ;;  %v3885_v37 = vadd.f32 %v1559_v13, %v3744_v47  ;;  %v1608_v47 = vsel %vm1277_vm6, %v3896_v49, 0.0  ;;  %v1566_v16 = vpop.f32.mrf.mxu2 }
 0x42e   : > { %v1659_v28 = vmul.f32 %v3853_v61, %v3853_v61  ;;  %v1602_v14 = vsel %vm1277_vm6, %v3873_v39, 0.0  ;;  %v1605_v46 = vsel %vm1277_vm6, %v3885_v37, 0.0 }
 0x430   : > { %v1681_v11 = vsel %vm1277_vm6, %v1659_v28, 0.0 }
 0x431   : > { %v1583_v12 = vpop.xlane.xlu2 %1582  ;;  %1597 = vadd.xlane.f32.xlu1 %v1596_v29  ;;  %1682 = vadd.xlane.f32.xlu2 %v1681_v11 }
 0x432   : > { %v1628_v15 = vmul.f32 %v3819_v53, %v1583_v12 }
 0x434   : > { %v3864_v22 = vsub.f32 %v1540_v43, %v1628_v15 }
 0x436   : > { %v1660_v24 = vmul.f32 %v3864_v22, %v3864_v22 }
 0x438   : > { %v1684_v32 = vsel %vm1277_vm6, %v1660_v24, 0.0 }
 0x439   : > { %v1586_v33 = vpop.xlane.xlu2 %1585  ;;  %1600 = vadd.xlane.f32.xlu1 %v1599_v63  ;;  %1685 = vadd.xlane.f32.xlu2 %v1684_v32 }
 0x43a   : > { %v1629_v0 = vmul.f32 %v3819_v53, %v1586_v33 }
 0x43c   : > { %v3876_v36 = vsub.f32 %v3810_v41, %v1629_v0 }
 0x43e   : > { %v1661_v42 = vmul.f32 %v3876_v36, %v3876_v36 }
 0x440   : > { %v1687_v43 = vsel %vm1277_vm6, %v1661_v42, 0.0 }
 0x441   : > { %1688 = vadd.xlane.f32.xlu0 %v1687_v43  ;;  %v1589_v25 = vpop.xlane.xlu2 %1588  ;;  %1603 = vadd.xlane.f32.xlu2 %v1602_v14  ;;  %v3931_v14 = vadd.f32 %v1566_v16, %v3766_v7 }
 0x442   : > { %v1630_v34 = vmul.f32 %v3819_v53, %v1589_v25 }
 0x444   : > { %v3888_v41 = vsub.f32 %v3815_v35, %v1630_v34  ;;  %v3901_v35 = vadd.f32 %v1564_v1, %v3763_v6 }
 0x446   : > { %v1662_v44 = vmul.f32 %v3888_v41, %v3888_v41  ;;  %v1611_v2 = vsel %vm1277_vm6, %v3901_v35, 0.0 }
 0x448   : > { %v1690_v51 = vsel %vm1277_vm6, %v1662_v44, 0.0 }
 0x449   : > { %1691 = vadd.xlane.f32.xlu0 %v1690_v51  ;;  %1606 = vadd.xlane.f32.xlu2 %v1605_v46 }
 0x451   : > { %1609 = vadd.xlane.f32.xlu0 %v1608_v47 }
 0x459   : > { %1612 = vadd.xlane.f32.xlu0 %v1611_v2 }
 0x48c   : > { %v1674_v50 = vpop.xlane.xlu0 %1673 }
 0x48d   : > { %v1720_v48 = vmul.f32 %v1674_v50, %v3819_v53  ;;  %v3952_v50 = vld [vmem:[%s4539_s13] ss:$0 sm:$0xff] }
 0x48f   : > { %v1736_v3 = vadd.f32 1e-05, %v1720_v48 }
 0x491   : > { %3056 = vrsqrt.f32 %v1736_v3  ;;  %vm1758_vm11 = vweird.f32 %v1736_v3 }
 0x494   : > { %v1592_v6 = vpop.xlane.xlu0 %1591  ;;  %v1677_v55 = vpop.xlane.xlu1 %1676 }
 0x495   : > { %v1631_v4 = vmul.f32 %v3819_v53, %v1592_v6  ;;  %v1721_v5 = vmul.f32 %v1677_v55, %v3819_v53 }
 0x497   : > { %v3057_v56 = vpop.eup %3056  ;;  %v3915_v8 = vsub.f32 %v3829_v57, %v1631_v4  ;;  %v1737_v40 = vadd.f32 1e-05, %v1721_v5 }
 0x498   : > { %v1753_v10 = vmul.f32 %v3057_v56, %v1736_v3  ;;  %vm1759_vm10 = vweird.f32 %v3057_v56 }
 0x499   : > { %3058 = vrsqrt.f32 %v1737_v40  ;;  %v1663_v18 = vmul.f32 %v3915_v8, %v3915_v8  ;;  %vm1760_vm12 = vmor %vm1758_vm11, %vm1759_vm10  ;;  %vm1768_vm14 = vweird.f32 %v1737_v40 }
 0x49a   : > { %v1754_v59 = vmul.f32 %v3057_v56, %v1753_v10 }
 0x49b   : > { %v1693_v17 = vsel %vm1277_vm6, %v1663_v18, 0.0 }
 0x49c   : > { %v1755_v60 = vmul.f32 0.5, %v1754_v59  ;;  %v1595_v30 = vpop.xlane.xlu0 %1594  ;;  %1694 = vadd.xlane.f32.xlu1 %v1693_v17  ;;  %v1680_v20 = vpop.xlane.xlu1 %1679 }
 0x49d   : > { %v1632_v21 = vmul.f32 %v3819_v53, %v1595_v30  ;;  %v1722_v23 = vmul.f32 %v1680_v20, %v3819_v53 }
 0x49e   : > { %v1756_v26 = vsub.f32 1.5, %v1755_v60 }
 0x49f   : > { %v3059_v57 = vpop.eup %3058  ;;  %v3923_v62 = vsub.f32 %v3840_v19, %v1632_v21  ;;  %v1738_v28 = vadd.f32 1e-05, %v1722_v23 }
 0x4a0   : > { %v1757_v29 = vmul.f32 %v3057_v56, %v1756_v26  ;;  %v1763_v11 = vmul.f32 %v3059_v57, %v1737_v40  ;;  %vm1769_vm13 = vweird.f32 %v3059_v57 }
 0x4a1   : > { %3060 = vrsqrt.f32 %v1738_v28  ;;  %v1664_v12 = vmul.f32 %v3923_v62, %v3923_v62  ;;  %vm1770_vm15 = vmor %vm1768_vm14, %vm1769_vm13  ;;  %vm1778_vm1 = vweird.f32 %v1738_v28 }
 0x4a2   : > { %v1764_v15 = vmul.f32 %v3059_v57, %v1763_v11  ;;  %v1761_v63 = vsel %vm1760_vm12, %v3057_v56, %v1757_v29 }
 0x4a3   : > { %v1696_v24 = vsel %vm1277_vm6, %v1664_v12, 0.0  ;;  %v1912_v25 = vmul.f32 %v1761_v63, %v3822_v58 }
 0x4a4   : > { %v1765_v32 = vmul.f32 0.5, %v1764_v15  ;;  %1697 = vadd.xlane.f32.xlu1 %v1696_v24  ;;  %v1683_v33 = vpop.xlane.xlu2 %1682  ;;  %v1598_v19 = vpop.xlane.xlu1 %1597 }
 0x4a5   : > { %v1723_v0 = vmul.f32 %v1683_v33, %v3819_v53  ;;  %v1633_v13 = vmul.f32 %v3819_v53, %v1598_v19  ;;  %v1931_v52 = vmul.f32 %v3940_v45, %v1912_v25 }
 0x4a6   : > { %v1766_v42 = vsub.f32 1.5, %v1765_v32 }
 0x4a7   : > { %v3061_v43 = vpop.eup %3060  ;;  %v1739_v34 = vadd.f32 1e-05, %v1723_v0  ;;  %v3935_v44 = vsub.f32 %v3851_v27, %v1633_v13  ;;  %v1614_v27 = vsel %vm1277_vm6, %v3931_v14, 0.0  ;;  %v3961_v10 = vadd.f32 %v3952_v50, %v1931_v52 }
 0x4a8   : > { %v1767_v51 = vmul.f32 %v3059_v57, %v1766_v42  ;;  %v1773_v46 = vmul.f32 %v3061_v43, %v1738_v28  ;;  %vm1779_vm0 = vweird.f32 %v3061_v43 }
 0x4a9   : > { %3062 = vrsqrt.f32 %v1739_v34  ;;  %v1665_v7 = vmul.f32 %v3935_v44, %v3935_v44  ;;  %vm1780_vm2 = vmor %vm1778_vm1, %vm1779_vm0  ;;  %vm1788_vm4 = vweird.f32 %v1739_v34 }
 0x4aa   : > { %v1771_v47 = vsel %vm1770_vm15, %v3059_v57, %v1767_v51  ;;  %v1774_v1 = vmul.f32 %v3061_v43, %v1773_v46 }
 0x4ab   : > { %v1913_v58 = vmul.f32 %v1771_v47, %v3831_v9  ;;  %v1699_v2 = vsel %vm1277_vm6, %v1665_v7, 0.0 }
 0x4ac   : > { %v1775_v48 = vmul.f32 0.5, %v1774_v1  ;;  %1615 = vadd.xlane.f32.xlu1 %v1614_v27  ;;  %v1686_v54 = vpop.xlane.xlu2 %1685  ;;  %1700 = vadd.xlane.f32.xlu2 %v1699_v2  ;;  %v1601_v3 = vpop.xlane.xlu1 %1600 }
 0x4ad   : > { %v1724_v6 = vmul.f32 %v1686_v54, %v3819_v53  ;;  %v1634_v9 = vmul.f32 %v3819_v53, %v1601_v3  ;;  %v1932_v55 = vmul.f32 %v3940_v45, %v1913_v58 }
 0x4ae   : > { %v1776_v4 = vsub.f32 1.5, %v1775_v48 }
 0x4af   : > { %v3063_v5 = vpop.eup %3062  ;;  %v1740_v56 = vadd.f32 1e-05, %v1724_v6  ;;  %v3958_v40 = vsub.f32 %v3862_v31, %v1634_v9  ;;  %v3964_v18 = vadd.f32 %v3952_v50, %v1932_v55 }
 0x4b0   : > { %v1777_v59 = vmul.f32 %v3061_v43, %v1776_v4  ;;  %v1783_v17 = vmul.f32 %v3063_v5, %v1739_v34  ;;  %vm1789_vm3 = vweird.f32 %v3063_v5 }
 0x4b1   : > { %3064 = vrsqrt.f32 %v1740_v56  ;;  %v1966_v60 = vpack.c.bf16 %v3964_v18, %v3961_v10  ;;  %v1666_v30 = vmul.f32 %v3958_v40, %v3958_v40  ;;  %vm1790_vm5 = vmor %vm1788_vm4, %vm1789_vm3  ;;  %vm1798_vm9 = vweird.f32 %v1740_v56 }
 0x4b2   : > { %v1784_v20 = vmul.f32 %v3063_v5, %v1783_v17  ;;  %v1781_v21 = vsel %vm1780_vm2, %v3061_v43, %v1777_v59 }
 0x4b3   : > { %2873 = vmatmul.msk.bf16.vlgmr.msrb.gmra.mxu3 %vm1277_vm6, %v1966_v60  ;;  %v1702_v31 = vsel %vm1277_vm6, %v1666_v30, 0.0  ;;  %v1914_v28 = vmul.f32 %v1781_v21, %v3842_v38 }
 0x4b4   : > { %v1785_v23 = vmul.f32 0.5, %v1784_v20  ;;  %v1689_v26 = vpop.xlane.xlu0 %1688  ;;  %v1604_v57 = vpop.xlane.xlu2 %1603  ;;  %1703 = vadd.xlane.f32.xlu2 %v1702_v31 }
 0x4b5   : > { %v1725_v29 = vmul.f32 %v1689_v26, %v3819_v53  ;;  %v1635_v11 = vmul.f32 %v3819_v53, %v1604_v57  ;;  %v1933_v38 = vmul.f32 %v3940_v45, %v1914_v28 }
 0x4b6   : > { %v1786_v12 = vsub.f32 1.5, %v1785_v23 }
 0x4b7   : > { %v3065_v15 = vpop.eup %3064  ;;  %v1741_v16 = vadd.f32 1e-05, %v1725_v29  ;;  %v3976_v24 = vsub.f32 %v3873_v39, %v1635_v11  ;;  %v3989_v1 = vadd.f32 %v3952_v50, %v1933_v38  ;;  %v2925_v38 = vld [vmem:[%s4554_s29 + $0x10] sm:$0xff] }
 0x4b8   : > { %v1787_v63 = vmul.f32 %v3063_v5, %v1786_v12  ;;  %v1793_v32 = vmul.f32 %v3065_v15, %v1740_v56  ;;  %vm1799_vm7 = vweird.f32 %v3065_v15 }
 0x4b9   : > { %3066 = vrsqrt.f32 %v1741_v16  ;;  %v1667_v33 = vmul.f32 %v3976_v24, %v3976_v24  ;;  %vm1800_vm10 = vmor %vm1798_vm9, %vm1799_vm7  ;;  %vm1808_vm12 = vweird.f32 %v1741_v16 }
 0x4ba   : > { %v1791_v19 = vsel %vm1790_vm5, %v3063_v5, %v1787_v63  ;;  %v1794_v0 = vmul.f32 %v3065_v15, %v1793_v32 }
 0x4bb   : > { %v1915_v13 = vmul.f32 %v1791_v19, %v3853_v61  ;;  %v1705_v42 = vsel %vm1277_vm6, %v1667_v33, 0.0  ;;  %v2926_v19 = vld [vmem:[%s4554_s29 + $0x18] sm:$0xff] }
 0x4bc   : > { %v1795_v43 = vmul.f32 0.5, %v1794_v0  ;;  %v1692_v25 = vpop.xlane.xlu0 %1691  ;;  %1706 = vadd.xlane.f32.xlu0 %v1705_v42  ;;  %v1607_v39 = vpop.xlane.xlu2 %1606  ;;  %2155 = vmatpush.bf16.msrb.mxu1 %v2926_v19 }
 0x4bd   : > { %v1636_v34 = vmul.f32 %v3819_v53, %v1607_v39  ;;  %v1934_v51 = vmul.f32 %v3940_v45, %v1915_v13 }
 0x4be   : > { %v1796_v46 = vsub.f32 1.5, %v1795_v43 }
 0x4bf   : > { %v3067_v7 = vpop.eup %3066  ;;  %v3986_v47 = vsub.f32 %v3885_v37, %v1636_v34  ;;  %v3992_v61 = vadd.f32 %v3952_v50, %v1934_v51  ;;  %v2924_v51 = vld [vmem:[%s4554_s29 + $0x8] sm:$0xff] }
 0x4c0   : > { %v1797_v58 = vmul.f32 %v3065_v15, %v1796_v46  ;;  %v1803_v27 = vmul.f32 %v3067_v7, %v1741_v16  ;;  %vm1809_vm11 = vweird.f32 %v3067_v7  ;;  %2156 = vmatpush.bf16.msrb.mxu1 %v2925_v38 }
 0x4c1   : > { %v1967_v2 = vpack.c.bf16 %v3992_v61, %v3989_v1  ;;  %v1668_v52 = vmul.f32 %v3986_v47, %v3986_v47  ;;  %vm1810_vm13 = vmor %vm1808_vm12, %vm1809_vm11 }
 0x4c2   : > { %v1804_v48 = vmul.f32 %v3067_v7, %v1803_v27  ;;  %v1801_v54 = vsel %vm1800_vm10, %v3065_v15, %v1797_v58 }
 0x4c3   : > { %2874 = vmatmul.msk.bf16.gmra.mxu3 %vm1277_vm6, %v1967_v2  ;;  %v1708_v37 = vsel %vm1277_vm6, %v1668_v52, 0.0  ;;  %v1916_v4 = vmul.f32 %v1801_v54, %v3864_v22 }
 0x4c4   : > { %v1805_v3 = vmul.f32 0.5, %v1804_v48  ;;  %v1610_v6 = vpop.xlane.xlu0 %1609  ;;  %1709 = vadd.xlane.f32.xlu1 %v1708_v37  ;;  %2157 = vmatpush.bf16.msrb.mxu1 %v2924_v51  ;;  %v2923_v37 = vld [vmem:[%s4554_s29] sm:$0xff] }
 0x4c5   : > { %v1637_v9 = vmul.f32 %v3819_v53, %v1610_v6  ;;  %v1935_v20 = vmul.f32 %v3940_v45, %v1916_v4 }
 0x4c6   : > { %v1806_v55 = vsub.f32 1.5, %v1805_v3 }
 0x4c7   : > { %v4003_v5 = vsub.f32 %v3896_v49, %v1637_v9  ;;  %v4016_v23 = vadd.f32 %v3952_v50, %v1935_v20 }
 0x4c8   : > { %v1807_v56 = vmul.f32 %v3067_v7, %v1806_v55  ;;  %2158 = vmatpush.bf16.msrb.mxu1 %v2923_v37 }
 0x4c9   : > { %v1669_v59 = vmul.f32 %v4003_v5, %v4003_v5 }
 0x4ca   : > { %v1811_v17 = vsel %vm1810_vm13, %v3067_v7, %v1807_v56 }
 0x4cb   : > { %v1917_v60 = vmul.f32 %v1811_v17, %v3876_v36  ;;  %v1711_v30 = vsel %vm1277_vm6, %v1669_v59, 0.0 }
 0x4cc   : > { %v1613_v31 = vpop.xlane.xlu0 %1612  ;;  %1712 = vadd.xlane.f32.xlu2 %v1711_v30 }
 0x4cd   : > { %v1638_v22 = vmul.f32 %v3819_v53, %v1613_v31  ;;  %v1936_v49 = vmul.f32 %v3940_v45, %v1917_v60 }
 0x4cf   : > { %v4013_v21 = vsub.f32 %v3901_v35, %v1638_v22  ;;  %v4019_v26 = vadd.f32 %v3952_v50, %v1936_v49  ;;  %v1726_v35 = vmul.f32 %v1692_v25, %v3819_v53 }
 0x4d1   : > { %v1968_v36 = vpack.c.bf16 %v4019_v26, %v4016_v23  ;;  %v1670_v57 = vmul.f32 %v4013_v21, %v4013_v21  ;;  %v1742_v11 = vadd.f32 1e-05, %v1726_v35 }
 0x4d3   : > { %2875 = vmatmul.msk.bf16.gmra.mxu3 %vm1277_vm6, %v1968_v36  ;;  %v1714_v29 = vsel %vm1277_vm6, %v1670_v57, 0.0  ;;  %3068 = vrsqrt.f32 %v1742_v11  ;;  %vm1818_vm15 = vweird.f32 %v1742_v11 }
 0x4d4   : > { %1715 = vadd.xlane.f32.xlu0 %v1714_v29 }
 0x4d9   : > { %v3069_v12 = vpop.eup %3068 }
 0x4da   : > { %v1813_v15 = vmul.f32 %v3069_v12, %v1742_v11  ;;  %vm1819_vm14 = vweird.f32 %v3069_v12 }
 0x4db   : > { %vm1820_vm0 = vmor %vm1818_vm15, %vm1819_vm14 }
 0x4dc   : > { %v1814_v28 = vmul.f32 %v3069_v12, %v1813_v15 }
 0x4de   : > { %v1815_v33 = vmul.f32 0.5, %v1814_v28 }
 0x4e0   : > { %v1816_v0 = vsub.f32 1.5, %v1815_v33 }
 0x4e2   : > { %v1817_v39 = vmul.f32 %v3069_v12, %v1816_v0 }
 0x4e4   : > { %v1821_v7 = vsel %vm1820_vm0, %v3069_v12, %v1817_v39 }
 0x4e5   : > { %v1918_v6 = vmul.f32 %v1821_v7, %v3888_v41 }
 0x4e7   : > { %v1937_v41 = vmul.f32 %v3940_v45, %v1918_v6 }
 0x4e9   : > { %v4056_v35 = vadd.f32 %v3952_v50, %v1937_v41 }
 0x50f   : > { %v1695_v16 = vpop.xlane.xlu1 %1694 }
 0x510   : > { %v1727_v63 = vmul.f32 %v1695_v16, %v3819_v53 }
 0x512   : > { %v1743_v32 = vadd.f32 1e-05, %v1727_v63 }
 0x514   : > { %3070 = vrsqrt.f32 %v1743_v32  ;;  %vm1828_vm2 = vweird.f32 %v1743_v32 }
 0x517   : > { %v1698_v13 = vpop.xlane.xlu1 %1697 }
 0x518   : > { %v1728_v42 = vmul.f32 %v1698_v13, %v3819_v53 }
 0x51a   : > { %v3071_v43 = vpop.eup %3070  ;;  %v1744_v25 = vadd.f32 1e-05, %v1728_v42 }
 0x51b   : > { %v1823_v34 = vmul.f32 %v3071_v43, %v1743_v32  ;;  %vm1829_vm1 = vweird.f32 %v3071_v43 }
 0x51c   : > { %3072 = vrsqrt.f32 %v1744_v25  ;;  %vm1830_vm3 = vmor %vm1828_vm2, %vm1829_vm1  ;;  %vm1838_vm5 = vweird.f32 %v1744_v25 }
 0x51d   : > { %v1824_v46 = vmul.f32 %v3071_v43, %v1823_v34 }
 0x51f   : > { %v1825_v58 = vmul.f32 0.5, %v1824_v46  ;;  %v1701_v27 = vpop.xlane.xlu2 %1700  ;;  %v1616_v2 = vpop.xlane.xlu1 %1615 }
 0x520   : > { %v1729_v52 = vmul.f32 %v1701_v27, %v3819_v53  ;;  %v1639_v48 = vmul.f32 %v3819_v53, %v1616_v2 }
 0x521   : > { %v1826_v54 = vsub.f32 1.5, %v1825_v58 }
 0x522   : > { %v3073_v3 = vpop.eup %3072  ;;  %v1745_v9 = vadd.f32 1e-05, %v1729_v52  ;;  %v4046_v55 = vsub.f32 %v3931_v14, %v1639_v48  ;;  %v4073_v52 = vld [vmem:[%s4555_s23] ss:$0 sm:$0xff] }
 0x523   : > { %v1827_v4 = vmul.f32 %v3071_v43, %v1826_v54  ;;  %v1833_v56 = vmul.f32 %v3073_v3, %v1744_v25  ;;  %vm1839_vm4 = vweird.f32 %v3073_v3 }
 0x524   : > { %3074 = vrsqrt.f32 %v1745_v9  ;;  %v1671_v59 = vmul.f32 %v4046_v55, %v4046_v55  ;;  %vm1840_vm7 = vmor %vm1838_vm5, %vm1839_vm4  ;;  %vm1848_vm10 = vweird.f32 %v1745_v9 }
 0x525   : > { %v1831_v17 = vsel %vm1830_vm3, %v3071_v43, %v1827_v4  ;;  %v1834_v60 = vmul.f32 %v3073_v3, %v1833_v56 }
 0x526   : > { %v1919_v30 = vmul.f32 %v1831_v17, %v3915_v8  ;;  %v1717_v20 = vsel %vm1277_vm6, %v1671_v59, 0.0 }
 0x527   : > { %v1835_v31 = vmul.f32 0.5, %v1834_v60  ;;  %v1704_v14 = vpop.xlane.xlu2 %1703  ;;  %1718 = vadd.xlane.f32.xlu1 %v1717_v20 }
 0x528   : > { %v1730_v22 = vmul.f32 %v1704_v14, %v3819_v53  ;;  %v1938_v49 = vmul.f32 %v3940_v45, %v1919_v30 }
 0x529   : > { %v1836_v36 = vsub.f32 1.5, %v1835_v31 }
 0x52a   : > { %v3075_v57 = vpop.eup %3074  ;;  %v1746_v29 = vadd.f32 1e-05, %v1730_v22  ;;  %v4059_v11 = vadd.f32 %v3952_v50, %v1938_v49 }
 0x52b   : > { %v1837_v8 = vmul.f32 %v3073_v3, %v1836_v36  ;;  %v1843_v12 = vmul.f32 %v3075_v57, %v1745_v9  ;;  %vm1849_vm9 = vweird.f32 %v3075_v57 }
 0x52c   : > { %3076 = vrsqrt.f32 %v1746_v29  ;;  %v1969_v15 = vpack.c.bf16 %v4059_v11, %v4056_v35  ;;  %vm1850_vm11 = vmor %vm1848_vm10, %vm1849_vm9  ;;  %vm1858_vm13 = vweird.f32 %v1746_v29 }
 0x52d   : > { %v1844_v28 = vmul.f32 %v3075_v57, %v1843_v12  ;;  %v1841_v16 = vsel %vm1840_vm7, %v3073_v3, %v1837_v8 }
 0x52e   : > { %2876 = vmatmul.msk.bf16.gmra.mxu3 %vm1277_vm6, %v1969_v15  ;;  %v1920_v13 = vmul.f32 %v1841_v16, %v3923_v62 }
 0x52f   : > { %v1845_v63 = vmul.f32 0.5, %v1844_v28  ;;  %v1707_v32 = vpop.xlane.xlu0 %1706 }
 0x530   : > { %v1731_v33 = vmul.f32 %v1707_v32, %v3819_v53  ;;  %v1939_v46 = vmul.f32 %v3940_v45, %v1920_v13 }
 0x531   : > { %v1846_v19 = vsub.f32 1.5, %v1845_v63 }
 0x532   : > { %v3077_v0 = vpop.eup %3076  ;;  %v1747_v42 = vadd.f32 1e-05, %v1731_v33  ;;  %v4076_v54 = vadd.f32 %v3952_v50, %v1939_v46 }
 0x533   : > { %v1847_v38 = vmul.f32 %v3075_v57, %v1846_v19  ;;  %v1853_v43 = vmul.f32 %v3077_v0, %v1746_v29  ;;  %vm1859_vm12 = vweird.f32 %v3077_v0 }
 0x534   : > { %3078 = vrsqrt.f32 %v1747_v42  ;;  %vm1860_vm14 = vmor %vm1858_vm13, %vm1859_vm12  ;;  %vm1868_vm0 = vweird.f32 %v1747_v42 }
 0x535   : > { %v1851_v25 = vsel %vm1850_vm11, %v3075_v57, %v1847_v38  ;;  %v1854_v39 = vmul.f32 %v3077_v0, %v1853_v43 }
 0x536   : > { %v1921_v34 = vmul.f32 %v1851_v25, %v3935_v44  ;;  %v2027_v51 = vpop.f32.mrf.mxu3 }
 0x537   : > { %v1855_v7 = vmul.f32 0.5, %v1854_v39  ;;  %v1710_v58 = vpop.xlane.xlu1 %1709  ;;  %v2028_v56 = vadd.f32 %v4073_v52, %v2027_v51 }
 0x538   : > { %v1732_v27 = vmul.f32 %v1710_v58, %v3819_v53  ;;  %v1940_v2 = vmul.f32 %v3940_v45, %v1921_v34 }
 0x539   : > { %v1856_v62 = vsub.f32 1.5, %v1855_v7  ;;  %v2067_v14 = vmax.f32 %v2028_v56, 0.0 }
 0x53a   : > { %v3079_v48 = vpop.eup %3078  ;;  %v1748_v37 = vadd.f32 1e-05, %v1732_v27  ;;  %v4079_v44 = vadd.f32 %v3952_v50, %v1940_v2 }
 0x53b   : > { %v1857_v3 = vmul.f32 %v3077_v0, %v1856_v62  ;;  %v1863_v6 = vmul.f32 %v3079_v48, %v1747_v42  ;;  %vm1869_vm15 = vweird.f32 %v3079_v48 }
 0x53c   : > { %3080 = vrsqrt.f32 %v1748_v37  ;;  %v1970_v9 = vpack.c.bf16 %v4079_v44, %v4076_v54  ;;  %vm1870_vm1 = vmor %vm1868_vm0, %vm1869_vm15  ;;  %vm1878_vm3 = vweird.f32 %v1748_v37 }
 0x53d   : > { %v1864_v4 = vmul.f32 %v3079_v48, %v1863_v6  ;;  %v1861_v17 = vsel %vm1860_vm14, %v3077_v0, %v1857_v3 }
 0x53e   : > { %v2029_v59 = vpop.f32.mrf.mxu3  ;;  %2877 = vmatmul.msk.bf16.gmra.mxu3 %vm1277_vm6, %v1970_v9  ;;  %v1922_v36 = vmul.f32 %v1861_v17, %v3958_v40 }
 0x53f   : > { %v1865_v60 = vmul.f32 0.5, %v1864_v4  ;;  %v2030_v30 = vadd.f32 %v4073_v52, %v2029_v59  ;;  %v1713_v20 = vpop.xlane.xlu2 %1712 }
 0x540   : > { %v1733_v41 = vmul.f32 %v1713_v20, %v3819_v53  ;;  %v1941_v32 = vmul.f32 %v3940_v45, %v1922_v36 }
 0x541   : > { %v1866_v31 = vsub.f32 1.5, %v1865_v60  ;;  %v2068_v22 = vmax.f32 %v2030_v30, 0.0 }
 0x542   : > { %v3081_v49 = vpop.eup %3080  ;;  %v1749_v57 = vadd.f32 1e-05, %v1733_v41  ;;  %v4093_v13 = vadd.f32 %v3952_v50, %v1941_v32 }
 0x543   : > { %v1867_v29 = vmul.f32 %v3079_v48, %v1866_v31  ;;  %v1873_v8 = vmul.f32 %v3081_v49, %v1748_v37  ;;  %v2083_v12 = vpack.c.bf16 %v2068_v22, %v2067_v14  ;;  %vm1879_vm2 = vweird.f32 %v3081_v49 }
 0x544   : > { %3082 = vrsqrt.f32 %v1749_v57  ;;  %vm1880_vm4 = vmor %vm1878_vm3, %vm1879_vm2  ;;  %vm1888_vm7 = vweird.f32 %v1749_v57 }
 0x545   : > { %v1871_v15 = vsel %vm1870_vm1, %v3079_v48, %v1867_v29  ;;  %v1874_v28 = vmul.f32 %v3081_v49, %v1873_v8  ;;  %2897 = vmatmul.msk.bf16.vlgmr.msrb.gmra.mxu1 %vm1495_vm8, %v2083_v12 }
 0x546   : > { %v1923_v16 = vmul.f32 %v1871_v15, %v3976_v24  ;;  %v2032_v63 = vpop.f32.mrf.mxu3 }
 0x547   : > { %v1875_v33 = vmul.f32 0.5, %v1874_v28  ;;  %v2033_v39 = vadd.f32 %v4073_v52, %v2032_v63  ;;  %v1716_v14 = vpop.xlane.xlu0 %1715 }
 0x548   : > { %v1942_v19 = vmul.f32 %v3940_v45, %v1923_v16  ;;  %v1734_v22 = vmul.f32 %v1716_v14, %v3819_v53 }
 0x549   : > { %v1876_v40 = vsub.f32 1.5, %v1875_v33  ;;  %v2069_v27 = vmax.f32 %v2033_v39, 0.0 }
 0x54a   : > { %v3083_v0 = vpop.eup %3082  ;;  %v4096_v42 = vadd.f32 %v3952_v50, %v1942_v19 }
 0x54b   : > { %v1877_v38 = vmul.f32 %v3081_v49, %v1876_v40  ;;  %v1883_v43 = vmul.f32 %v3083_v0, %v1749_v57  ;;  %vm1889_vm5 = vweird.f32 %v3083_v0 }
 0x54c   : > { %v1971_v24 = vpack.c.bf16 %v4096_v42, %v4093_v13  ;;  %vm1890_vm9 = vmor %vm1888_vm7, %vm1889_vm5 }
 0x54d   : > { %v1884_v25 = vmul.f32 %v3083_v0, %v1883_v43  ;;  %v1881_v51 = vsel %vm1880_vm4, %v3081_v49, %v1877_v38  ;;  %v1750_v49 = vadd.f32 1e-05, %v1734_v22 }
 0x54e   : > { %v2034_v34 = vpop.f32.mrf.mxu3  ;;  %2878 = vmatmul.msk.bf16.gmra.mxu3 %vm1277_vm6, %v1971_v24  ;;  %v1924_v62 = vmul.f32 %v1881_v51, %v3986_v47 }
 0x54f   : > { %v1885_v46 = vmul.f32 0.5, %v1884_v25  ;;  %v2035_v7 = vadd.f32 %v4073_v52, %v2034_v34  ;;  %3084 = vrsqrt.f32 %v1750_v49  ;;  %vm1898_vm11 = vweird.f32 %v1750_v49 }
 0x550   : > { %v1943_v4 = vmul.f32 %v3940_v45, %v1924_v62 }
 0x551   : > { %v1886_v58 = vsub.f32 1.5, %v1885_v46  ;;  %v2070_v2 = vmax.f32 %v2035_v7, 0.0 }
 0x552   : > { %v4109_v59 = vadd.f32 %v3952_v50, %v1943_v4 }
 0x553   : > { %v1887_v48 = vmul.f32 %v3083_v0, %v1886_v58  ;;  %v2084_v37 = vpack.c.bf16 %v2070_v2, %v2069_v27 }
 0x555   : > { %v1891_v3 = vsel %vm1890_vm9, %v3083_v0, %v1887_v48  ;;  %2898 = vmatmul.msk.bf16.gmra.mxu1 %vm1495_vm8, %v2084_v37  ;;  %v3085_v36 = vpop.eup %3084 }
 0x556   : > { %v1925_v6 = vmul.f32 %v1891_v3, %v4003_v5  ;;  %v2037_v9 = vpop.f32.mrf.mxu3  ;;  %v1893_v57 = vmul.f32 %v3085_v36, %v1750_v49  ;;  %vm1899_vm10 = vweird.f32 %v3085_v36 }
 0x557   : > { %v2038_v60 = vadd.f32 %v4073_v52, %v2037_v9  ;;  %vm1900_vm12 = vmor %vm1898_vm11, %vm1899_vm10 }
 0x558   : > { %v1944_v56 = vmul.f32 %v3940_v45, %v1925_v6  ;;  %v1894_v29 = vmul.f32 %v3085_v36, %v1893_v57 }
 0x559   : > { %v2071_v20 = vmax.f32 %v2038_v60, 0.0 }
 0x55a   : > { %v4112_v17 = vadd.f32 %v3952_v50, %v1944_v56  ;;  %v1895_v28 = vmul.f32 0.5, %v1894_v29 }
 0x55c   : > { %v1972_v47 = vpack.c.bf16 %v4112_v17, %v4109_v59  ;;  %v1896_v16 = vsub.f32 1.5, %v1895_v28 }
 0x55e   : > { %v2039_v30 = vpop.f32.mrf.mxu3  ;;  %2879 = vmatmul.msk.bf16.gmra.mxu3 %vm1277_vm6, %v1972_v47  ;;  %v1897_v32 = vmul.f32 %v3085_v36, %v1896_v16 }
 0x55f   : > { %v2040_v5 = vadd.f32 %v4073_v52, %v2039_v30 }
 0x560   : > { %v1901_v40 = vsel %vm1900_vm12, %v3085_v36, %v1897_v32 }
 0x561   : > { %v2072_v41 = vmax.f32 %v2040_v5, 0.0  ;;  %v1926_v43 = vmul.f32 %v1901_v40, %v4013_v21 }
 0x563   : > { %v2085_v31 = vpack.c.bf16 %v2072_v41, %v2071_v20  ;;  %v1945_v51 = vmul.f32 %v3940_v45, %v1926_v43 }
 0x565   : > { %2899 = vmatmul.msk.bf16.gmra.mxu1 %vm1495_vm8, %v2085_v31  ;;  %v4127_v7 = vadd.f32 %v3952_v50, %v1945_v51 }
 0x59a   : > { %v1719_v8 = vpop.xlane.xlu1 %1718 }
 0x59b   : > { %v1735_v12 = vmul.f32 %v1719_v8, %v3819_v53 }
 0x59d   : > { %v1751_v15 = vadd.f32 1e-05, %v1735_v12 }
 0x59f   : > { %3086 = vrsqrt.f32 %v1751_v15  ;;  %vm1908_vm14 = vweird.f32 %v1751_v15 }
 0x5a5   : > { %v3087_v63 = vpop.eup %3086 }
 0x5a6   : > { %v1903_v33 = vmul.f32 %v3087_v63, %v1751_v15  ;;  %vm1909_vm13 = vweird.f32 %v3087_v63 }
 0x5a7   : > { %vm1910_vm15 = vmor %vm1908_vm14, %vm1909_vm13 }
 0x5a8   : > { %v1904_v19 = vmul.f32 %v3087_v63, %v1903_v33 }
 0x5aa   : > { %v1905_v0 = vmul.f32 0.5, %v1904_v19 }
 0x5ac   : > { %v1906_v38 = vsub.f32 1.5, %v1905_v0 }
 0x5ae   : > { %v1907_v24 = vmul.f32 %v3087_v63, %v1906_v38 }
 0x5b0   : > { %v1911_v25 = vsel %vm1910_vm15, %v3087_v63, %v1907_v24 }
 0x5b1   : > { %v1927_v39 = vmul.f32 %v1911_v25, %v4046_v55  ;;  %v2042_v34 = vpop.f32.mrf.mxu3 }
 0x5b2   : > { %v2043_v27 = vadd.f32 %v4073_v52, %v2042_v34 }
 0x5b3   : > { %v1946_v46 = vmul.f32 %v3940_v45, %v1927_v39  ;;  %v4140_v45 = vld [vmem:[%s4556_s16] ss:$0 sm:$0xff] }
 0x5b4   : > { %v2073_v62 = vmax.f32 %v2043_v27, 0.0 }
 0x5b5   : > { %v4130_v58 = vadd.f32 %v3952_v50, %v1946_v46 }
 0x5b7   : > { %v1973_v21 = vpack.c.bf16 %v4130_v58, %v4127_v7 }
 0x5b9   : > { %v2044_v2 = vpop.f32.mrf.mxu3  ;;  %2880 = vmatmul.msk.bf16.gmra.mxu3 %vm1277_vm6, %v1973_v21 }
 0x5ba   : > { %v2045_v55 = vadd.f32 %v4073_v52, %v2044_v2 }
 0x5bc   : > { %v2074_v48 = vmax.f32 %v2045_v55, 0.0 }
 0x5be   : > { %v2086_v37 = vpack.c.bf16 %v2074_v48, %v2073_v62 }
 0x5c0   : > { %2900 = vmatmul.msk.bf16.gmra.mxu1 %vm1495_vm8, %v2086_v37 }
 0x5c1   : > { %v2047_v50 = vpop.f32.mrf.mxu3 }
 0x5c2   : > { %v2160_v3 = vpop.f32.mrf.mxu1  ;;  %v2048_v56 = vadd.f32 %v4073_v52, %v2047_v50 }
 0x5c3   : > { %v2161_v6 = vadd.f32 %v4140_v45, %v2160_v3 }
 0x5c4   : > { %v2075_v20 = vmax.f32 %v2048_v56, 0.0 }
 0x5c5   : > { %v4145_v9 = vadd.f32 %v2161_v6, %v3961_v10 }
 0x5c7   : > { %v2216_v4 = vsel %vm1277_vm6, %v4145_v9, 0.0 }
 0x5c8   : > { %2217 = vadd.xlane.f32.xlu2 %v2216_v4 }
 0x5c9   : > { %v2049_v47 = vpop.f32.mrf.mxu3 }
 0x5ca   : > { %v2050_v60 = vadd.f32 %v4073_v52, %v2049_v47  ;;  %v2162_v30 = vpop.f32.mrf.mxu1 }
 0x5cb   : > { %v2163_v5 = vadd.f32 %v4140_v45, %v2162_v30 }
 0x5cc   : > { %v2076_v41 = vmax.f32 %v2050_v60, 0.0 }
 0x5cd   : > { %v4153_v31 = vadd.f32 %v2163_v5, %v3964_v18 }
 0x5ce   : > { %v2087_v14 = vpack.c.bf16 %v2076_v41, %v2075_v20 }
 0x5cf   : > { %v2219_v10 = vsel %vm1277_vm6, %v4153_v31, 0.0 }
 0x5d0   : > { %2220 = vadd.xlane.f32.xlu0 %v2219_v10  ;;  %2901 = vmatmul.msk.bf16.gmra.mxu1 %vm1495_vm8, %v2087_v14 }
 0x5d1   : > { %v2052_v22 = vpop.f32.mrf.mxu3 }
 0x5d2   : > { %v2165_v49 = vpop.f32.mrf.mxu1  ;;  %v2053_v18 = vadd.f32 %v4073_v52, %v2052_v22 }
 0x5d3   : > { %v2166_v36 = vadd.f32 %v4140_v45, %v2165_v49 }
 0x5d4   : > { %v2077_v16 = vmax.f32 %v2053_v18, 0.0 }
 0x5d5   : > { %v4160_v57 = vadd.f32 %v2166_v36, %v3989_v1 }
 0x5d7   : > { %v2222_v29 = vsel %vm1277_vm6, %v4160_v57, 0.0 }
 0x5d8   : > { %2223 = vadd.xlane.f32.xlu1 %v2222_v29 }
 0x5d9   : > { %v2054_v8 = vpop.f32.mrf.mxu3 }
 0x5da   : > { %v2055_v12 = vadd.f32 %v4073_v52, %v2054_v8  ;;  %v2167_v15 = vpop.f32.mrf.mxu1 }
 0x5db   : > { %v2168_v28 = vadd.f32 %v4140_v45, %v2167_v15 }
 0x5dc   : > { %v2078_v63 = vmax.f32 %v2055_v12, 0.0 }
 0x5dd   : > { %v4168_v32 = vadd.f32 %v2168_v28, %v3992_v61 }
 0x5de   : > { %v2088_v33 = vpack.c.bf16 %v2078_v63, %v2077_v16 }
 0x5df   : > { %v2225_v1 = vsel %vm1277_vm6, %v4168_v32, 0.0 }
 0x5e0   : > { %2226 = vadd.xlane.f32.xlu2 %v2225_v1  ;;  %2902 = vmatmul.msk.bf16.gmra.mxu1 %vm1495_vm8, %v2088_v33 }
 0x5e1   : > { %v2057_v19 = vpop.f32.mrf.mxu3 }
 0x5e2   : > { %v2170_v40 = vpop.f32.mrf.mxu1  ;;  %v2058_v61 = vadd.f32 %v4073_v52, %v2057_v19 }
 0x5e3   : > { %v2171_v0 = vadd.f32 %v4140_v45, %v2170_v40 }
 0x5e4   : > { %v2079_v51 = vmax.f32 %v2058_v61, 0.0 }
 0x5e5   : > { %v4175_v38 = vadd.f32 %v2171_v0, %v4016_v23 }
 0x5e7   : > { %v2228_v43 = vsel %vm1277_vm6, %v4175_v38, 0.0 }
 0x5e8   : > { %2229 = vadd.xlane.f32.xlu0 %v2228_v43 }
 0x5e9   : > { %v2059_v24 = vpop.f32.mrf.mxu3 }
 0x5ea   : > { %v2060_v25 = vadd.f32 %v4073_v52, %v2059_v24  ;;  %v2172_v39 = vpop.f32.mrf.mxu1 }
 0x5eb   : > { %v2173_v34 = vadd.f32 %v4140_v45, %v2172_v39 }
 0x5ec   : > { %v2080_v46 = vmax.f32 %v2060_v25, 0.0 }
 0x5ed   : > { %v4183_v21 = vadd.f32 %v2173_v34, %v4019_v26 }
 0x5ee   : > { %v2089_v27 = vpack.c.bf16 %v2080_v46, %v2079_v51 }
 0x5ef   : > { %v2231_v23 = vsel %vm1277_vm6, %v4183_v21, 0.0 }
 0x5f0   : > { %2232 = vadd.xlane.f32.xlu1 %v2231_v23  ;;  %2903 = vmatmul.msk.bf16.gmra.mxu1 %vm1495_vm8, %v2089_v27 }
 0x63b   : > { %v2218_v63 = vpop.xlane.xlu2 %2217 }
 0x63c   : > { %v2062_v2 = vpop.f32.mrf.mxu3  ;;  %v2264_v1 = vmul.f32 %v2218_v63, %v3819_v53 }
 0x63d   : > { %v2175_v55 = vpop.f32.mrf.mxu1  ;;  %v2063_v50 = vadd.f32 %v4073_v52, %v2062_v2 }
 0x63e   : > { %v2176_v62 = vadd.f32 %v4140_v45, %v2175_v55  ;;  %v4233_v40 = vsub.f32 %v4145_v9, %v2264_v1 }
 0x63f   : > { %v2081_v56 = vmax.f32 %v2063_v50, 0.0 }
 0x640   : > { %v2206_v48 = vadd.f32 %v2176_v62, %v4056_v35  ;;  %v2296_v61 = vmul.f32 %v4233_v40, %v4233_v40 }
 0x642   : > { %v2234_v37 = vsel %vm1277_vm6, %v2206_v48, 0.0  ;;  %v2312_v25 = vsel %vm1277_vm6, %v2296_v61, 0.0 }
 0x643   : > { %2235 = vadd.xlane.f32.xlu2 %v2234_v37  ;;  %v2221_v27 = vpop.xlane.xlu0 %2220 }
 0x644   : > { %v2064_v26 = vpop.f32.mrf.mxu3  ;;  %v2265_v55 = vmul.f32 %v2221_v27, %v3819_v53 }
 0x645   : > { %v2065_v3 = vadd.f32 %v4073_v52, %v2064_v26  ;;  %v2177_v6 = vpop.f32.mrf.mxu1 }
 0x646   : > { %v2178_v4 = vadd.f32 %v4140_v45, %v2177_v6 }
 0x647   : > { %v2082_v47 = vmax.f32 %v2065_v3, 0.0 }
 0x648   : > { %v4195_v60 = vadd.f32 %v2178_v4, %v4059_v11 }
 0x649   : > { %v2090_v30 = vpack.c.bf16 %v2082_v47, %v2081_v56 }
 0x64a   : > { %v2237_v35 = vsel %vm1277_vm6, %v4195_v60, 0.0 }
 0x64b   : > { %2238 = vadd.xlane.f32.xlu0 %v2237_v35  ;;  %2904 = vmatmul.msk.bf16.gmra.mxu1 %vm1495_vm8, %v2090_v30  ;;  %v2224_v50 = vpop.xlane.xlu1 %2223 }
 0x64c   : > { %v2266_v56 = vmul.f32 %v2224_v50, %v3819_v53 }
 0x64d   : > { %v2180_v5 = vpop.f32.mrf.mxu1 }
 0x64e   : > { %v2181_v20 = vadd.f32 %v4140_v45, %v2180_v5 }
 0x650   : > { %v4202_v52 = vadd.f32 %v2181_v20, %v4076_v54  ;;  %v4277_v20 = vsub.f32 %v4160_v57, %v2266_v56 }
 0x652   : > { %v2240_v41 = vsel %vm1277_vm6, %v4202_v52, 0.0  ;;  %v2298_v57 = vmul.f32 %v4277_v20, %v4277_v20 }
 0x653   : > { %2241 = vadd.xlane.f32.xlu1 %v2240_v41  ;;  %v2227_v0 = vpop.xlane.xlu2 %2226 }
 0x654   : > { %v2267_v43 = vmul.f32 %v2227_v0, %v3819_v53 }
 0x655   : > { %v2182_v14 = vpop.f32.mrf.mxu1 }
 0x656   : > { %v2183_v11 = vadd.f32 %v4140_v45, %v2182_v14  ;;  %v4241_v24 = vsub.f32 %v4168_v32, %v2267_v43 }
 0x658   : > { %v2209_v10 = vadd.f32 %v2183_v11, %v4079_v44 }
 0x65a   : > { %v2243_v22 = vsel %vm1277_vm6, %v2209_v10, 0.0 }
 0x65b   : > { %2244 = vadd.xlane.f32.xlu2 %v2243_v22  ;;  %v2230_v3 = vpop.xlane.xlu0 %2229 }
 0x65c   : > { %v2268_v30 = vmul.f32 %v2230_v3, %v3819_v53 }
 0x65d   : > { %v2185_v49 = vpop.f32.mrf.mxu1 }
 0x65e   : > { %v2186_v36 = vadd.f32 %v4140_v45, %v2185_v49 }
 0x660   : > { %v4211_v29 = vadd.f32 %v2186_v36, %v4093_v13 }
 0x662   : > { %v2246_v54 = vsel %vm1277_vm6, %v4211_v29, 0.0 }
 0x663   : > { %2247 = vadd.xlane.f32.xlu0 %v2246_v54  ;;  %v2233_v11 = vpop.xlane.xlu1 %2232  ;;  %v2318_v54 = vsel %vm1277_vm6, %v2298_v57, 0.0  ;;  %v4347_v57 = vld [vmem:[%s4538_s12] ss:$0 sm:$0xff] }
 0x665   : > { %v2187_v18 = vpop.f32.mrf.mxu1 }
 0x666   : > { %v2188_v8 = vadd.f32 %v4140_v45, %v2187_v18 }
 0x668   : > { %v4217_v12 = vadd.f32 %v2188_v8, %v4096_v42 }
 0x66a   : > { %v2249_v44 = vsel %vm1277_vm6, %v4217_v12, 0.0 }
 0x66b   : > { %2250 = vadd.xlane.f32.xlu1 %v2249_v44 }
 0x66d   : > { %v2190_v15 = vpop.f32.mrf.mxu1 }
 0x66e   : > { %v2191_v28 = vadd.f32 %v4140_v45, %v2190_v15 }
 0x670   : > { %v4223_v13 = vadd.f32 %v2191_v28, %v4109_v59 }
 0x672   : > { %v2252_v16 = vsel %vm1277_vm6, %v4223_v13, 0.0 }
 0x673   : > { %2253 = vadd.xlane.f32.xlu2 %v2252_v16 }
 0x675   : > { %v2192_v33 = vpop.f32.mrf.mxu1 }
 0x676   : > { %v2193_v42 = vadd.f32 %v4140_v45, %v2192_v33 }
 0x678   : > { %v4230_v19 = vadd.f32 %v2193_v42, %v4112_v17  ;;  %v2299_v17 = vmul.f32 %v4241_v24, %v4241_v24 }
 0x67a   : > { %v2255_v59 = vsel %vm1277_vm6, %v4230_v19, 0.0  ;;  %v2321_v9 = vsel %vm1277_vm6, %v2299_v17, 0.0 }
 0x67b   : > { %2256 = vadd.xlane.f32.xlu0 %v2255_v59 }
 0x683   : > { %2313 = vadd.xlane.f32.xlu0 %v2312_v25 }
 0x68b   : > { %2322 = vadd.xlane.f32.xlu0 %v2321_v9 }
 0x6b6   : > { %v2236_v39 = vpop.xlane.xlu2 %2235 }
 0x6b7   : > { %v2270_v34 = vmul.f32 %v2236_v39, %v3819_v53 }
 0x6b9   : > { %v4248_v51 = vsub.f32 %v2206_v48, %v2270_v34  ;;  %v4261_v48 = vsub.f32 %v4153_v31, %v2265_v55 }
 0x6bb   : > { %v2302_v46 = vmul.f32 %v4248_v51, %v4248_v51  ;;  %v2297_v35 = vmul.f32 %v4261_v48, %v4261_v48 }
 0x6bd   : > { %v2330_v32 = vsel %vm1277_vm6, %v2302_v46, 0.0 }
 0x6be   : > { %2331 = vadd.xlane.f32.xlu0 %v2330_v32  ;;  %v2239_v22 = vpop.xlane.xlu0 %2238 }
 0x6bf   : > { %v2271_v49 = vmul.f32 %v2239_v22, %v3819_v53 }
 0x6c1   : > { %v4297_v18 = vsub.f32 %v4195_v60, %v2271_v49 }
 0x6c6   : > { %v2242_v8 = vpop.xlane.xlu1 %2241 }
 0x6c7   : > { %v2272_v28 = vmul.f32 %v2242_v8, %v3819_v53 }
 0x6c8   : > { %v2195_v23 = vpop.f32.mrf.mxu1 }
 0x6c9   : > { %v2196_v2 = vadd.f32 %v4140_v45, %v2195_v23  ;;  %v4307_v33 = vsub.f32 %v4202_v52, %v2272_v28 }
 0x6cb   : > { %v4256_v62 = vadd.f32 %v2196_v2, %v4127_v7  ;;  %v2304_v52 = vmul.f32 %v4307_v33, %v4307_v33 }
 0x6cd   : > { %v2258_v37 = vsel %vm1277_vm6, %v4256_v62, 0.0  ;;  %v2336_v34 = vsel %vm1277_vm6, %v2304_v52, 0.0 }
 0x6ce   : > { %v2245_v26 = vpop.xlane.xlu2 %2244  ;;  %2259 = vadd.xlane.f32.xlu1 %v2258_v37 }
 0x6cf   : > { %v2273_v6 = vmul.f32 %v2245_v26, %v3819_v53 }
 0x6d0   : > { %v2197_v4 = vpop.f32.mrf.mxu1 }
 0x6d1   : > { %v4265_v47 = vsub.f32 %v2209_v10, %v2273_v6  ;;  %v2198_v7 = vadd.f32 %v4140_v45, %v2197_v4  ;;  %v4283_v45 = vsub.f32 %v4175_v38, %v2268_v30  ;;  %v2315_v10 = vsel %vm1277_vm6, %v2297_v35, 0.0 }
 0x6d3   : > { %v2305_v31 = vmul.f32 %v4265_v47, %v4265_v47  ;;  %v4274_v5 = vadd.f32 %v2198_v7, %v4130_v58  ;;  %v2269_v58 = vmul.f32 %v2233_v11, %v3819_v53  ;;  %v2300_v36 = vmul.f32 %v4283_v45, %v4283_v45 }
 0x6d5   : > { %v2339_v41 = vsel %vm1277_vm6, %v2305_v31, 0.0  ;;  %v2261_v14 = vsel %vm1277_vm6, %v4274_v5, 0.0  ;;  %v4293_v38 = vsub.f32 %v4183_v21, %v2269_v58  ;;  %v2324_v44 = vsel %vm1277_vm6, %v2300_v36, 0.0 }
 0x6d6   : > { %2340 = vadd.xlane.f32.xlu0 %v2339_v41  ;;  %2262 = vadd.xlane.f32.xlu2 %v2261_v14  ;;  %v2248_v15 = vpop.xlane.xlu0 %2247  ;;  %v2303_v21 = vmul.f32 %v4297_v18, %v4297_v18 }
 0x6d7   : > { %2316 = vadd.xlane.f32.xlu1 %v2315_v10  ;;  %v2301_v16 = vmul.f32 %v4293_v38, %v4293_v38  ;;  %v2274_v63 = vmul.f32 %v2248_v15, %v3819_v53 }
 0x6d8   : > { %v2333_v0 = vsel %vm1277_vm6, %v2303_v21, 0.0 }
 0x6d9   : > { %v2327_v60 = vsel %vm1277_vm6, %v2301_v16, 0.0  ;;  %v4311_v1 = vsub.f32 %v4211_v29, %v2274_v63 }
 0x6db   : > { %v2306_v29 = vmul.f32 %v4311_v1, %v4311_v1 }
 0x6de   : > { %2319 = vadd.xlane.f32.xlu2 %v2318_v54  ;;  %v2251_v42 = vpop.xlane.xlu1 %2250  ;;  %v4353_v54 = vld [vmem:[%s4539_s13] ss:$0 sm:$0xff] }
 0x6df   : > { %2325 = vadd.xlane.f32.xlu1 %v2324_v44  ;;  %v2275_v61 = vmul.f32 %v2251_v42, %v3819_v53 }
 0x6e1   : > { %v4326_v9 = vsub.f32 %v4217_v12, %v2275_v61 }
 0x6e3   : > { %v2307_v23 = vmul.f32 %v4326_v9, %v4326_v9 }
 0x6e5   : > { %v2345_v55 = vsel %vm1277_vm6, %v2307_v23, 0.0 }
 0x6e6   : > { %v2254_v59 = vpop.xlane.xlu2 %2253  ;;  %2328 = vadd.xlane.f32.xlu2 %v2327_v60 }
 0x6e7   : > { %v2276_v43 = vmul.f32 %v2254_v59, %v3819_v53  ;;  %2334 = vadd.xlane.f32.xlu1 %v2333_v0 }
 0x6e9   : > { %v4317_v25 = vsub.f32 %v4223_v13, %v2276_v43  ;;  %v2342_v13 = vsel %vm1277_vm6, %v2306_v29, 0.0 }
 0x6eb   : > { %v2308_v17 = vmul.f32 %v4317_v25, %v4317_v25 }
 0x6ed   : > { %v2348_v39 = vsel %vm1277_vm6, %v2308_v17, 0.0 }
 0x6ee   : > { %v2257_v46 = vpop.xlane.xlu0 %2256  ;;  %2349 = vadd.xlane.f32.xlu0 %v2348_v39  ;;  %2337 = vadd.xlane.f32.xlu2 %v2336_v34 }
 0x6ef   : > { %v2277_v32 = vmul.f32 %v2257_v46, %v3819_v53  ;;  %2343 = vadd.xlane.f32.xlu1 %v2342_v13 }
 0x6f1   : > { %v4333_v27 = vsub.f32 %v4230_v19, %v2277_v32 }
 0x6f3   : > { %v2309_v12 = vmul.f32 %v4333_v27, %v4333_v27 }
 0x6f5   : > { %v2351_v2 = vsel %vm1277_vm6, %v2309_v12, 0.0 }
 0x6f6   : > { %v2314_v37 = vpop.xlane.xlu0 %2313  ;;  %2346 = vadd.xlane.f32.xlu2 %v2345_v55 }
 0x6f7   : > { %v2360_v50 = vmul.f32 %v2314_v37, %v3819_v53  ;;  %2352 = vadd.xlane.f32.xlu1 %v2351_v2 }
 0x6f9   : > { %v2376_v26 = vadd.f32 1e-05, %v2360_v50 }
 0x6fb   : > { %3088 = vrsqrt.f32 %v2376_v26  ;;  %vm2398_vm0 = vweird.f32 %v2376_v26 }
 0x6fe   : > { %v2323_v3 = vpop.xlane.xlu0 %2322 }
 0x6ff   : > { %v2363_v19 = vmul.f32 %v2323_v3, %v3819_v53 }
 0x701   : > { %v3089_v6 = vpop.eup %3088  ;;  %v2379_v4 = vadd.f32 1e-05, %v2363_v19 }
 0x702   : > { %v2393_v56 = vmul.f32 %v3089_v6, %v2376_v26  ;;  %vm2399_vm8 = vweird.f32 %v3089_v6 }
 0x703   : > { %3090 = vrsqrt.f32 %v2379_v4  ;;  %vm2400_vm1 = vmor %vm2398_vm0, %vm2399_vm8  ;;  %vm2428_vm3 = vweird.f32 %v2379_v4 }
 0x704   : > { %v2394_v7 = vmul.f32 %v3089_v6, %v2393_v56 }
 0x706   : > { %v2395_v30 = vmul.f32 0.5, %v2394_v7 }
 0x708   : > { %v2396_v35 = vsub.f32 1.5, %v2395_v30 }
 0x709   : > { %v3091_v31 = vpop.eup %3090 }
 0x70a   : > { %v2397_v41 = vmul.f32 %v3089_v6, %v2396_v35  ;;  %v2423_v14 = vmul.f32 %v3091_v31, %v2379_v4  ;;  %vm2429_vm2 = vweird.f32 %v3091_v31 }
 0x70b   : > { %vm2430_vm4 = vmor %vm2428_vm3, %vm2429_vm2 }
 0x70c   : > { %v2401_v11 = vsel %vm2400_vm1, %v3089_v6, %v2397_v41  ;;  %v2424_v10 = vmul.f32 %v3091_v31, %v2423_v14 }
 0x70d   : > { %v2552_v22 = vmul.f32 %v2401_v11, %v4233_v40 }
 0x70e   : > { %v2425_v58 = vmul.f32 0.5, %v2424_v10 }
 0x70f   : > { %v2568_v49 = vmul.f32 %v4347_v57, %v2552_v22 }
 0x710   : > { %v2426_v36 = vsub.f32 1.5, %v2425_v58 }
 0x711   : > { %v2584_v8 = vadd.f32 %v4353_v54, %v2568_v49 }
 0x712   : > { %v2427_v44 = vmul.f32 %v3091_v31, %v2426_v36 }
 0x713   : > { %2600 = vst.msk [vmem:[%s3289_s21] sm:$0xff] %vm1277_vm6, %v2584_v8 }
 0x714   : > { %v2431_v40 = vsel %vm2430_vm4, %v3091_v31, %v2427_v44 }
 0x715   : > { %v2555_v15 = vmul.f32 %v2431_v40, %v4241_v24 }
 0x717   : > { %v2571_v28 = vmul.f32 %v4347_v57, %v2555_v15 }
 0x719   : > { %v2587_v16 = vadd.f32 %v4353_v54, %v2571_v28 }
 0x71b   : > { %2603 = vst.msk [vmem:[%s3289_s21 + $0x18] sm:$0xff] %vm1277_vm6, %v2587_v16 }
 0x731   : > { %v2332_v63 = vpop.xlane.xlu0 %2331 }
 0x732   : > { %v2366_v21 = vmul.f32 %v2332_v63, %v3819_v53 }
 0x734   : > { %v2382_v60 = vadd.f32 1e-05, %v2366_v21 }
 0x736   : > { %3092 = vrsqrt.f32 %v2382_v60  ;;  %vm2458_vm7 = vweird.f32 %v2382_v60 }
 0x73c   : > { %v3093_v42 = vpop.eup %3092 }
 0x73d   : > { %v2453_v59 = vmul.f32 %v3093_v42, %v2382_v60  ;;  %vm2459_vm5 = vweird.f32 %v3093_v42 }
 0x73e   : > { %vm2460_vm9 = vmor %vm2458_vm7, %vm2459_vm5 }
 0x73f   : > { %v2454_v0 = vmul.f32 %v3093_v42, %v2453_v59 }
 0x741   : > { %v2455_v43 = vmul.f32 0.5, %v2454_v0  ;;  %v2260_v61 = vpop.xlane.xlu1 %2259 }
 0x742   : > { %v2278_v52 = vmul.f32 %v2260_v61, %v3819_v53 }
 0x743   : > { %v2456_v29 = vsub.f32 1.5, %v2455_v43 }
 0x744   : > { %v4366_v24 = vsub.f32 %v4256_v62, %v2278_v52 }
 0x745   : > { %v2457_v17 = vmul.f32 %v3093_v42, %v2456_v29 }
 0x746   : > { %v2310_v39 = vmul.f32 %v4366_v24, %v4366_v24 }
 0x747   : > { %v2461_v34 = vsel %vm2460_vm9, %v3093_v42, %v2457_v17 }
 0x748   : > { %v2558_v46 = vmul.f32 %v2461_v34, %v4248_v51  ;;  %v2354_v13 = vsel %vm1277_vm6, %v2310_v39, 0.0 }
 0x749   : > { %v2341_v32 = vpop.xlane.xlu0 %2340  ;;  %v2263_v23 = vpop.xlane.xlu2 %2262  ;;  %2355 = vadd.xlane.f32.xlu2 %v2354_v13 }
 0x74a   : > { %v2574_v12 = vmul.f32 %v4347_v57, %v2558_v46  ;;  %v2369_v62 = vmul.f32 %v2341_v32, %v3819_v53  ;;  %v2279_v2 = vmul.f32 %v2263_v23, %v3819_v53  ;;  %v2317_v55 = vpop.xlane.xlu1 %2316 }
 0x74b   : > { %v2361_v37 = vmul.f32 %v2317_v55, %v3819_v53 }
 0x74c   : > { %v2590_v50 = vadd.f32 %v4353_v54, %v2574_v12  ;;  %v2385_v26 = vadd.f32 1e-05, %v2369_v62  ;;  %v4378_v3 = vsub.f32 %v4274_v5, %v2279_v2 }
 0x74d   : > { %v2377_v51 = vadd.f32 1e-05, %v2361_v37 }
 0x74e   : > { %2606 = vst.msk [vmem:[%s3289_s21 + $0x30] sm:$0xff] %vm1277_vm6, %v2590_v50  ;;  %3094 = vrsqrt.f32 %v2385_v26  ;;  %v2311_v19 = vmul.f32 %v4378_v3, %v4378_v3  ;;  %vm2488_vm12 = vweird.f32 %v2385_v26 }
 0x74f   : > { %3096 = vrsqrt.f32 %v2377_v51  ;;  %vm2408_vm14 = vweird.f32 %v2377_v51 }
 0x750   : > { %v2357_v6 = vsel %vm1277_vm6, %v2311_v19, 0.0 }
 0x751   : > { %2358 = vadd.xlane.f32.xlu0 %v2357_v6  ;;  %v2320_v4 = vpop.xlane.xlu2 %2319 }
 0x752   : > { %v2362_v56 = vmul.f32 %v2320_v4, %v3819_v53  ;;  %v2326_v7 = vpop.xlane.xlu1 %2325 }
 0x753   : > { %v2364_v30 = vmul.f32 %v2326_v7, %v3819_v53 }
 0x754   : > { %v3095_v35 = vpop.eup %3094  ;;  %v4387_v5 = vadd.f32 1e-05, %v2362_v56 }
 0x755   : > { %v3097_v31 = vpop.eup %3096  ;;  %v2483_v41 = vmul.f32 %v3095_v35, %v2385_v26  ;;  %v4389_v14 = vadd.f32 1e-05, %v2364_v30  ;;  %vm2489_vm10 = vweird.f32 %v3095_v35 }
 0x756   : > { %v2403_v11 = vmul.f32 %v3097_v31, %v2377_v51  ;;  %3098 = vrsqrt.f32 %v4387_v5  ;;  %vm2409_vm11 = vweird.f32 %v3097_v31  ;;  %vm2490_vm13 = vmor %vm2488_vm12, %vm2489_vm10  ;;  %vm2418_vm8 = vweird.f32 %v4387_v5 }
 0x757   : > { %v2484_v10 = vmul.f32 %v3095_v35, %v2483_v41  ;;  %3100 = vrsqrt.f32 %v4389_v14  ;;  %vm2410_vm15 = vmor %vm2408_vm14, %vm2409_vm11  ;;  %vm2438_vm3 = vweird.f32 %v4389_v14 }
 0x758   : > { %v2404_v22 = vmul.f32 %v3097_v31, %v2403_v11 }
 0x759   : > { %v2485_v58 = vmul.f32 0.5, %v2484_v10  ;;  %v2329_v49 = vpop.xlane.xlu2 %2328 }
 0x75a   : > { %v2405_v36 = vmul.f32 0.5, %v2404_v22  ;;  %v2365_v8 = vmul.f32 %v2329_v49, %v3819_v53  ;;  %v2335_v44 = vpop.xlane.xlu1 %2334 }
 0x75b   : > { %v2486_v40 = vsub.f32 1.5, %v2485_v58  ;;  %v2367_v15 = vmul.f32 %v2335_v44, %v3819_v53 }
 0x75c   : > { %v3099_v28 = vpop.eup %3098  ;;  %v2406_v16 = vsub.f32 1.5, %v2405_v36  ;;  %v4395_v63 = vadd.f32 1e-05, %v2365_v8 }
 0x75d   : > { %v3101_v21 = vpop.eup %3100  ;;  %v2487_v60 = vmul.f32 %v3095_v35, %v2486_v40  ;;  %v2413_v42 = vmul.f32 %v3099_v28, %v4387_v5  ;;  %v4398_v59 = vadd.f32 1e-05, %v2367_v15  ;;  %vm2419_vm0 = vweird.f32 %v3099_v28 }
 0x75e   : > { %v2407_v0 = vmul.f32 %v3097_v31, %v2406_v16  ;;  %v2433_v43 = vmul.f32 %v3101_v21, %v4389_v14  ;;  %3102 = vrsqrt.f32 %v4395_v63  ;;  %vm2439_vm1 = vweird.f32 %v3101_v21  ;;  %vm2420_vm2 = vmor %vm2418_vm8, %vm2419_vm0 }
 0x75f   : > { %v2491_v61 = vsel %vm2490_vm13, %v3095_v35, %v2487_v60  ;;  %v2414_v52 = vmul.f32 %v3099_v28, %v2413_v42  ;;  %3104 = vrsqrt.f32 %v4398_v59  ;;  %vm2440_vm4 = vmor %vm2438_vm3, %vm2439_vm1  ;;  %vm2448_vm9 = vweird.f32 %v4395_v63 }
 0x760   : > { %v2561_v29 = vmul.f32 %v2491_v61, %v4265_v47  ;;  %v2411_v17 = vsel %vm2410_vm15, %v3097_v31, %v2407_v0  ;;  %v2434_v39 = vmul.f32 %v3101_v21, %v2433_v43  ;;  %vm2468_vm11 = vweird.f32 %v4398_v59 }
 0x761   : > { %v2553_v34 = vmul.f32 %v2411_v17, %v4261_v48  ;;  %v2415_v46 = vmul.f32 0.5, %v2414_v52  ;;  %v2350_v13 = vpop.xlane.xlu0 %2349  ;;  %v2338_v32 = vpop.xlane.xlu2 %2337 }
 0x762   : > { %v2577_v23 = vmul.f32 %v4347_v57, %v2561_v29  ;;  %v2435_v12 = vmul.f32 0.5, %v2434_v39  ;;  %v2372_v62 = vmul.f32 %v2350_v13, %v3819_v53  ;;  %v2368_v2 = vmul.f32 %v2338_v32, %v3819_v53  ;;  %v2344_v55 = vpop.xlane.xlu1 %2343 }
 0x763   : > { %v2569_v47 = vmul.f32 %v4347_v57, %v2553_v34  ;;  %v2416_v37 = vsub.f32 1.5, %v2415_v46  ;;  %v2370_v30 = vmul.f32 %v2344_v55, %v3819_v53 }
 0x764   : > { %v3103_v48 = vpop.eup %3102  ;;  %v2593_v50 = vadd.f32 %v4353_v54, %v2577_v23  ;;  %v2436_v26 = vsub.f32 1.5, %v2435_v12  ;;  %v4411_v51 = vadd.f32 1e-05, %v2372_v62  ;;  %v4413_v19 = vadd.f32 1e-05, %v2368_v2 }
 0x765   : > { %v3105_v6 = vpop.eup %3104  ;;  %v2585_v4 = vadd.f32 %v4353_v54, %v2569_v47  ;;  %v2417_v56 = vmul.f32 %v3099_v28, %v2416_v37  ;;  %v2443_v7 = vmul.f32 %v3103_v48, %v4395_v63  ;;  %v4431_v14 = vadd.f32 1e-05, %v2370_v30 }
 0x766   : > { %2609 = vst.msk [vmem:[%s3289_s21 + $0x48] sm:$0xff] %vm1277_vm6, %v2593_v50  ;;  %v2437_v35 = vmul.f32 %v3101_v21, %v2436_v26  ;;  %v2463_v31 = vmul.f32 %v3105_v6, %v4398_v59  ;;  %3106 = vrsqrt.f32 %v4411_v51  ;;  %vm2449_vm5 = vweird.f32 %v3103_v48 }
 0x767   : > { %2601 = vst.msk [vmem:[%s3289_s21 + $0x8] sm:$0xff] %vm1277_vm6, %v2585_v4  ;;  %v2421_v41 = vsel %vm2420_vm2, %v3099_v28, %v2417_v56  ;;  %v2444_v11 = vmul.f32 %v3103_v48, %v2443_v7  ;;  %3108 = vrsqrt.f32 %v4413_v19  ;;  %vm2469_vm7 = vweird.f32 %v3105_v6  ;;  %vm2450_vm10 = vmor %vm2448_vm9, %vm2449_vm5 }
 0x768   : > { %v2554_v10 = vmul.f32 %v2421_v41, %v4277_v20  ;;  %v2441_v22 = vsel %vm2440_vm4, %v3101_v21, %v2437_v35  ;;  %v2464_v5 = vmul.f32 %v3105_v6, %v2463_v31  ;;  %3110 = vrsqrt.f32 %v4431_v14  ;;  %vm2470_vm12 = vmor %vm2468_vm11, %vm2469_vm7 }
 0x769   : > { %v2556_v58 = vmul.f32 %v2441_v22, %v4283_v45  ;;  %v2445_v49 = vmul.f32 0.5, %v2444_v11  ;;  %v2347_v36 = vpop.xlane.xlu2 %2346  ;;  %vm2518_vm15 = vweird.f32 %v4411_v51  ;;  %vm2478_vm0 = vweird.f32 %v4413_v19 }
 0x76a   : > { %v2570_v8 = vmul.f32 %v4347_v57, %v2554_v10  ;;  %v2465_v44 = vmul.f32 0.5, %v2464_v5  ;;  %v2371_v40 = vmul.f32 %v2347_v36, %v3819_v53  ;;  %v2353_v15 = vpop.xlane.xlu1 %2352  ;;  %vm2498_vm3 = vweird.f32 %v4431_v14 }
 0x76b   : > { %v2572_v28 = vmul.f32 %v4347_v57, %v2556_v58  ;;  %v2446_v16 = vsub.f32 1.5, %v2445_v49  ;;  %v2373_v42 = vmul.f32 %v2353_v15, %v3819_v53 }
 0x76c   : > { %v3107_v20 = vpop.eup %3106  ;;  %v2586_v45 = vadd.f32 %v4353_v54, %v2570_v8  ;;  %v2466_v21 = vsub.f32 1.5, %v2465_v44  ;;  %v4438_v60 = vadd.f32 1e-05, %v2371_v40 }
 0x76d   : > { %v3109_v0 = vpop.eup %3108  ;;  %v2588_v43 = vadd.f32 %v4353_v54, %v2572_v28  ;;  %v2447_v61 = vmul.f32 %v3103_v48, %v2446_v16  ;;  %v2513_v52 = vmul.f32 %v3107_v20, %v4411_v51  ;;  %v4453_v63 = vadd.f32 1e-05, %v2373_v42 }
 0x76e   : > { %2602 = vst.msk [vmem:[%s3289_s21 + $0x10] sm:$0xff] %vm1277_vm6, %v2586_v45  ;;  %v2467_v29 = vmul.f32 %v3105_v6, %v2466_v21  ;;  %v2473_v17 = vmul.f32 %v3109_v0, %v4413_v19  ;;  %3112 = vrsqrt.f32 %v4438_v60  ;;  %v3111_v23 = vpop.eup %3110  ;;  %vm2519_vm13 = vweird.f32 %v3107_v20 }
 0x76f   : > { %2604 = vst.msk [vmem:[%s3289_s21 + $0x20] sm:$0xff] %vm1277_vm6, %v2588_v43  ;;  %v2451_v39 = vsel %vm2450_vm10, %v3103_v48, %v2447_v61  ;;  %v2514_v34 = vmul.f32 %v3107_v20, %v2513_v52  ;;  %3114 = vrsqrt.f32 %v4453_v63  ;;  %v2493_v55 = vmul.f32 %v3111_v23, %v4431_v14  ;;  %vm2520_vm8 = vmor %vm2518_vm15, %vm2519_vm13 }
 0x770   : > { %v2557_v46 = vmul.f32 %v2451_v39, %v4293_v38  ;;  %v2471_v13 = vsel %vm2470_vm12, %v3105_v6, %v2467_v29  ;;  %v2474_v32 = vmul.f32 %v3109_v0, %v2473_v17  ;;  %vm2479_vm14 = vweird.f32 %v3109_v0 }
 0x771   : > { %v2559_v12 = vmul.f32 %v2471_v13, %v4297_v18  ;;  %v2515_v59 = vmul.f32 0.5, %v2514_v34  ;;  %v2494_v18 = vmul.f32 %v3111_v23, %v2493_v55  ;;  %vm2480_vm1 = vmor %vm2478_vm0, %vm2479_vm14  ;;  %vm2499_vm2 = vweird.f32 %v3111_v23 }
 0x772   : > { %v2573_v62 = vmul.f32 %v4347_v57, %v2557_v46  ;;  %v2475_v2 = vmul.f32 0.5, %v2474_v32  ;;  %vm2500_vm4 = vmor %vm2498_vm3, %vm2499_vm2  ;;  %vm2508_vm7 = vweird.f32 %v4438_v60  ;;  %vm2528_vm11 = vweird.f32 %v4453_v63 }
 0x773   : > { %v2575_v47 = vmul.f32 %v4347_v57, %v2559_v12  ;;  %v2516_v37 = vsub.f32 1.5, %v2515_v59  ;;  %v2495_v7 = vmul.f32 0.5, %v2494_v18 }
 0x774   : > { %v3113_v38 = vpop.eup %3112  ;;  %v2589_v48 = vadd.f32 %v4353_v54, %v2573_v62  ;;  %v2476_v50 = vsub.f32 1.5, %v2475_v2 }
 0x775   : > { %v2591_v26 = vadd.f32 %v4353_v54, %v2575_v47  ;;  %v2517_v6 = vmul.f32 %v3107_v20, %v2516_v37  ;;  %v2503_v4 = vmul.f32 %v3113_v38, %v4438_v60  ;;  %v3115_v30 = vpop.eup %3114  ;;  %v2496_v51 = vsub.f32 1.5, %v2495_v7 }
 0x776   : > { %2605 = vst.msk [vmem:[%s3289_s21 + $0x28] sm:$0xff] %vm1277_vm6, %v2589_v48  ;;  %v2477_v56 = vmul.f32 %v3109_v0, %v2476_v50  ;;  %v2523_v10 = vmul.f32 %v3115_v30, %v4453_v63  ;;  %vm2509_vm5 = vweird.f32 %v3113_v38  ;;  %vm2529_vm10 = vweird.f32 %v3115_v30 }
 0x777   : > { %2607 = vst.msk [vmem:[%s3289_s21 + $0x38] sm:$0xff] %vm1277_vm6, %v2591_v26  ;;  %v2521_v35 = vsel %vm2520_vm8, %v3107_v20, %v2517_v6  ;;  %v2504_v31 = vmul.f32 %v3113_v38, %v2503_v4  ;;  %v2497_v58 = vmul.f32 %v3111_v23, %v2496_v51  ;;  %vm2510_vm9 = vmor %vm2508_vm7, %vm2509_vm5 }
 0x778   : > { %v2564_v41 = vmul.f32 %v2521_v35, %v4317_v25  ;;  %v2481_v11 = vsel %vm2480_vm1, %v3109_v0, %v2477_v56  ;;  %v2524_v49 = vmul.f32 %v3115_v30, %v2523_v10  ;;  %vm2530_vm12 = vmor %vm2528_vm11, %vm2529_vm10 }
 0x779   : > { %v2560_v22 = vmul.f32 %v2481_v11, %v4307_v33  ;;  %v2505_v5 = vmul.f32 0.5, %v2504_v31  ;;  %v2501_v44 = vsel %vm2500_vm4, %v3111_v23, %v2497_v58 }
 0x77a   : > { %v2580_v19 = vmul.f32 %v4347_v57, %v2564_v41  ;;  %v2525_v40 = vmul.f32 0.5, %v2524_v49  ;;  %v2562_v15 = vmul.f32 %v2501_v44, %v4311_v1 }
 0x77b   : > { %v2576_v36 = vmul.f32 %v4347_v57, %v2560_v22  ;;  %v2506_v8 = vsub.f32 1.5, %v2505_v5 }
 0x77c   : > { %v2596_v25 = vadd.f32 %v4353_v54, %v2580_v19  ;;  %v2526_v14 = vsub.f32 1.5, %v2525_v40  ;;  %v2578_v16 = vmul.f32 %v4347_v57, %v2562_v15 }
 0x77d   : > { %v2592_v33 = vadd.f32 %v4353_v54, %v2576_v36  ;;  %v2507_v28 = vmul.f32 %v3113_v38, %v2506_v8 }
 0x77e   : > { %2612 = vst.msk [vmem:[%s3289_s21 + $0x60] sm:$0xff] %vm1277_vm6, %v2596_v25  ;;  %v2527_v21 = vmul.f32 %v3115_v30, %v2526_v14  ;;  %v2594_v1 = vadd.f32 %v4353_v54, %v2578_v16 }
 0x77f   : > { %2608 = vst.msk [vmem:[%s3289_s21 + $0x40] sm:$0xff] %vm1277_vm6, %v2592_v33  ;;  %v2511_v20 = vsel %vm2510_vm9, %v3113_v38, %v2507_v28 }
 0x780   : > { %v2563_v45 = vmul.f32 %v2511_v20, %v4326_v9  ;;  %v2531_v42 = vsel %vm2530_vm12, %v3115_v30, %v2527_v21  ;;  %2610 = vst.msk [vmem:[%s3289_s21 + $0x50] sm:$0xff] %vm1277_vm6, %v2594_v1 }
 0x781   : > { %v2565_v0 = vmul.f32 %v2531_v42, %v4333_v27 }
 0x782   : > { %v2579_v60 = vmul.f32 %v4347_v57, %v2563_v45 }
 0x783   : > { %v2581_v61 = vmul.f32 %v4347_v57, %v2565_v0 }
 0x784   : > { %v2595_v43 = vadd.f32 %v4353_v54, %v2579_v60 }
 0x785   : > { %v2597_v9 = vadd.f32 %v4353_v54, %v2581_v61 }
 0x786   : > { %2611 = vst.msk [vmem:[%s3289_s21 + $0x58] sm:$0xff] %vm1277_vm6, %v2595_v43 }
 0x787   : > { %2613 = vst.msk [vmem:[%s3289_s21 + $0x68] sm:$0xff] %vm1277_vm6, %v2597_v9 }
 0x7bc   : > { %v2356_v52 = vpop.xlane.xlu2 %2355 }
 0x7bd   : > { %v2374_v29 = vmul.f32 %v2356_v52, %v3819_v53 }
 0x7bf   : > { %v2390_v17 = vadd.f32 1e-05, %v2374_v29 }
 0x7c1   : > { %3116 = vrsqrt.f32 %v2390_v17  ;;  %vm2538_vm14 = vweird.f32 %v2390_v17 }
 0x7c4   : > { %v2359_v39 = vpop.xlane.xlu0 %2358 }
 0x7c5   : > { %v2375_v34 = vmul.f32 %v2359_v39, %v3819_v53 }
 0x7c7   : > { %v3117_v63 = vpop.eup %3116  ;;  %v2391_v27 = vadd.f32 1e-05, %v2375_v34 }
 0x7c8   : > { %v2533_v46 = vmul.f32 %v3117_v63, %v2390_v17  ;;  %vm2539_vm13 = vweird.f32 %v3117_v63 }
 0x7c9   : > { %3118 = vrsqrt.f32 %v2391_v27  ;;  %vm2540_vm15 = vmor %vm2538_vm14, %vm2539_vm13  ;;  %vm2548_vm0 = vweird.f32 %v2391_v27 }
 0x7ca   : > { %v2534_v13 = vmul.f32 %v3117_v63, %v2533_v46 }
 0x7cc   : > { %v2535_v32 = vmul.f32 0.5, %v2534_v13 }
 0x7ce   : > { %v2536_v23 = vsub.f32 1.5, %v2535_v32 }
 0x7cf   : > { %v3119_v12 = vpop.eup %3118 }
 0x7d0   : > { %v2537_v59 = vmul.f32 %v3117_v63, %v2536_v23  ;;  %v2543_v62 = vmul.f32 %v3119_v12, %v2391_v27  ;;  %vm2549_vm8 = vweird.f32 %v3119_v12 }
 0x7d1   : > { %vm2550_vm1 = vmor %vm2548_vm0, %vm2549_vm8 }
 0x7d2   : > { %v2541_v2 = vsel %vm2540_vm15, %v3117_v63, %v2537_v59  ;;  %v2544_v55 = vmul.f32 %v3119_v12, %v2543_v62 }
 0x7d3   : > { %v2566_v47 = vmul.f32 %v2541_v2, %v4366_v24 }
 0x7d4   : > { %v2545_v53 = vmul.f32 0.5, %v2544_v55 }
 0x7d5   : > { %v2582_v37 = vmul.f32 %v4347_v57, %v2566_v47 }
 0x7d6   : > { %v2546_v38 = vsub.f32 1.5, %v2545_v53 }
 0x7d7   : > { %v2598_v48 = vadd.f32 %v4353_v54, %v2582_v37 }
 0x7d8   : > { %v2547_v50 = vmul.f32 %v3119_v12, %v2546_v38 }
 0x7d9   : > { %2614 = vst.msk [vmem:[%s3289_s21 + $0x70] sm:$0xff] %vm1277_vm6, %v2598_v48 }
 0x7da   : > { %v2551_v18 = vsel %vm2550_vm1, %v3119_v12, %v2547_v50 }
 0x7db   : > { %v2567_v26 = vmul.f32 %v2551_v18, %v4378_v3 }
 0x7dd   : > { %v2583_v6 = vmul.f32 %v4347_v57, %v2567_v26 }
 0x7df   : > { %v2599_v4 = vadd.f32 %v4353_v54, %v2583_v6 }
 0x7e1   : > { %2615 = vst.msk [vmem:[%s3289_s21 + $0x78] sm:$0xff] %vm1277_vm6, %v2599_v4 }
 0x7e2 PF: > { %s4557_s11 = sld [smem:[#allocation8_spill]] }
 0x7e3   : > { %s4558_s18 = sld [smem:[#allocation6_spill]] }
 0x7e4   : > { %s4559_s19 = sld [smem:[#allocation7_spill]] }
 0x7e5   : > { %s4560_s20 = sld [smem:[#allocation9_spill]] }
 0x7e6   : > { %s4561_s21 = sld [smem:[#allocation10_spill]] }
 0x7e8   : > { %s26_s22 = sadd.s32 1, %s4557_s11  }
 0x7e9   : > { %p23_p10 = scmp.ge.s32.totalorder %s26_s22, 6  }
 0x7eb   :  { %25 = sbr.rel (!%p23_p10) target bundleno = 4 (0x4), region = 137 }

</bundles_post_ra>
